<compile_context>
chip_gen: v7x
topology: tpu7x:2x2x1
jax: 0.10.0
libtpu: 0.0.40
codegen_flags: <defaults>
</compile_context>

<pallas_src>
import numpy as np

import jax
import jax.numpy as jnp
from jax.experimental import pallas as pl
from jax.experimental.pallas import tpu as pltpu


# ----------------------------- Pallas kernels ------------------------------

def _conv_pool_kernel(xe_ref, xo_ref, w_ref, b_ref, o_ref):
    """Fused 3x3 conv (pad=1) + bias + ReLU + 2x2 maxpool for a batch block.

    xe_ref: (B, Hp+1, Wf) bf16, even padded rows (row 2j), (W+2)*Cin lanes each.
    xo_ref: (B, Hp+1, Wf) bf16, odd  padded rows (row 2j+1).
    w_ref : (3, Wf, 2*Nout) bf16, slab kh = conv kernel row kh; the two Nout
            column halves hold horizontal pool parity s=0 / s=1.
    b_ref : (1, Nout) f32, bias tiled per pooled column.
    o_ref : (B, Hp, Nout) bf16, pooled output rows (Nout = (W//2)*Cout).

    relu(pool(conv+b)) == relu(max_windows(conv) + b) since +b, relu monotonic.
    """
    bsz, hp, nout = o_ref.shape
    wf = xe_ref.shape[-1]
    m = bsz * hp

    # Four distinct padded-row slabs covering both vertical pool positions.
    e0 = xe_ref[:, 0:hp, :].reshape(m, wf)        # padded rows 2j
    e1 = xe_ref[:, 1:hp + 1, :].reshape(m, wf)    # padded rows 2j+2
    o0 = xo_ref[:, 0:hp, :].reshape(m, wf)        # padded rows 2j+1
    o1 = xo_ref[:, 1:hp + 1, :].reshape(m, wf)    # padded rows 2j+3

    w0 = w_ref[0]
    w1 = w_ref[1]
    w2 = w_ref[2]

    # Conv rows h = 2j (q=0) and h = 2j+1 (q=1); both s parities live in the
    # 2*Nout column dim of the weights.  M = B*Hp, K = Wf, N = 512.
    acc_q0 = (jnp.dot(e0, w0, preferred_element_type=jnp.float32)
              + jnp.dot(o0, w1, preferred_element_type=jnp.float32)
              + jnp.dot(e1, w2, preferred_element_type=jnp.float32))
    acc_q1 = (jnp.dot(o0, w0, preferred_element_type=jnp.float32)
              + jnp.dot(e1, w1, preferred_element_type=jnp.float32)
              + jnp.dot(o1, w2, preferred_element_type=jnp.float32))

    acc = jnp.maximum(acc_q0, acc_q1)                      # max over q (VPU)
    pooled = jnp.maximum(acc[:, :nout], acc[:, nout:])     # max over s (vreg-aligned)
    out = jnp.maximum(pooled + b_ref[...], 0.0)            # bias + ReLU (f32)
    o_ref[...] = out.reshape(bsz, hp, nout).astype(o_ref.dtype)


def _mlp_kernel(x_ref, w1_ref, b1_ref, w2_ref, b2_ref, o_ref):
    """Fused fc1 (+bias, ReLU) -> fc2 (+bias) on one M-tile, all in VMEM."""
    h = jnp.dot(x_ref[...], w1_ref[...], preferred_element_type=jnp.float32)
    h = jnp.maximum(h + b1_ref[...], 0.0)
    o = jnp.dot(h.astype(w2_ref.dtype), w2_ref[...],
                preferred_element_type=jnp.float32)
    o_ref[...] = (o + b2_ref[...]).astype(o_ref.dtype)


# ------------------------------ wrappers -----------------------------------

def conv3x3_relu_pool(x_nhwc, w3, b_tiled, *, cout, block_batch=32):
    """Conv2d(3x3, pad=1) + ReLU + MaxPool(2,2) as a single pallas_call.

    x_nhwc: (N, H, W, Cin), N must be a multiple of min(block_batch, N).
    Returns pooled feature map (N, H//2, W//2, cout) in bf16.
    """
    n, h, w, cin = x_nhwc.shape
    hp, wh = h // 2, w // 2
    wf = (w + 2) * cin
    nout = wh * cout
    bn = min(block_batch, n)
    assert n % bn == 0, "batch must be a multiple of the conv block batch"

    # Tiny XLA layout glue on the input only: zero-pad, flatten (w, cin) into
    # lanes, split into even / odd padded rows (total bytes == padded image,
    # no row duplication).
    xpad = jnp.pad(x_nhwc, ((0, 0), (1, 1), (1, 1), (0, 0)))
    xpad = xpad.astype(jnp.bfloat16).reshape(n, hp + 1, 2, wf)
    xe = xpad[:, :, 0, :]                                  # (N, Hp+1, Wf)
    xo = xpad[:, :, 1, :]                                  # (N, Hp+1, Wf)

    cost = pl.CostEstimate(
        flops=2 * 6 * n * hp * wf * (2 * nout),
        transcendentals=0,
        bytes_accessed=(2 * n * (hp + 1) * wf * 2          # xe + xo (bf16)
                        + 3 * wf * 2 * nout * 2            # weights (bf16)
                        + nout * 4                         # bias (f32)
                        + n * hp * nout * 2),              # output (bf16)
    )
    out = pl.pallas_call(
        _conv_pool_kernel,
        out_shape=jax.ShapeDtypeStruct((n, hp, nout), jnp.bfloat16),
        grid=(n // bn,),
        in_specs=[
            pl.BlockSpec((bn, hp + 1, wf), lambda i: (i, 0, 0)),
            pl.BlockSpec((bn, hp + 1, wf), lambda i: (i, 0, 0)),
            pl.BlockSpec((3, wf, 2 * nout), lambda i: (0, 0, 0)),  # resident
            pl.BlockSpec((1, nout), lambda i: (0, 0)),             # resident
        ],
        out_specs=pl.BlockSpec((bn, hp, nout), lambda i: (i, 0, 0)),
        compiler_params=pltpu.CompilerParams(dimension_semantics=("parallel",)),
        cost_estimate=cost,
    )(xe, xo, w3, b_tiled)
    return out.reshape(n, hp, wh, cout)


def mlp_head(x, w1, b1, w2, b2, *, max_tile=512):
    """Fused relu(x @ w1 + b1) @ w2 + b2, tiled over rows of x.

    w2/b2 are lane-padded to 128 outputs at init; caller slices the logits.
    """
    m, k = x.shape
    h1 = w1.shape[1]
    no = w2.shape[1]
    tm = min(max_tile, m)
    mp = pl.cdiv(m, tm) * tm
    xp = x if mp == m else jnp.pad(x, ((0, mp - m), (0, 0)))
    xp = xp.astype(jnp.bfloat16)

    cost = pl.CostEstimate(
        flops=2 * mp * k * h1 + 2 * mp * h1 * no,
        transcendentals=0,
        bytes_accessed=(mp * k * 2 + k * h1 * 2 + h1 * no * 2
                        + (h1 + no) * 4 + mp * no * 4),
    )
    out = pl.pallas_call(
        _mlp_kernel,
        out_shape=jax.ShapeDtypeStruct((mp, no), jnp.float32),
        grid=(mp // tm,),
        in_specs=[
            pl.BlockSpec((tm, k), lambda i: (i, 0)),
            pl.BlockSpec((k, h1), lambda i: (0, 0)),   # w1 resident in VMEM
            pl.BlockSpec((1, h1), lambda i: (0, 0)),
            pl.BlockSpec((h1, no), lambda i: (0, 0)),  # w2 resident in VMEM
            pl.BlockSpec((1, no), lambda i: (0, 0)),
        ],
        out_specs=pl.BlockSpec((tm, no), lambda i: (i, 0)),
        compiler_params=pltpu.CompilerParams(dimension_semantics=("parallel",)),
        cost_estimate=cost,
    )(xp, w1, b1, w2, b2)
    return out[:m]


# ------------------------------ parameters ----------------------------------

def init_params(key):
    ks = jax.random.split(key, 8)
    scale = 0.1
    return {
        "conv1_w": scale * jax.random.normal(ks[0], (16, 3, 3, 3), jnp.float32),
        "conv1_b": scale * jax.random.normal(ks[1], (16,), jnp.float32),
        "conv2_w": scale * jax.random.normal(ks[2], (32, 16, 3, 3), jnp.float32),
        "conv2_b": scale * jax.random.normal(ks[3], (32,), jnp.float32),
        "fc1_w": scale * jax.random.normal(ks[4], (128, 32 * 8 * 8), jnp.float32),
        "fc1_b": scale * jax.random.normal(ks[5], (128,), jnp.float32),
        "fc2_w": scale * jax.random.normal(ks[6], (10, 128), jnp.float32),
        "fc2_b": scale * jax.random.normal(ks[7], (10,), jnp.float32),
    }


def _build_conv_weight(w_oihw, width):
    """(Cout,Cin,3,3) PyTorch weight -> (3, (W+2)*Cin, 2*(W//2)*Cout) bf16 slabs.

    Slab kh places kernel row kh so that for padded input row r flattened as
    (W+2)*Cin lanes:
      conv(h, 2*pw+s, co) = sum_kh xrow[h+kh] @ B[kh][:, s*Nout + pw*Cout + co]
    The two Nout column halves hold the s=0 / s=1 horizontal pool parities.
    """
    w = np.asarray(w_oihw, np.float32)
    cout, cin, kh_sz, kw_sz = w.shape
    wh = width // 2
    wf = (width + 2) * cin
    nout = wh * cout
    b = np.zeros((kh_sz, wf, 2 * nout), np.float32)
    for kh in range(kh_sz):
        for s in range(2):
            for kw in range(kw_sz):
                blk = w[:, :, kh, kw].T                    # (Cin, Cout)
                for pw in range(wh):
                    r0 = (2 * pw + s + kw) * cin
                    c0 = s * nout + pw * cout
                    b[kh, r0:r0 + cin, c0:c0 + cout] = blk
    return jnp.asarray(b, jnp.bfloat16)


def prepare_params(params):
    """Hoist every weight re-layout out of the forward path (init-time only)."""
    prep = {}
    prep["conv1_w3"] = _build_conv_weight(params["conv1_w"], width=32)
    prep["conv1_b"] = jnp.tile(params["conv1_b"], 32 // 2).reshape(1, -1)
    prep["conv2_w3"] = _build_conv_weight(params["conv2_w"], width=16)
    prep["conv2_b"] = jnp.tile(params["conv2_b"], 16 // 2).reshape(1, -1)
    # fc1: fold PyTorch's NCHW .view(-1, 32*8*8) ordering (c,h,w) into the
    # weight columns so the kernel consumes the NHWC (h,w,c) flatten directly.
    w1 = params["fc1_w"].reshape(128, 32, 8, 8).transpose(0, 2, 3, 1)
    prep["fc1_w"] = jnp.asarray(w1.reshape(128, 32 * 8 * 8).T, jnp.bfloat16)
    prep["fc1_b"] = params["fc1_b"].reshape(1, -1)
    # fc2: lane-pad 10 -> 128 output columns (zeros) for dense stores.
    w2 = params["fc2_w"].T                                  # (128, 10)
    prep["fc2_w"] = jnp.pad(w2, ((0, 0), (0, 128 - 10))).astype(jnp.bfloat16)
    prep["fc2_b"] = jnp.pad(params["fc2_b"], (0, 128 - 10)).reshape(1, -1)
    return prep


# ------------------------------ model ----------------------------------------

@jax.jit
def simple_cnn_forward(prep, x_nchw):
    n = x_nchw.shape[0]
    bn = min(32, n)                       # conv batch block (M = bn*Hp per dot)
    npad = pl.cdiv(n, bn) * bn
    x = jnp.transpose(x_nchw, (0, 2, 3, 1)).astype(jnp.float32)   # NCHW -> NHWC
    if npad != n:
        x = jnp.pad(x, ((0, npad - n), (0, 0), (0, 0), (0, 0)))
    x = conv3x3_relu_pool(x, prep["conv1_w3"], prep["conv1_b"],
                          cout=16, block_batch=bn)          # (Np,16,16,16)
    x = conv3x3_relu_pool(x, prep["conv2_w3"], prep["conv2_b"],
                          cout=32, block_batch=bn)          # (Np, 8, 8,32)
    x = x.reshape(npad, 8 * 8 * 32)       # (h,w,c) flatten; fc1 columns match
    logits = mlp_head(x, prep["fc1_w"], prep["fc1_b"],
                      prep["fc2_w"], prep["fc2_b"])         # (Np, 128) f32
    return logits[:n, :10]


def reference_forward(params, x_nchw):
    """Pure-XLA f32 reference matching the PyTorch module exactly."""
    x = x_nchw.astype(jnp.float32)

    def conv(x, w, b):
        y = jax.lax.conv_general_dilated(
            x, w, window_strides=(1, 1), padding=((1, 1), (1, 1)),
            dimension_numbers=("NCHW", "OIHW", "NCHW"))
        return jax.nn.relu(y + b[None, :, None, None])

    def pool(x):
        return jax.lax.reduce_window(x, -jnp.inf, jax.lax.max,
                                     (1, 1, 2, 2), (1, 1, 2, 2), "VALID")

    x = pool(conv(x, params["conv1_w"], params["conv1_b"]))
    x = pool(conv(x, params["conv2_w"], params["conv2_b"]))
    x = x.reshape(x.shape[0], -1)
    x = jax.nn.relu(x @ params["fc1_w"].T + params["fc1_b"])
    return x @ params["fc2_w"].T + params["fc2_b"]


# ------------------------------ main ------------------------------------------

if __name__ == "__main__":
    key = jax.random.PRNGKey(0)
    pkey, xkey = jax.random.split(key)
    params = init_params(pkey)
    prep = prepare_params(params)

    # fc1 expects 32*8*8 features => 32x32 spatial input (CIFAR-10 size).
    x = jax.random.normal(xkey, (2, 3, 32, 32), jnp.float32)

    logits = simple_cnn_forward(prep, x)
    logits = jax.block_until_ready(logits)
    assert logits.shape == (2, 10)
    assert logits.dtype == jnp.float32

    # Loose self-check vs. the f32 XLA reference (kernels run bf16 on the MXU).
    ref = jax.block_until_ready(reference_forward(params, x))
    max_err = float(jnp.max(jnp.abs(logits - ref)))
    assert max_err < 0.5, f"max |err| = {max_err}"

    print("KERNEL_OK")
</pallas_src>

<mosaic_0001>
module attributes {stable_mosaic.version = 11 : i64} {
  func.func @_conv_pool_kernel(%arg0: i32, %arg1: memref<2x17x102xbf16, #tpu.memory_space<vmem>>, %arg2: memref<2x17x102xbf16, #tpu.memory_space<vmem>>, %arg3: memref<3x102x512xbf16, #tpu.memory_space<vmem>>, %arg4: memref<1x256xf32, #tpu.memory_space<vmem>>, %arg5: memref<2x16x256xbf16, #tpu.memory_space<vmem>>) attributes {dimension_semantics = [#tpu.dimension_semantics<parallel>], iteration_bounds = array<i64: 1>, scalar_prefetch = 0 : i64, scratch_operands = 0 : i64, tpu.core_type = #tpu.core_type<tc>, window_params = [{transform_indices = @transform_0, window_bounds = array<i64: 2, 17, 102>}, {transform_indices = @transform_1, window_bounds = array<i64: 2, 17, 102>}, {pipeline_mode = #tpu.pipeline_mode<synchronous>, transform_indices = @transform_2, window_bounds = array<i64: 3, 102, 512>}, {pipeline_mode = #tpu.pipeline_mode<synchronous>, transform_indices = @transform_3, window_bounds = array<i64: 1, 256>}, {transform_indices = @transform_4, window_bounds = array<i64: 2, 16, 256>}]} {
    %c0 = arith.constant 0 : index
    %c0_0 = arith.constant 0 : index
    %c0_1 = arith.constant 0 : index
    %0 = vector.load %arg1[%c0, %c0_0, %c0_1] : memref<2x17x102xbf16, #tpu.memory_space<vmem>>, vector<2x16x102xbf16>
    %1 = vector.shape_cast %0 : vector<2x16x102xbf16> to vector<32x102xbf16>
    %c0_2 = arith.constant 0 : index
    %c1 = arith.constant 1 : index
    %c0_3 = arith.constant 0 : index
    %2 = vector.load %arg1[%c0_2, %c1, %c0_3] : memref<2x17x102xbf16, #tpu.memory_space<vmem>>, vector<2x16x102xbf16>
    %3 = vector.shape_cast %2 : vector<2x16x102xbf16> to vector<32x102xbf16>
    %c0_4 = arith.constant 0 : index
    %c0_5 = arith.constant 0 : index
    %c0_6 = arith.constant 0 : index
    %4 = vector.load %arg2[%c0_4, %c0_5, %c0_6] : memref<2x17x102xbf16, #tpu.memory_space<vmem>>, vector<2x16x102xbf16>
    %5 = vector.shape_cast %4 : vector<2x16x102xbf16> to vector<32x102xbf16>
    %c0_7 = arith.constant 0 : index
    %c1_8 = arith.constant 1 : index
    %c0_9 = arith.constant 0 : index
    %6 = vector.load %arg2[%c0_7, %c1_8, %c0_9] : memref<2x17x102xbf16, #tpu.memory_space<vmem>>, vector<2x16x102xbf16>
    %7 = vector.shape_cast %6 : vector<2x16x102xbf16> to vector<32x102xbf16>
    %c0_10 = arith.constant 0 : index
    %c0_11 = arith.constant 0 : index
    %c0_12 = arith.constant 0 : index
    %8 = vector.load %arg3[%c0_10, %c0_11, %c0_12] : memref<3x102x512xbf16, #tpu.memory_space<vmem>>, vector<1x102x512xbf16>
    %9 = vector.shape_cast %8 : vector<1x102x512xbf16> to vector<102x512xbf16>
    %c1_13 = arith.constant 1 : index
    %c0_14 = arith.constant 0 : index
    %c0_15 = arith.constant 0 : index
    %10 = vector.load %arg3[%c1_13, %c0_14, %c0_15] : memref<3x102x512xbf16, #tpu.memory_space<vmem>>, vector<1x102x512xbf16>
    %11 = vector.shape_cast %10 : vector<1x102x512xbf16> to vector<102x512xbf16>
    %c2 = arith.constant 2 : index
    %c0_16 = arith.constant 0 : index
    %c0_17 = arith.constant 0 : index
    %12 = vector.load %arg3[%c2, %c0_16, %c0_17] : memref<3x102x512xbf16, #tpu.memory_space<vmem>>, vector<1x102x512xbf16>
    %13 = vector.shape_cast %12 : vector<1x102x512xbf16> to vector<102x512xbf16>
    %cst = arith.constant dense<0.000000e+00> : vector<32x512xf32>
    %14 = tpu.matmul %1, %9, %cst {dimension_numbers = #tpu.dot_dimension_numbers<[1], [0], [0], [1], [0, 0, 1, 1], [], []>} : vector<32x102xbf16>, vector<102x512xbf16>, vector<32x512xf32> -> vector<32x512xf32>
    %cst_18 = arith.constant dense<0.000000e+00> : vector<32x512xf32>
    %15 = tpu.matmul %5, %11, %cst_18 {dimension_numbers = #tpu.dot_dimension_numbers<[1], [0], [0], [1], [0, 0, 1, 1], [], []>} : vector<32x102xbf16>, vector<102x512xbf16>, vector<32x512xf32> -> vector<32x512xf32>
    %16 = arith.addf %14, %15 : vector<32x512xf32>
    %cst_19 = arith.constant dense<0.000000e+00> : vector<32x512xf32>
    %17 = tpu.matmul %3, %13, %cst_19 {dimension_numbers = #tpu.dot_dimension_numbers<[1], [0], [0], [1], [0, 0, 1, 1], [], []>} : vector<32x102xbf16>, vector<102x512xbf16>, vector<32x512xf32> -> vector<32x512xf32>
    %18 = arith.addf %16, %17 : vector<32x512xf32>
    %cst_20 = arith.constant dense<0.000000e+00> : vector<32x512xf32>
    %19 = tpu.matmul %5, %9, %cst_20 {dimension_numbers = #tpu.dot_dimension_numbers<[1], [0], [0], [1], [0, 0, 1, 1], [], []>} : vector<32x102xbf16>, vector<102x512xbf16>, vector<32x512xf32> -> vector<32x512xf32>
    %cst_21 = arith.constant dense<0.000000e+00> : vector<32x512xf32>
    %20 = tpu.matmul %3, %11, %cst_21 {dimension_numbers = #tpu.dot_dimension_numbers<[1], [0], [0], [1], [0, 0, 1, 1], [], []>} : vector<32x102xbf16>, vector<102x512xbf16>, vector<32x512xf32> -> vector<32x512xf32>
    %21 = arith.addf %19, %20 : vector<32x512xf32>
    %cst_22 = arith.constant dense<0.000000e+00> : vector<32x512xf32>
    %22 = tpu.matmul %7, %13, %cst_22 {dimension_numbers = #tpu.dot_dimension_numbers<[1], [0], [0], [1], [0, 0, 1, 1], [], []>} : vector<32x102xbf16>, vector<102x512xbf16>, vector<32x512xf32> -> vector<32x512xf32>
    %23 = arith.addf %21, %22 : vector<32x512xf32>
    %24 = arith.maximumf %18, %23 : vector<32x512xf32>
    %25 = vector.extract_strided_slice %24 {offsets = [0, 0], sizes = [32, 256], strides = [1, 1]} : vector<32x512xf32> to vector<32x256xf32>
    %26 = vector.extract_strided_slice %24 {offsets = [0, 256], sizes = [32, 256], strides = [1, 1]} : vector<32x512xf32> to vector<32x256xf32>
    %27 = arith.maximumf %25, %26 : vector<32x256xf32>
    %c0_23 = arith.constant 0 : index
    %c0_24 = arith.constant 0 : index
    %28 = vector.load %arg4[%c0_23, %c0_24] : memref<1x256xf32, #tpu.memory_space<vmem>>, vector<1x256xf32>
    %29 = vector.broadcast %28 : vector<1x256xf32> to vector<32x256xf32>
    %30 = arith.addf %27, %29 : vector<32x256xf32>
    %cst_25 = arith.constant 0.000000e+00 : f32
    %31 = vector.broadcast %cst_25 : f32 to vector<32x256xf32>
    %32 = arith.maximumf %30, %31 : vector<32x256xf32>
    %33 = vector.shape_cast %32 : vector<32x256xf32> to vector<2x16x256xf32>
    %34 = arith.truncf %33 : vector<2x16x256xf32> to vector<2x16x256xbf16>
    %c0_26 = arith.constant 0 : index
    %c0_27 = arith.constant 0 : index
    %c0_28 = arith.constant 0 : index
    %35 = vector.load %arg5[%c0_26, %c0_27, %c0_28] : memref<2x16x256xbf16, #tpu.memory_space<vmem>>, vector<2x16x256xbf16>
    tpu.vector_store %arg5[%c0_26, %c0_27, %c0_28], %34 {strides = array<i32>} : memref<2x16x256xbf16, #tpu.memory_space<vmem>>, vector<2x16x256xbf16>,
    return
  }
  func.func @transform_0(%arg0: i32) -> (i32, i32, i32) {
    %c0_i32 = arith.constant 0 : i32
    %c0_i32_0 = arith.constant 0 : i32
    %c0_i32_1 = arith.constant 0 : i32
    return %arg0, %c0_i32, %c0_i32_0 : i32, i32, i32
  }
  func.func @transform_1(%arg0: i32) -> (i32, i32, i32) {
    %c0_i32 = arith.constant 0 : i32
    %c0_i32_0 = arith.constant 0 : i32
    %c0_i32_1 = arith.constant 0 : i32
    return %arg0, %c0_i32, %c0_i32_0 : i32, i32, i32
  }
  func.func @transform_2(%arg0: i32) -> (i32, i32, i32) {
    %c0_i32 = arith.constant 0 : i32
    %c0_i32_0 = arith.constant 0 : i32
    %c0_i32_1 = arith.constant 0 : i32
    %c0_i32_2 = arith.constant 0 : i32
    return %c0_i32, %c0_i32_0, %c0_i32_1 : i32, i32, i32
  }
  func.func @transform_3(%arg0: i32) -> (i32, i32) {
    %c0_i32 = arith.constant 0 : i32
    %c0_i32_0 = arith.constant 0 : i32
    %c0_i32_1 = arith.constant 0 : i32
    return %c0_i32, %c0_i32_0 : i32, i32
  }
  func.func @transform_4(%arg0: i32) -> (i32, i32, i32) {
    %c0_i32 = arith.constant 0 : i32
    %c0_i32_0 = arith.constant 0 : i32
    %c0_i32_1 = arith.constant 0 : i32
    return %arg0, %c0_i32, %c0_i32_0 : i32, i32, i32
  }
}

module attributes {stable_mosaic.version = 11 : i64} {
  func.func @_conv_pool_kernel(%arg0: i32, %arg1: memref<2x9x288xbf16, #tpu.memory_space<vmem>>, %arg2: memref<2x9x288xbf16, #tpu.memory_space<vmem>>, %arg3: memref<3x288x512xbf16, #tpu.memory_space<vmem>>, %arg4: memref<1x256xf32, #tpu.memory_space<vmem>>, %arg5: memref<2x8x256xbf16, #tpu.memory_space<vmem>>) attributes {dimension_semantics = [#tpu.dimension_semantics<parallel>], iteration_bounds = array<i64: 1>, scalar_prefetch = 0 : i64, scratch_operands = 0 : i64, tpu.core_type = #tpu.core_type<tc>, window_params = [{transform_indices = @transform_0, window_bounds = array<i64: 2, 9, 288>}, {transform_indices = @transform_1, window_bounds = array<i64: 2, 9, 288>}, {pipeline_mode = #tpu.pipeline_mode<synchronous>, transform_indices = @transform_2, window_bounds = array<i64: 3, 288, 512>}, {pipeline_mode = #tpu.pipeline_mode<synchronous>, transform_indices = @transform_3, window_bounds = array<i64: 1, 256>}, {transform_indices = @transform_4, window_bounds = array<i64: 2, 8, 256>}]} {
    %c0 = arith.constant 0 : index
    %c0_0 = arith.constant 0 : index
    %c0_1 = arith.constant 0 : index
    %0 = vector.load %arg1[%c0, %c0_0, %c0_1] : memref<2x9x288xbf16, #tpu.memory_space<vmem>>, vector<2x8x288xbf16>
    %1 = vector.shape_cast %0 : vector<2x8x288xbf16> to vector<16x288xbf16>
    %c0_2 = arith.constant 0 : index
    %c1 = arith.constant 1 : index
    %c0_3 = arith.constant 0 : index
    %2 = vector.load %arg1[%c0_2, %c1, %c0_3] : memref<2x9x288xbf16, #tpu.memory_space<vmem>>, vector<2x8x288xbf16>
    %3 = vector.shape_cast %2 : vector<2x8x288xbf16> to vector<16x288xbf16>
    %c0_4 = arith.constant 0 : index
    %c0_5 = arith.constant 0 : index
    %c0_6 = arith.constant 0 : index
    %4 = vector.load %arg2[%c0_4, %c0_5, %c0_6] : memref<2x9x288xbf16, #tpu.memory_space<vmem>>, vector<2x8x288xbf16>
    %5 = vector.shape_cast %4 : vector<2x8x288xbf16> to vector<16x288xbf16>
    %c0_7 = arith.constant 0 : index
    %c1_8 = arith.constant 1 : index
    %c0_9 = arith.constant 0 : index
    %6 = vector.load %arg2[%c0_7, %c1_8, %c0_9] : memref<2x9x288xbf16, #tpu.memory_space<vmem>>, vector<2x8x288xbf16>
    %7 = vector.shape_cast %6 : vector<2x8x288xbf16> to vector<16x288xbf16>
    %c0_10 = arith.constant 0 : index
    %c0_11 = arith.constant 0 : index
    %c0_12 = arith.constant 0 : index
    %8 = vector.load %arg3[%c0_10, %c0_11, %c0_12] : memref<3x288x512xbf16, #tpu.memory_space<vmem>>, vector<1x288x512xbf16>
    %9 = vector.shape_cast %8 : vector<1x288x512xbf16> to vector<288x512xbf16>
    %c1_13 = arith.constant 1 : index
    %c0_14 = arith.constant 0 : index
    %c0_15 = arith.constant 0 : index
    %10 = vector.load %arg3[%c1_13, %c0_14, %c0_15] : memref<3x288x512xbf16, #tpu.memory_space<vmem>>, vector<1x288x512xbf16>
    %11 = vector.shape_cast %10 : vector<1x288x512xbf16> to vector<288x512xbf16>
    %c2 = arith.constant 2 : index
    %c0_16 = arith.constant 0 : index
    %c0_17 = arith.constant 0 : index
    %12 = vector.load %arg3[%c2, %c0_16, %c0_17] : memref<3x288x512xbf16, #tpu.memory_space<vmem>>, vector<1x288x512xbf16>
    %13 = vector.shape_cast %12 : vector<1x288x512xbf16> to vector<288x512xbf16>
    %cst = arith.constant dense<0.000000e+00> : vector<16x512xf32>
    %14 = tpu.matmul %1, %9, %cst {dimension_numbers = #tpu.dot_dimension_numbers<[1], [0], [0], [1], [0, 0, 1, 1], [], []>} : vector<16x288xbf16>, vector<288x512xbf16>, vector<16x512xf32> -> vector<16x512xf32>
    %cst_18 = arith.constant dense<0.000000e+00> : vector<16x512xf32>
    %15 = tpu.matmul %5, %11, %cst_18 {dimension_numbers = #tpu.dot_dimension_numbers<[1], [0], [0], [1], [0, 0, 1, 1], [], []>} : vector<16x288xbf16>, vector<288x512xbf16>, vector<16x512xf32> -> vector<16x512xf32>
    %16 = arith.addf %14, %15 : vector<16x512xf32>
    %cst_19 = arith.constant dense<0.000000e+00> : vector<16x512xf32>
    %17 = tpu.matmul %3, %13, %cst_19 {dimension_numbers = #tpu.dot_dimension_numbers<[1], [0], [0], [1], [0, 0, 1, 1], [], []>} : vector<16x288xbf16>, vector<288x512xbf16>, vector<16x512xf32> -> vector<16x512xf32>
    %18 = arith.addf %16, %17 : vector<16x512xf32>
    %cst_20 = arith.constant dense<0.000000e+00> : vector<16x512xf32>
    %19 = tpu.matmul %5, %9, %cst_20 {dimension_numbers = #tpu.dot_dimension_numbers<[1], [0], [0], [1], [0, 0, 1, 1], [], []>} : vector<16x288xbf16>, vector<288x512xbf16>, vector<16x512xf32> -> vector<16x512xf32>
    %cst_21 = arith.constant dense<0.000000e+00> : vector<16x512xf32>
    %20 = tpu.matmul %3, %11, %cst_21 {dimension_numbers = #tpu.dot_dimension_numbers<[1], [0], [0], [1], [0, 0, 1, 1], [], []>} : vector<16x288xbf16>, vector<288x512xbf16>, vector<16x512xf32> -> vector<16x512xf32>
    %21 = arith.addf %19, %20 : vector<16x512xf32>
    %cst_22 = arith.constant dense<0.000000e+00> : vector<16x512xf32>
    %22 = tpu.matmul %7, %13, %cst_22 {dimension_numbers = #tpu.dot_dimension_numbers<[1], [0], [0], [1], [0, 0, 1, 1], [], []>} : vector<16x288xbf16>, vector<288x512xbf16>, vector<16x512xf32> -> vector<16x512xf32>
    %23 = arith.addf %21, %22 : vector<16x512xf32>
    %24 = arith.maximumf %18, %23 : vector<16x512xf32>
    %25 = vector.extract_strided_slice %24 {offsets = [0, 0], sizes = [16, 256], strides = [1, 1]} : vector<16x512xf32> to vector<16x256xf32>
    %26 = vector.extract_strided_slice %24 {offsets = [0, 256], sizes = [16, 256], strides = [1, 1]} : vector<16x512xf32> to vector<16x256xf32>
    %27 = arith.maximumf %25, %26 : vector<16x256xf32>
    %c0_23 = arith.constant 0 : index
    %c0_24 = arith.constant 0 : index
    %28 = vector.load %arg4[%c0_23, %c0_24] : memref<1x256xf32, #tpu.memory_space<vmem>>, vector<1x256xf32>
    %29 = vector.broadcast %28 : vector<1x256xf32> to vector<16x256xf32>
    %30 = arith.addf %27, %29 : vector<16x256xf32>
    %cst_25 = arith.constant 0.000000e+00 : f32
    %31 = vector.broadcast %cst_25 : f32 to vector<16x256xf32>
    %32 = arith.maximumf %30, %31 : vector<16x256xf32>
    %33 = vector.shape_cast %32 : vector<16x256xf32> to vector<2x8x256xf32>
    %34 = arith.truncf %33 : vector<2x8x256xf32> to vector<2x8x256xbf16>
    %c0_26 = arith.constant 0 : index
    %c0_27 = arith.constant 0 : index
    %c0_28 = arith.constant 0 : index
    %35 = vector.load %arg5[%c0_26, %c0_27, %c0_28] : memref<2x8x256xbf16, #tpu.memory_space<vmem>>, vector<2x8x256xbf16>
    tpu.vector_store %arg5[%c0_26, %c0_27, %c0_28], %34 {strides = array<i32>} : memref<2x8x256xbf16, #tpu.memory_space<vmem>>, vector<2x8x256xbf16>,
    return
  }
  func.func @transform_0(%arg0: i32) -> (i32, i32, i32) {
    %c0_i32 = arith.constant 0 : i32
    %c0_i32_0 = arith.constant 0 : i32
    %c0_i32_1 = arith.constant 0 : i32
    return %arg0, %c0_i32, %c0_i32_0 : i32, i32, i32
  }
  func.func @transform_1(%arg0: i32) -> (i32, i32, i32) {
    %c0_i32 = arith.constant 0 : i32
    %c0_i32_0 = arith.constant 0 : i32
    %c0_i32_1 = arith.constant 0 : i32
    return %arg0, %c0_i32, %c0_i32_0 : i32, i32, i32
  }
  func.func @transform_2(%arg0: i32) -> (i32, i32, i32) {
    %c0_i32 = arith.constant 0 : i32
    %c0_i32_0 = arith.constant 0 : i32
    %c0_i32_1 = arith.constant 0 : i32
    %c0_i32_2 = arith.constant 0 : i32
    return %c0_i32, %c0_i32_0, %c0_i32_1 : i32, i32, i32
  }
  func.func @transform_3(%arg0: i32) -> (i32, i32) {
    %c0_i32 = arith.constant 0 : i32
    %c0_i32_0 = arith.constant 0 : i32
    %c0_i32_1 = arith.constant 0 : i32
    return %c0_i32, %c0_i32_0 : i32, i32
  }
  func.func @transform_4(%arg0: i32) -> (i32, i32, i32) {
    %c0_i32 = arith.constant 0 : i32
    %c0_i32_0 = arith.constant 0 : i32
    %c0_i32_1 = arith.constant 0 : i32
    return %arg0, %c0_i32, %c0_i32_0 : i32, i32, i32
  }
}

module attributes {stable_mosaic.version = 11 : i64} {
  func.func @_mlp_kernel(%arg0: i32, %arg1: memref<2x2048xbf16, #tpu.memory_space<vmem>>, %arg2: memref<2048x128xbf16, #tpu.memory_space<vmem>>, %arg3: memref<1x128xf32, #tpu.memory_space<vmem>>, %arg4: memref<128x128xbf16, #tpu.memory_space<vmem>>, %arg5: memref<1x128xf32, #tpu.memory_space<vmem>>, %arg6: memref<2x128xf32, #tpu.memory_space<vmem>>) attributes {dimension_semantics = [#tpu.dimension_semantics<parallel>], iteration_bounds = array<i64: 1>, scalar_prefetch = 0 : i64, scratch_operands = 0 : i64, tpu.core_type = #tpu.core_type<tc>, window_params = [{transform_indices = @transform_0, window_bounds = array<i64: 2, 2048>}, {pipeline_mode = #tpu.pipeline_mode<synchronous>, transform_indices = @transform_1, window_bounds = array<i64: 2048, 128>}, {pipeline_mode = #tpu.pipeline_mode<synchronous>, transform_indices = @transform_2, window_bounds = array<i64: 1, 128>}, {pipeline_mode = #tpu.pipeline_mode<synchronous>, transform_indices = @transform_3, window_bounds = array<i64: 128, 128>}, {pipeline_mode = #tpu.pipeline_mode<synchronous>, transform_indices = @transform_4, window_bounds = array<i64: 1, 128>}, {transform_indices = @transform_5, window_bounds = array<i64: 2, 128>}]} {
    %c0 = arith.constant 0 : index
    %c0_0 = arith.constant 0 : index
    %0 = vector.load %arg1[%c0, %c0_0] : memref<2x2048xbf16, #tpu.memory_space<vmem>>, vector<2x2048xbf16>
    %c0_1 = arith.constant 0 : index
    %c0_2 = arith.constant 0 : index
    %1 = vector.load %arg2[%c0_1, %c0_2] : memref<2048x128xbf16, #tpu.memory_space<vmem>>, vector<2048x128xbf16>
    %cst = arith.constant dense<0.000000e+00> : vector<2x128xf32>
    %2 = tpu.matmul %0, %1, %cst {dimension_numbers = #tpu.dot_dimension_numbers<[1], [0], [0], [1], [0, 0, 1, 1], [], []>} : vector<2x2048xbf16>, vector<2048x128xbf16>, vector<2x128xf32> -> vector<2x128xf32>
    %c0_3 = arith.constant 0 : index
    %c0_4 = arith.constant 0 : index
    %3 = vector.load %arg3[%c0_3, %c0_4] : memref<1x128xf32, #tpu.memory_space<vmem>>, vector<1x128xf32>
    %4 = vector.broadcast %3 : vector<1x128xf32> to vector<2x128xf32>
    %5 = arith.addf %2, %4 : vector<2x128xf32>
    %cst_5 = arith.constant 0.000000e+00 : f32
    %6 = vector.broadcast %cst_5 : f32 to vector<2x128xf32>
    %7 = arith.maximumf %5, %6 : vector<2x128xf32>
    %8 = arith.truncf %7 : vector<2x128xf32> to vector<2x128xbf16>
    %c0_6 = arith.constant 0 : index
    %c0_7 = arith.constant 0 : index
    %9 = vector.load %arg4[%c0_6, %c0_7] : memref<128x128xbf16, #tpu.memory_space<vmem>>, vector<128x128xbf16>
    %cst_8 = arith.constant dense<0.000000e+00> : vector<2x128xf32>
    %10 = tpu.matmul %8, %9, %cst_8 {dimension_numbers = #tpu.dot_dimension_numbers<[1], [0], [0], [1], [0, 0, 1, 1], [], []>} : vector<2x128xbf16>, vector<128x128xbf16>, vector<2x128xf32> -> vector<2x128xf32>
    %c0_9 = arith.constant 0 : index
    %c0_10 = arith.constant 0 : index
    %11 = vector.load %arg5[%c0_9, %c0_10] : memref<1x128xf32, #tpu.memory_space<vmem>>, vector<1x128xf32>
    %12 = vector.broadcast %11 : vector<1x128xf32> to vector<2x128xf32>
    %13 = arith.addf %10, %12 : vector<2x128xf32>
    %c0_11 = arith.constant 0 : index
    %c0_12 = arith.constant 0 : index
    %14 = vector.load %arg6[%c0_11, %c0_12] : memref<2x128xf32, #tpu.memory_space<vmem>>, vector<2x128xf32>
    tpu.vector_store %arg6[%c0_11, %c0_12], %13 {strides = array<i32>} : memref<2x128xf32, #tpu.memory_space<vmem>>, vector<2x128xf32>,
    return
  }
  func.func @transform_0(%arg0: i32) -> (i32, i32) {
    %c0_i32 = arith.constant 0 : i32
    %c0_i32_0 = arith.constant 0 : i32
    return %arg0, %c0_i32 : i32, i32
  }
  func.func @transform_1(%arg0: i32) -> (i32, i32) {
    %c0_i32 = arith.constant 0 : i32
    %c0_i32_0 = arith.constant 0 : i32
    %c0_i32_1 = arith.constant 0 : i32
    return %c0_i32, %c0_i32_0 : i32, i32
  }
  func.func @transform_2(%arg0: i32) -> (i32, i32) {
    %c0_i32 = arith.constant 0 : i32
    %c0_i32_0 = arith.constant 0 : i32
    %c0_i32_1 = arith.constant 0 : i32
    return %c0_i32, %c0_i32_0 : i32, i32
  }
  func.func @transform_3(%arg0: i32) -> (i32, i32) {
    %c0_i32 = arith.constant 0 : i32
    %c0_i32_0 = arith.constant 0 : i32
    %c0_i32_1 = arith.constant 0 : i32
    return %c0_i32, %c0_i32_0 : i32, i32
  }
  func.func @transform_4(%arg0: i32) -> (i32, i32) {
    %c0_i32 = arith.constant 0 : i32
    %c0_i32_0 = arith.constant 0 : i32
    %c0_i32_1 = arith.constant 0 : i32
    return %c0_i32, %c0_i32_0 : i32, i32
  }
  func.func @transform_5(%arg0: i32) -> (i32, i32) {
    %c0_i32 = arith.constant 0 : i32
    %c0_i32_0 = arith.constant 0 : i32
    return %arg0, %c0_i32 : i32, i32
  }
}

</mosaic_0001>

<bundles_post_ra>
// kernel: simple_cnn_forward.3
= control target key start
LH: loop header
LB: loop body
LE: loop exit
PB: predicated region body
PF: predicated region fallthrough
CT: control target
= control target key end

     0   :  { %v2626_v1 = vmov 0   ;;  %vm356_vm0 = vcmask 1042432   ;;  %vm24_vm1 = vsmask.f32 3328  ;;  %vm25_vm2 = vsmask.f32 7440  ;;  %s2621_s2 = inlined_call_operand.vmem [shape: bf16[3,102,512], index: 2, kind: input, shape index: {}]   ;;  %s2622_s1 = inlined_call_operand.vmem [shape: bf16[2,17,102], index: 1, kind: input, shape index: {}]   ;;  %s2623_s0 = inlined_call_operand.vmem [shape: bf16[2,17,102], index: 0, kind: input, shape index: {}]   ;;  %s2624_s3 = inlined_call_operand.vmem [shape: f32[1,256], index: 3, kind: input, shape index: {}]   ;;  %s2625_s4 = inlined_call_operand.vmem [shape: bf16[2,16,256], index: 4, kind: output, shape index: {}]  }
   0x1   :  { %v1851_v0 = vld [vmem:[%s2621_s2 + $0xd4] ss:$16 sps:$4 sm:$0xff]   ;;  %401 = vmatprep.mubr.bf16.mxu0 %v2626_v1  ;;  %454 = vmatprep.mubr.bf16.mxu1 %v2626_v1  ;;  %v1858_v2 = vld [vmem:[%s2621_s2 + $0xdc] ss:$16 sps:$4 sm:$0xff]   ;;  %v1864_v3 = vld [vmem:[%s2621_s2 + $0xd0] ss:$16 sps:$4 sm:$0xff]  }
   0x2   :  { %369 = vmatprep.subr.bf16.mxu0 %v1851_v0  ;;  %v1869_v4 = vld [vmem:[%s2621_s2 + $0xd8] ss:$16 sps:$4 sm:$0xff]   ;;  %422 = vmatprep.subr.bf16.mxu1 %v1858_v2  ;;  %v1875_v5 = vld [vmem:[%s2621_s2 + $0xf4] ss:$16 sps:$4 sm:$0xff]   ;;  %v1882_v6 = vld [vmem:[%s2621_s2 + $0xfc] ss:$16 sps:$4 sm:$0xff]  }
   0x3   :  { %370 = vmatpush1.bf16.msra.mxu0 %v1864_v3  ;;  %423 = vmatpush1.bf16.msra.mxu1 %v1869_v4  ;;  %v1887_v7 = vld [vmem:[%s2621_s2 + $0xf0] ss:$16 sps:$4 sm:$0xff]   ;;  %v1893_v8 = vld [vmem:[%s2621_s2 + $0xf8] ss:$16 sps:$4 sm:$0xff]   ;;  %v1899_v9 = vld [vmem:[%s2621_s2 + $0x114] ss:$16 sps:$4 sm:$0xff]  }
   0x4   :  { %371 = vmatprep.subr.bf16.mxu0 %v1875_v5  ;;  %424 = vmatprep.subr.bf16.mxu1 %v1882_v6  ;;  %v1904_v10 = vld [vmem:[%s2621_s2 + $0x11c] ss:$16 sps:$4 sm:$0xff]   ;;  %v1909_v11 = vld [vmem:[%s2621_s2 + $0x110] ss:$16 sps:$4 sm:$0xff]   ;;  %v1914_v12 = vld [vmem:[%s2621_s2 + $0x118] ss:$16 sps:$4 sm:$0xff]  }
   0x5   :  { %v1921_v13 = vld [vmem:[%s2621_s2 + $0x134] ss:$16 sps:$4 sm:$0xff]   ;;  %v1928_v14 = vld [vmem:[%s2621_s2 + $0x13c] ss:$16 sps:$4 sm:$0xff]   ;;  %v1933_v15 = vld [vmem:[%s2621_s2 + $0x130] ss:$16 sps:$4 sm:$0xff]  }
   0x6   :  { %v1940_v16 = vld [vmem:[%s2621_s2 + $0x138] ss:$16 sps:$4 sm:$0xff]   ;;  %v1945_v17 = vld [vmem:[%s2621_s2 + $0x154] ss:$16 sps:$4 sm:$0xff]   ;;  %v1952_v18 = vld [vmem:[%s2621_s2 + $0x15c] ss:$16 sps:$4 sm:$0xff]  }
   0x7   :  { %372 = vmatpush1.bf16.msra.mxu0 %v1887_v7  ;;  %425 = vmatpush1.bf16.msra.mxu1 %v1893_v8  ;;  %v1957_v19 = vld [vmem:[%s2621_s2 + $0x150] ss:$16 sps:$4 sm:$0xff]   ;;  %v1964_v20 = vld [vmem:[%s2621_s2 + $0x158] ss:$16 sps:$4 sm:$0xff]   ;;  %v1969_v21 = vld [vmem:[%s2621_s2 + $0x174] ss:$16 sps:$4 sm:$0xff]  }
   0x8   :  { %373 = vmatprep.subr.bf16.mxu0 %v1899_v9  ;;  %426 = vmatprep.subr.bf16.mxu1 %v1904_v10  ;;  %v1976_v22 = vld [vmem:[%s2621_s2 + $0x17c] ss:$16 sps:$4 sm:$0xff]   ;;  %v1469_v23 = vld [vmem:[%s2621_s2 + $0x190] sm:$0x77]  ;;  %v75_v26 = vld [vmem:[%s2622_s1] sm:$0xf] }
   0x9   :  { %v1470_v24 = vld [vmem:[%s2621_s2 + $0x198] sm:$0x77]  ;;  %v1987_v25 = vld [vmem:[%s2621_s2 + $0x170] ss:$16 sps:$4 sm:$0xff]   ;;  %v1999_v28 = vcombine.high %v1469_v23, %v1469_v23  ;;  %v82_v29 = vshrl.u32 %v75_v26, 16  ;;  %v85_v30 = vshll.u32 %v75_v26, 16  ;;  %v1523_v32 = vcombine.low %v1469_v23, %v1469_v23  ;;  %vm2042_vm3 = vmor %vm24_vm1, %vm25_vm2 }
   0xa   :  { %v1997_v27 = vld [vmem:[%s2621_s2 + $0x178] ss:$16 sps:$4 sm:$0xff]   ;;  %v2003_v31 = vcombine.high %v1470_v24, %v1470_v24  ;;  %v1525_v33 = vcombine.low %v1470_v24, %v1470_v24  ;;  %v2008_v34 = vld [vmem:[%s2622_s1 + $0x4] sm:$0xf]  ;;  %v2031_v42 = vld [vmem:[%s2621_s2 + $0xc] ss:$16 sps:$4 sm:$0xff]  }
   0xb   :  { %374 = vmatpush1.bf16.msra.mxu0 %v1909_v11  ;;  %427 = vmatpush1.bf16.msra.mxu1 %v1914_v12  ;;  %v84_v35 = vrot.slane %v82_v29, 4  ;;  %v87_v36 = vrot.slane %v85_v30, 5  ;;  %v91_v37 = vshll.u32 %v2008_v34, 16  ;;  %v2016_v38 = vld [vmem:[%s2621_s2 + $0x4] ss:$16 sps:$4 sm:$0xff]   ;;  %v2023_v40 = vsel %vm356_vm0, %v1523_v32, 0 }
   0xc   :  { %375 = vmatprep.subr.bf16.mxu0 %v1921_v13  ;;  %428 = vmatprep.subr.bf16.mxu1 %v1928_v14  ;;  %v2026_v41 = vsel %vm356_vm0, %v1525_v33, 0  ;;  %v2040_v45 = vld [vmem:[%s2621_s2] ss:$16 sps:$4 sm:$0xff]   ;;  %v2047_v47 = vcombine.low %v75_v26, %v2008_v34  ;;  %v2054_v48 = vld [vmem:[%s2621_s2 + $0x8] ss:$16 sps:$4 sm:$0xff]   ;;  %vm349_vm4 = vcmask 834560  }
   0xd   :  { %v88_v39 = vor.u32 %v87_v36, %v84_v35  ;;  %v2035_v44 = vrot.slane %v91_v37, 5  ;;  %v2063_v50 = vld [vmem:[%s2621_s2 + $0x24] ss:$16 sps:$4 sm:$0xff]   ;;  %v2070_v51 = vld [vmem:[%s2621_s2 + $0x2c] ss:$16 sps:$4 sm:$0xff]  }
   0xe   :  { %2674 = vst [vmem:[#allocation2_spill] sm:$0xff] %v2047_v47  ;;  %v2079_v52 = vld [vmem:[%s2621_s2 + $0x20] ss:$16 sps:$4 sm:$0xff]   ;;  %v2086_v53 = vld [vmem:[%s2621_s2 + $0x28] ss:$16 sps:$4 sm:$0xff]  }
   0xf   :  { %376 = vmatpush1.bf16.msra.mxu0 %v1933_v15  ;;  %429 = vmatpush1.bf16.msra.mxu1 %v1940_v16  ;;  %v2033_v43 = vrot.slane %v88_v39, 4  ;;  %v2091_v54 = vld [vmem:[%s2621_s2 + $0x44] ss:$16 sps:$4 sm:$0xff]   ;;  %v2098_v55 = vld [vmem:[%s2621_s2 + $0x4c] ss:$16 sps:$4 sm:$0xff]  }
  0x10   :  { %377 = vmatprep.subr.bf16.mxu0 %v1945_v17  ;;  %430 = vmatprep.subr.bf16.mxu1 %v1952_v18  ;;  %2675 = vst [vmem:[#allocation3_spill] sm:$0xff] %v2098_v55  ;;  %v77_v56 = vld [vmem:[%s2622_s1 + $0xc] sm:$0xf]  ;;  %v78_v57 = vld [vmem:[%s2622_s1 + $0x10] sm:$0xf] }
  0x11   :  { %v2111_v58 = vld [vmem:[%s2621_s2 + $0x40] ss:$16 sps:$4 sm:$0xff]   ;;  %v2118_v59 = vld [vmem:[%s2621_s2 + $0x48] ss:$16 sps:$4 sm:$0xff]   ;;  %v106_v60 = vshrl.u32 %v77_v56, 16  ;;  %v109_v61 = vshll.u32 %v77_v56, 16  ;;  %v2120_v62 = vcombine.low %v77_v56, %v78_v57 }
  0x12   :  { %2676 = vst [vmem:[#allocation4_spill] sm:$0xff] %v2111_v58  ;;  %2677 = vst [vmem:[#allocation5_spill] sm:$0xff] %v2118_v59  ;;  %v2127_v63 = vld [vmem:[%s2621_s2 + $0x64] ss:$16 sps:$4 sm:$0xff]   ;;  %v2132_v23 = vld [vmem:[%s2621_s2 + $0x6c] ss:$16 sps:$4 sm:$0xff]  }
  0x13   :  { %378 = vmatpush1.bf16.msra.mxu0 %v1957_v19  ;;  %431 = vmatpush1.bf16.msra.mxu1 %v1964_v20  ;;  %2678 = vst [vmem:[#allocation6_spill] sm:$0xff] %v2120_v62  ;;  %2679 = vst [vmem:[#allocation7_spill] sm:$0xff] %v2127_v63  ;;  %v2137_v24 = vld [vmem:[%s2621_s2 + $0x60] ss:$16 sps:$4 sm:$0xff]   ;;  %v2142_v26 = vld [vmem:[%s2621_s2 + $0x68] ss:$16 sps:$4 sm:$0xff]  }
  0x14   :  { %379 = vmatprep.subr.bf16.mxu0 %v1969_v21  ;;  %432 = vmatprep.subr.bf16.mxu1 %v1976_v22  ;;  %2680 = vst [vmem:[#allocation8_spill] sm:$0xff] %v2132_v23  ;;  %2681 = vst [vmem:[#allocation9_spill] sm:$0xff] %v2137_v24  ;;  %v2153_v29 = vld [vmem:[%s2621_s2 + $0x84] ss:$16 sps:$4 sm:$0xff]   ;;  %v108_v30 = vrot.slane %v106_v60, 4  ;;  %v111_v32 = vrot.slane %v109_v61, 5 }
  0x15   :  { %2682 = vst [vmem:[#allocation10_spill] sm:$0xff] %v2142_v26  ;;  %2683 = vst [vmem:[#allocation11_spill] sm:$0xff] %v2153_v29  ;;  %v2160_v33 = vld [vmem:[%s2621_s2 + $0x8c] ss:$16 sps:$4 sm:$0xff]   ;;  %v115_v35 = vshll.u32 %v78_v57, 16  ;;  %v95_v61 = vshrl.u32 %v2008_v34, 16 }
  0x16   :  { %2684 = vst [vmem:[#allocation12_spill] sm:$0xff] %v2160_v33  ;;  %v2167_v36 = vld [vmem:[%s2621_s2 + $0x80] ss:$16 sps:$4 sm:$0xff]   ;;  %v2172_v37 = vld [vmem:[%s2621_s2 + $0x88] ss:$16 sps:$4 sm:$0xff]   ;;  %v112_v60 = vor.u32 %v111_v32, %v108_v30 }
  0x17   :  { %380 = vmatpush1.bf16.msra.mxu0 %v1987_v25  ;;  %433 = vmatpush1.bf16.msra.mxu1 %v1997_v27  ;;  %2685 = vst [vmem:[#allocation13_spill] sm:$0xff] %v2167_v36  ;;  %2686 = vst [vmem:[#allocation14_spill] sm:$0xff] %v2172_v37  ;;  %v2179_v39 = vld [vmem:[%s2621_s2 + $0xa4] ss:$16 sps:$4 sm:$0xff]   ;;  %v2184_v56 = vld [vmem:[%s2621_s2 + $0xac] ss:$16 sps:$4 sm:$0xff]  }
  0x18   :  { %1527 = vmatprep.subr.msk.bf16.mxu0 %vm356_vm0, %v1999_v28  ;;  %1530 = vmatprep.subr.msk.bf16.mxu1 %vm356_vm0, %v2003_v31  ;;  %2687 = vst [vmem:[#allocation15_spill] sm:$0xff] %v2179_v39  ;;  %2688 = vst [vmem:[#allocation16_spill] sm:$0xff] %v2184_v56  ;;  %v153_v49 = vld [vmem:[%s2621_s2 + $0xc0] sm:$0x77]  ;;  %v2209_v30 = vld [vmem:[%s2621_s2 + $0xa8] ss:$16 sps:$4 sm:$0xff]  }
  0x19   :  { %v2204_v34 = vld [vmem:[%s2621_s2 + $0xa0] ss:$16 sps:$4 sm:$0xff]   ;;  %2690 = vst [vmem:[#allocation18_spill] sm:$0xff] %v2209_v30  ;;  %v2211_v32 = vcombine.high %v153_v49, %v153_v49 }
  0x1a   :  { %2689 = vst [vmem:[#allocation17_spill] sm:$0xff] %v2204_v34 }
  0x1b   :  { %382 = vmatpush1.bf16.msra.mxu0 %v2023_v40  ;;  %435 = vmatpush1.bf16.msra.mxu1 %v2026_v41  ;;  %2691 = vst [vmem:[#allocation19_spill] sm:$0xff] %v2211_v32 }
  0x1c   :  { %633 = vmatprep.subr.bf16.mxu0 %v2016_v38  ;;  %686 = vmatprep.subr.bf16.mxu1 %v2031_v42 }
  0x1e   :  { %1528 = vmatmul.mubr.msk.bf16.vlgmr.msra.gmra.mrb[0].mxu0 %vm349_vm4, %v2047_v47  ;;  %1531 = vmatmul.mubr.msk.bf16.vlgmr.msra.gmra.mrb[0].mxu1 %vm349_vm4, %v2047_v47  ;;  %v2197_v47 = vrot.slane %v112_v60, 4  ;;  %v1559_v60 = vcombine.low %v153_v49, %v153_v49 }
  0x1f   :  { %634 = vmatpush1.bf16.msra.mxu0 %v2040_v45  ;;  %687 = vmatpush1.bf16.msra.mxu1 %v2054_v48 }
  0x20   :  { %635 = vmatprep.subr.bf16.mxu0 %v2063_v50  ;;  %688 = vmatprep.subr.bf16.mxu1 %v2070_v51  ;;  %v2234_v49 = vsel %vm356_vm0, %v1559_v60, 0  ;;  %v2261_v60 = vld [vmem:[%s2621_s2 + $0x1a8] ss:$16 sps:$4 sm:$0xff]  }
  0x21   :  { %411 = vmatprep.mubr.bf16.mxu0 %v2626_v1  ;;  %464 = vmatprep.mubr.bf16.mxu1 %v2626_v1  ;;  %2693 = vst [vmem:[#allocation21_spill] sm:$0xff] %v2234_v49  ;;  %2698 = vst [vmem:[#allocation26_spill] sm:$0xff] %v2261_v60 }
  0x23   :  { %636 = vmatpush1.bf16.msra.mxu0 %v2079_v52  ;;  %689 = vmatpush1.bf16.msra.mxu1 %v2086_v53 }
  0x24   :  { %637 = vmatprep.subr.bf16.mxu0 %v2091_v54  ;;  %690 = vmatprep.subr.bf16.mxu1 %v2098_v55 }
  0x26   :  { %1529 = vmatmul.mubr.msk.bf16.gmra.mrb[4].mxu0 %vm349_vm4, %v2120_v62  ;;  %1532 = vmatmul.mubr.msk.bf16.gmra.mrb[4].mxu1 %vm349_vm4, %v2120_v62  ;;  %v154_v62 = vld [vmem:[%s2621_s2 + $0xc8] sm:$0x77] }
  0x27   :  { %638 = vmatpush1.bf16.msra.mxu0 %v2111_v58  ;;  %691 = vmatpush1.bf16.msra.mxu1 %v2118_v59  ;;  %v2702_v59 = vmov 0   ;;  %v2703_v58 = vsel %vm2042_vm3, %v2033_v43, %v2035_v44 }
  0x28   :  { %639 = vmatprep.subr.bf16.mxu0 %v2127_v63  ;;  %692 = vmatprep.subr.bf16.mxu1 %v2132_v23 }
  0x29   :  { %665 = vmatprep.mubr.bf16.mxu0 %v2626_v1  ;;  %718 = vmatprep.mubr.bf16.mxu1 %v2626_v1  ;;  %v2192_v1 = vrot.slane %v115_v35, 5  ;;  %v2219_v35 = vcombine.high %v154_v62, %v154_v62 }
  0x2b   :  { %640 = vmatpush1.bf16.msra.mxu0 %v2137_v24  ;;  %693 = vmatpush1.bf16.msra.mxu1 %v2142_v26  ;;  %v119_v26 = vshrl.u32 %v78_v57, 16  ;;  %2692 = vst [vmem:[#allocation20_spill] sm:$0xff] %v2219_v35  ;;  %v19_v57 = vld [vmem:[%s2623_s0 + $0x4] sm:$0xf]  ;;  %v2707_v43 = vsel %vm2042_vm3, %v2197_v47, %v2192_v1  ;;  %v2367_v47 = vld [vmem:[%s2621_s2 + $0x200] ss:$16 sps:$4 sm:$0xff]  }
  0x2c   :  { %641 = vmatprep.subr.bf16.mxu0 %v2153_v29  ;;  %694 = vmatprep.subr.bf16.mxu1 %v2160_v33  ;;  %v18_v29 = vld [vmem:[%s2623_s0] sm:$0xf]  ;;  %v37_v63 = vshll.u32 %v19_v57, 16  ;;  %2711 = vst [vmem:[#allocation36_spill] sm:$0xff] %v2367_v47 }
  0x2d   :  { %v121_v33 = vrot.slane %v119_v26, 4  ;;  %v2242_v26 = vld [vmem:[%s2621_s2 + $0x1a4] ss:$16 sps:$4 sm:$0xff]   ;;  %v31_v23 = vshll.u32 %v18_v29, 16 }
  0x2e   :  { %2695 = vst [vmem:[#allocation23_spill] sm:$0xff] %v2242_v26 }
  0x2f   :  { %642 = vmatpush1.bf16.msra.mxu0 %v2167_v36  ;;  %695 = vmatpush1.bf16.msra.mxu1 %v2172_v37  ;;  %v1561_v37 = vcombine.low %v154_v62, %v154_v62  ;;  %v97_v36 = vrot.slane %v95_v61, 4  ;;  %v2247_v61 = vld [vmem:[%s2621_s2 + $0x1ac] ss:$16 sps:$4 sm:$0xff]  }
  0x30   :  { %643 = vmatprep.subr.bf16.mxu0 %v2179_v39  ;;  %696 = vmatprep.subr.bf16.mxu1 %v2184_v56  ;;  %2696 = vst [vmem:[#allocation24_spill] sm:$0xff] %v2247_v61 }
  0x31   :  { %v2237_v62 = vsel %vm356_vm0, %v1561_v37, 0  ;;  %v2256_v37 = vld [vmem:[%s2621_s2 + $0x1a0] ss:$16 sps:$4 sm:$0xff]  }
  0x32   :  { %2694 = vst [vmem:[#allocation22_spill] sm:$0xff] %v2237_v62  ;;  %2697 = vst [vmem:[#allocation25_spill] sm:$0xff] %v2256_v37 }
  0x33   :  { %644 = vmatpush1.bf16.msra.mxu0 %v2204_v34  ;;  %697 = vmatpush1.bf16.msra.mxu1 %v2209_v30  ;;  %v1533_v30 = vcombine.low %v18_v29, %v19_v57 }
  0x34   :  { %1563 = vmatprep.subr.msk.bf16.mxu0 %vm356_vm0, %v2211_v32  ;;  %1566 = vmatprep.subr.msk.bf16.mxu1 %vm356_vm0, %v2219_v35  ;;  %v98_v32 = vor.u32 %v97_v36, %v2035_v44  ;;  %v122_v35 = vor.u32 %v121_v33, %v2192_v1  ;;  %v2266_v36 = vld [vmem:[%s2621_s2 + $0x1c4] ss:$16 sps:$4 sm:$0xff]   ;;  %v2273_v33 = vld [vmem:[%s2621_s2 + $0x1cc] ss:$16 sps:$4 sm:$0xff]  }
  0x35   :  { %2699 = vst [vmem:[#allocation27_spill] sm:$0xff] %v2266_v36  ;;  %2700 = vst [vmem:[#allocation28_spill] sm:$0xff] %v2273_v33 }
  0x36   :  { %v99_v34 = vrot.slane %v98_v32, 4  ;;  %v123_v39 = vrot.slane %v122_v35, 4  ;;  %v2301_v32 = vld [vmem:[%s2623_s0 + $0x10] sm:$0xf]  ;;  %v2308_v35 = vld [vmem:[%s2621_s2 + $0x1e4] ss:$16 sps:$4 sm:$0xff]  }
  0x37   :  { %646 = vmatpush1.bf16.msra.mxu0 %v2234_v49  ;;  %699 = vmatpush1.bf16.msra.mxu1 %v2237_v62  ;;  %v79_v62 = vld [vmem:[%s2622_s1 + $0x8] sm:$0x1]  ;;  %v80_v49 = vld [vmem:[%s2622_s1 + $0x14] sm:$0x1] }
  0x38   :  { %893 = vmatprep.subr.bf16.mxu0 %v2242_v26  ;;  %946 = vmatprep.subr.bf16.mxu1 %v2247_v61  ;;  %v101_v56 = vshll.u32 %v79_v62, 16  ;;  %v2286_v61 = vld [vmem:[%s2621_s2 + $0x1c0] ss:$16 sps:$4 sm:$0xff]   ;;  %v2291_v26 = vld [vmem:[%s2621_s2 + $0x1c8] ss:$16 sps:$4 sm:$0xff]   ;;  %v125_v24 = vshll.u32 %v80_v49, 16 }
  0x39   :  { %v2313_v49 = vld [vmem:[%s2621_s2 + $0x1ec] ss:$16 sps:$4 sm:$0xff]  }
  0x3a   :  { %1564 = vmatmul.mubr.msk.bf16.vlgmr.msra.gmra.mrb[0].mxu0 %vm349_vm4, %v1533_v30  ;;  %1567 = vmatmul.mubr.msk.bf16.vlgmr.msra.gmra.mrb[0].mxu1 %vm349_vm4, %v1533_v30  ;;  %v20_v30 = vld [vmem:[%s2623_s0 + $0xc] sm:$0xf]  ;;  %v103_v62 = vrot.slane %v101_v56, 5  ;;  %2701 = vst [vmem:[#allocation29_spill] sm:$0xff] %v2313_v49 }
  0x3b   :  { %894 = vmatpush1.bf16.msra.mxu0 %v2256_v37  ;;  %947 = vmatpush1.bf16.msra.mxu1 %v2261_v60  ;;  %v127_v60 = vrot.slane %v125_v24, 5  ;;  %v28_v37 = vshrl.u32 %v18_v29, 16  ;;  %v2334_v29 = vld [vmem:[%s2621_s2 + $0x1e0] ss:$16 sps:$4 sm:$0xff]  }
  0x3c   :  { %895 = vmatprep.subr.bf16.mxu0 %v2266_v36  ;;  %948 = vmatprep.subr.bf16.mxu1 %v2273_v33  ;;  %v104_v56 = vsel %vm2042_vm3, %v99_v34, %v103_v62  ;;  %v41_v33 = vshrl.u32 %v19_v57, 16  ;;  %v1534_v36 = vcombine.low %v20_v30, %v2301_v32  ;;  %2705 = vst [vmem:[#allocation31_spill] sm:$0xff] %v2334_v29  ;;  %v2339_v34 = vld [vmem:[%s2621_s2 + $0x1e8] ss:$16 sps:$4 sm:$0xff]   ;;  %v39_v62 = vrot.slane %v37_v63, 5 }
  0x3d   :  { %675 = vmatprep.mubr.bf16.mxu0 %v2702_v59  ;;  %728 = vmatprep.mubr.bf16.mxu1 %v2702_v59  ;;  %v2325_v55 = vcombine.low %v2703_v58, %v104_v56  ;;  %v128_v24 = vsel %vm2042_vm3, %v123_v39, %v127_v60  ;;  %2706 = vst [vmem:[#allocation32_spill] sm:$0xff] %v2339_v34  ;;  %v2353_v58 = vld [vmem:[%s2621_s2 + $0x204] ss:$16 sps:$4 sm:$0xff]   ;;  %v2358_v39 = vld [vmem:[%s2621_s2 + $0x20c] ss:$16 sps:$4 sm:$0xff]   ;;  %v30_v57 = vrot.slane %v28_v37, 4 }
  0x3e   :  { %v2346_v44 = vcombine.low %v2707_v43, %v128_v24  ;;  %2709 = vst [vmem:[#allocation34_spill] sm:$0xff] %v2353_v58  ;;  %2710 = vst [vmem:[#allocation35_spill] sm:$0xff] %v2358_v39  ;;  %v33_v60 = vrot.slane %v31_v23, 5  ;;  %v43_v1 = vrot.slane %v41_v33, 4  ;;  %v2372_v37 = vld [vmem:[%s2621_s2 + $0x208] ss:$16 sps:$4 sm:$0xff]  }
  0x3f   :  { %2704 = vst [vmem:[#allocation30_spill] sm:$0xff] %v2325_v55  ;;  %896 = vmatpush1.bf16.msra.mxu0 %v2286_v61  ;;  %949 = vmatpush1.bf16.msra.mxu1 %v2291_v26  ;;  %2712 = vst [vmem:[#allocation37_spill] sm:$0xff] %v2372_v37  ;;  %v2379_v63 = vld [vmem:[%s2621_s2 + $0x224] ss:$16 sps:$4 sm:$0xff]   ;;  %v2384_v23 = vld [vmem:[%s2621_s2 + $0x22c] ss:$16 sps:$4 sm:$0xff]  }
  0x40   :  { %2708 = vst [vmem:[#allocation33_spill] sm:$0xff] %v2346_v44  ;;  %897 = vmatprep.subr.bf16.mxu0 %v2308_v35  ;;  %950 = vmatprep.subr.bf16.mxu1 %v2313_v49  ;;  %2713 = vst [vmem:[#allocation38_spill] sm:$0xff] %v2379_v63  ;;  %v2394_v33 = vld [vmem:[%s2621_s2 + $0x220] ss:$16 sps:$4 sm:$0xff]   ;;  %v52_v56 = vshrl.u32 %v20_v30, 16  ;;  %v55_v24 = vshll.u32 %v20_v30, 16  ;;  %v34_v43 = vor.u32 %v33_v60, %v30_v57 }
  0x41   :  { %2714 = vst [vmem:[#allocation39_spill] sm:$0xff] %v2384_v23  ;;  %2715 = vst [vmem:[#allocation40_spill] sm:$0xff] %v2394_v33  ;;  %v44_v44 = vor.u32 %v43_v1, %v39_v62  ;;  %v2401_v55 = vld [vmem:[%s2621_s2 + $0x228] ss:$16 sps:$4 sm:$0xff]   ;;  %v2410_v30 = vld [vmem:[%s2621_s2 + $0x244] ss:$16 sps:$4 sm:$0xff]  }
  0x42   :  { %1565 = vmatmul.mubr.msk.bf16.gmra.mrb[4].mxu0 %vm349_vm4, %v1534_v36  ;;  %1568 = vmatmul.mubr.msk.bf16.gmra.mrb[4].mxu1 %vm349_vm4, %v1534_v36  ;;  %v22_v36 = vld [vmem:[%s2623_s0 + $0x8] sm:$0x1]  ;;  %2716 = vst [vmem:[#allocation41_spill] sm:$0xff] %v2401_v55  ;;  %2717 = vst [vmem:[#allocation42_spill] sm:$0xff] %v2410_v30  ;;  %v2415_v57 = vld [vmem:[%s2621_s2 + $0x24c] ss:$16 sps:$4 sm:$0xff]  }
  0x43   :  { %898 = vmatpush1.bf16.msra.mxu0 %v2334_v29  ;;  %951 = vmatpush1.bf16.msra.mxu1 %v2339_v34  ;;  %v47_v34 = vshll.u32 %v22_v36, 16  ;;  %2718 = vst [vmem:[#allocation43_spill] sm:$0xff] %v2415_v57  ;;  %v1495_v60 = vld [vmem:[%s2621_s2 + $0x260] sm:$0x77]  ;;  %v54_v1 = vrot.slane %v52_v56, 4  ;;  %v57_v36 = vrot.slane %v55_v24, 5 }
  0x44   :  { %899 = vmatprep.subr.bf16.mxu0 %v2353_v58  ;;  %952 = vmatprep.subr.bf16.mxu1 %v2358_v39  ;;  %v61_v39 = vshll.u32 %v2301_v32, 16  ;;  %v65_v58 = vshrl.u32 %v2301_v32, 16  ;;  %v1496_v32 = vld [vmem:[%s2621_s2 + $0x268] sm:$0x77]  ;;  %v2435_v56 = vcombine.high %v1495_v60, %v1495_v60 }
  0x45   :  { %925 = vmatprep.mubr.bf16.mxu0 %v2702_v59  ;;  %978 = vmatprep.mubr.bf16.mxu1 %v2702_v59  ;;  %v2433_v49 = vld [vmem:[%s2621_s2 + $0x248] ss:$16 sps:$4 sm:$0xff]   ;;  %v49_v24 = vrot.slane %v47_v34, 5  ;;  %v2749_v46 = vld [vmem:[#allocation34_spill] sm:$0xff] }
  0x46   :  { %v67_v29 = vrot.slane %v65_v58, 4  ;;  %v23_v58 = vld [vmem:[%s2623_s0 + $0x14] sm:$0x1] }
  0x47   :  { %900 = vmatpush1.bf16.msra.mxu0 %v2367_v47  ;;  %953 = vmatpush1.bf16.msra.mxu1 %v2372_v37  ;;  %v45_v37 = vrot.slane %v44_v44, 4  ;;  %v63_v47 = vrot.slane %v61_v39, 5  ;;  %v1595_v44 = vcombine.low %v1495_v60, %v1495_v60 }
  0x48   :  { %901 = vmatprep.subr.bf16.mxu0 %v2379_v63  ;;  %954 = vmatprep.subr.bf16.mxu1 %v2384_v23  ;;  %v2426_v23 = vld [vmem:[%s2621_s2 + $0x240] ss:$16 sps:$4 sm:$0xff]   ;;  %v35_v63 = vrot.slane %v34_v43, 4  ;;  %v2439_v43 = vcombine.high %v1496_v32, %v1496_v32 }
  0x49   :  { %v50_v34 = vsel %vm2042_vm3, %v45_v37, %v49_v24  ;;  %v2455_v60 = vsel %vm356_vm0, %v1595_v44, 0 }
  0x4a   :  { %v40_v39 = vsel %vm2042_vm3, %v35_v63, %v39_v62 }
  0x4b   :  { %902 = vmatpush1.bf16.msra.mxu0 %v2394_v33  ;;  %955 = vmatpush1.bf16.msra.mxu1 %v2401_v55  ;;  %v1597_v33 = vcombine.low %v1496_v32, %v1496_v32  ;;  %v71_v55 = vshll.u32 %v23_v58, 16  ;;  %v1569_v63 = vcombine.low %v40_v39, %v50_v34 }
  0x4c   :  { %903 = vmatprep.subr.bf16.mxu0 %v2410_v30  ;;  %956 = vmatprep.subr.bf16.mxu1 %v2415_v57  ;;  %v58_v30 = vor.u32 %v57_v36, %v54_v1  ;;  %v68_v57 = vor.u32 %v67_v29, %v63_v47 }
  0x4d   :  { %v2458_v62 = vsel %vm356_vm0, %v1597_v33, 0  ;;  %v73_v32 = vrot.slane %v71_v55, 5  ;;  %v2756_v55 = vld [vmem:[#allocation41_spill] sm:$0xff] }
  0x4e   :  { %v59_v37 = vrot.slane %v58_v30, 4  ;;  %v69_v29 = vrot.slane %v68_v57, 4 }
  0x4f   :  { %904 = vmatpush1.bf16.msra.mxu0 %v2426_v23  ;;  %957 = vmatpush1.bf16.msra.mxu1 %v2433_v49 }
  0x50   :  { %1599 = vmatprep.subr.msk.bf16.mxu0 %vm356_vm0, %v2435_v56  ;;  %1602 = vmatprep.subr.msk.bf16.mxu1 %vm356_vm0, %v2439_v43  ;;  %v64_v33 = vsel %vm2042_vm3, %v59_v37, %v63_v47  ;;  %v74_v30 = vsel %vm2042_vm3, %v69_v29, %v73_v32  ;;  %v1387_v37 = vlaneseq }
  0x52   :  { %v1388_v29 = vshrl.u32 %v1387_v37, 7 }
  0x53   :  { %906 = vmatpush1.bf16.msra.mxu0 %v2455_v60  ;;  %959 = vmatpush1.bf16.msra.mxu1 %v2458_v62 }
  0x54   :  { %1015 = vmatprep.subr.bf16.mxu0 %v1851_v0  ;;  %1068 = vmatprep.subr.bf16.mxu1 %v1858_v2  ;;  %v1570_v0 = vcombine.low %v64_v33, %v74_v30  ;;  %v2719_v2 = vld [vmem:[#allocation3_spill] sm:$0xff]  ;;  %v1389_v32 = vsub.s32 0, %v1388_v29  ;;  %v1385_v33 = vld [vmem:[%s2624_s3] sm:$0x3]  ;;  %v1393_v30 = vsub.s32 1, %v1388_v29 }
  0x56   :  { %1600 = vmatmul.mubr.msk.bf16.vlgmr.msra.gmra.mrb[0].mxu0 %vm349_vm4, %v1569_v63  ;;  %1603 = vmatmul.mubr.msk.bf16.vlgmr.msra.gmra.mrb[0].mxu1 %vm349_vm4, %v1569_v63 }
  0x57   :  { %1016 = vmatpush1.bf16.msra.mxu0 %v1864_v3  ;;  %1069 = vmatpush1.bf16.msra.mxu1 %v1869_v4  ;;  %v2720_v3 = vld [vmem:[#allocation4_spill] sm:$0xff]  ;;  %v2721_v4 = vld [vmem:[#allocation5_spill] sm:$0xff] }
  0x58   :  { %1017 = vmatprep.subr.bf16.mxu0 %v1875_v5  ;;  %1070 = vmatprep.subr.bf16.mxu1 %v1882_v6  ;;  %v2722_v5 = vld [vmem:[#allocation7_spill] sm:$0xff]  ;;  %v2723_v6 = vld [vmem:[#allocation8_spill] sm:$0xff] }
  0x59   :  { %935 = vmatprep.mubr.bf16.mxu0 %v2702_v59  ;;  %988 = vmatprep.mubr.bf16.mxu1 %v2702_v59 }
  0x5b   :  { %1018 = vmatpush1.bf16.msra.mxu0 %v1887_v7  ;;  %1071 = vmatpush1.bf16.msra.mxu1 %v1893_v8  ;;  %v2724_v7 = vld [vmem:[#allocation9_spill] sm:$0xff]  ;;  %v2725_v8 = vld [vmem:[#allocation10_spill] sm:$0xff] }
  0x5c   :  { %1019 = vmatprep.subr.bf16.mxu0 %v1899_v9  ;;  %1072 = vmatprep.subr.bf16.mxu1 %v1904_v10  ;;  %v2726_v9 = vld [vmem:[#allocation11_spill] sm:$0xff]  ;;  %v2727_v10 = vld [vmem:[#allocation12_spill] sm:$0xff] }
  0x5e   :  { %1601 = vmatmul.mubr.msk.bf16.gmra.mrb[4].mxu0 %vm349_vm4, %v1570_v0  ;;  %1604 = vmatmul.mubr.msk.bf16.gmra.mrb[4].mxu1 %vm349_vm4, %v1570_v0 }
  0x5f   :  { %1020 = vmatpush1.bf16.msra.mxu0 %v1909_v11  ;;  %1073 = vmatpush1.bf16.msra.mxu1 %v1914_v12  ;;  %v2728_v11 = vld [vmem:[#allocation13_spill] sm:$0xff]  ;;  %v2729_v12 = vld [vmem:[#allocation14_spill] sm:$0xff] }
  0x60   :  { %1021 = vmatprep.subr.bf16.mxu0 %v1921_v13  ;;  %1074 = vmatprep.subr.bf16.mxu1 %v1928_v14  ;;  %v2730_v13 = vld [vmem:[#allocation15_spill] sm:$0xff]  ;;  %v2731_v14 = vld [vmem:[#allocation16_spill] sm:$0xff] }
  0x61   :  { %1047 = vmatprep.mubr.bf16.mxu0 %v2702_v59  ;;  %1100 = vmatprep.mubr.bf16.mxu1 %v2702_v59 }
  0x63   :  { %1022 = vmatpush1.bf16.msra.mxu0 %v1933_v15  ;;  %1075 = vmatpush1.bf16.msra.mxu1 %v1940_v16  ;;  %v2732_v15 = vld [vmem:[#allocation17_spill] sm:$0xff]  ;;  %v2733_v16 = vld [vmem:[#allocation18_spill] sm:$0xff] }
  0x64   :  { %1023 = vmatprep.subr.bf16.mxu0 %v1945_v17  ;;  %1076 = vmatprep.subr.bf16.mxu1 %v1952_v18  ;;  %v2734_v17 = vld [vmem:[#allocation19_spill] sm:$0xff]  ;;  %v2735_v18 = vld [vmem:[#allocation20_spill] sm:$0xff] }
  0x67   :  { %1024 = vmatpush1.bf16.msra.mxu0 %v1957_v19  ;;  %1077 = vmatpush1.bf16.msra.mxu1 %v1964_v20  ;;  %v2736_v19 = vld [vmem:[#allocation21_spill] sm:$0xff]  ;;  %v2737_v20 = vld [vmem:[#allocation22_spill] sm:$0xff] }
  0x68   :  { %1025 = vmatprep.subr.bf16.mxu0 %v1969_v21  ;;  %1078 = vmatprep.subr.bf16.mxu1 %v1976_v22  ;;  %v2738_v21 = vld [vmem:[#allocation23_spill] sm:$0xff]  ;;  %v2739_v22 = vld [vmem:[#allocation24_spill] sm:$0xff] }
  0x6b   :  { %1026 = vmatpush1.bf16.msra.mxu0 %v1987_v25  ;;  %1079 = vmatpush1.bf16.msra.mxu1 %v1997_v27  ;;  %v2740_v25 = vld [vmem:[#allocation2_spill] sm:$0xff]  ;;  %v2741_v27 = vld [vmem:[#allocation25_spill] sm:$0xff] }
  0x6c   :  { %1605 = vmatprep.subr.msk.bf16.mxu0 %vm356_vm0, %v1999_v28  ;;  %1608 = vmatprep.subr.msk.bf16.mxu1 %vm356_vm0, %v2003_v31  ;;  %v2742_v28 = vld [vmem:[#allocation26_spill] sm:$0xff]  ;;  %v2743_v31 = vld [vmem:[#allocation27_spill] sm:$0xff] }
  0x6f   :  { %1028 = vmatpush1.bf16.msra.mxu0 %v2023_v40  ;;  %1081 = vmatpush1.bf16.msra.mxu1 %v2026_v41  ;;  %v2745_v40 = vld [vmem:[#allocation29_spill] sm:$0xff]  ;;  %v2746_v41 = vld [vmem:[#allocation6_spill] sm:$0xff] }
  0x70   :  { %1121 = vmatprep.subr.bf16.mxu0 %v2016_v38  ;;  %1174 = vmatprep.subr.bf16.mxu1 %v2031_v42  ;;  %v2744_v38 = vld [vmem:[#allocation28_spill] sm:$0xff]  ;;  %v2747_v42 = vld [vmem:[#allocation31_spill] sm:$0xff] }
  0x72   :  { %1606 = vmatmul.mubr.msk.bf16.vlgmr.msra.gmra.mrb[8].mxu0 %vm349_vm4, %v1569_v63  ;;  %1609 = vmatmul.mubr.msk.bf16.vlgmr.msra.gmra.mrb[8].mxu1 %vm349_vm4, %v1569_v63 }
  0x73   :  { %1122 = vmatpush1.bf16.msra.mxu0 %v2040_v45  ;;  %1175 = vmatpush1.bf16.msra.mxu1 %v2054_v48  ;;  %v2748_v45 = vld [vmem:[#allocation32_spill] sm:$0xff]  ;;  %v2750_v48 = vld [vmem:[#allocation35_spill] sm:$0xff] }
  0x74   :  { %1123 = vmatprep.subr.bf16.mxu0 %v2063_v50  ;;  %1176 = vmatprep.subr.bf16.mxu1 %v2070_v51  ;;  %v2751_v50 = vld [vmem:[#allocation36_spill] sm:$0xff]  ;;  %v2752_v51 = vld [vmem:[#allocation37_spill] sm:$0xff] }
  0x75   :  { %1057 = vmatprep.mubr.bf16.mxu0 %v2702_v59  ;;  %1110 = vmatprep.mubr.bf16.mxu1 %v2702_v59 }
  0x77   :  { %1124 = vmatpush1.bf16.msra.mxu0 %v2079_v52  ;;  %1177 = vmatpush1.bf16.msra.mxu1 %v2086_v53  ;;  %v2753_v52 = vld [vmem:[#allocation38_spill] sm:$0xff]  ;;  %v2754_v53 = vld [vmem:[#allocation39_spill] sm:$0xff] }
  0x78   :  { %1125 = vmatprep.subr.bf16.mxu0 %v2091_v54  ;;  %1178 = vmatprep.subr.bf16.mxu1 %v2719_v2  ;;  %v2755_v54 = vld [vmem:[#allocation40_spill] sm:$0xff] }
  0x7a   :  { %1607 = vmatmul.mubr.msk.bf16.gmra.mrb[12].mxu0 %vm349_vm4, %v1570_v0  ;;  %1610 = vmatmul.mubr.msk.bf16.gmra.mrb[12].mxu1 %vm349_vm4, %v1570_v0 }
  0x7b   :  { %1126 = vmatpush1.bf16.msra.mxu0 %v2720_v3  ;;  %1179 = vmatpush1.bf16.msra.mxu1 %v2721_v4 }
  0x7c   :  { %1127 = vmatprep.subr.bf16.mxu0 %v2722_v5  ;;  %1180 = vmatprep.subr.bf16.mxu1 %v2723_v6  ;;  %v1390_v5 = vrot.slane %v1385_v33, %v1389_v32 }
  0x7d   :  { %1153 = vmatprep.mubr.bf16.mxu0 %v2702_v59  ;;  %1206 = vmatprep.mubr.bf16.mxu1 %v2702_v59 }
  0x7f   :  { %1128 = vmatpush1.bf16.msra.mxu0 %v2724_v7  ;;  %1181 = vmatpush1.bf16.msra.mxu1 %v2725_v8 }
  0x80   :  { %1129 = vmatprep.subr.bf16.mxu0 %v2726_v9  ;;  %1182 = vmatprep.subr.bf16.mxu1 %v2727_v10  ;;  %v1394_v10 = vrot.slane %v1385_v33, %v1393_v30 }
  0x83   :  { %1130 = vmatpush1.bf16.msra.mxu0 %v2728_v11  ;;  %1183 = vmatpush1.bf16.msra.mxu1 %v2729_v12 }
  0x84   :  { %1131 = vmatprep.subr.bf16.mxu0 %v2730_v13  ;;  %1184 = vmatprep.subr.bf16.mxu1 %v2731_v14 }
  0x87   :  { %1132 = vmatpush1.bf16.msra.mxu0 %v2732_v15  ;;  %1185 = vmatpush1.bf16.msra.mxu1 %v2733_v16 }
  0x88   :  { %1611 = vmatprep.subr.msk.bf16.mxu0 %vm356_vm0, %v2734_v17  ;;  %1614 = vmatprep.subr.msk.bf16.mxu1 %vm356_vm0, %v2735_v18 }
  0x8b   :  { %1134 = vmatpush1.bf16.msra.mxu0 %v2736_v19  ;;  %1187 = vmatpush1.bf16.msra.mxu1 %v2737_v20 }
  0x8c   :  { %1239 = vmatprep.subr.bf16.mxu0 %v2738_v21  ;;  %1292 = vmatprep.subr.bf16.mxu1 %v2739_v22 }
  0x8e   :  { %1612 = vmatmul.mubr.msk.bf16.vlgmr.msra.gmra.mrb[8].mxu0 %vm349_vm4, %v2740_v25  ;;  %1615 = vmatmul.mubr.msk.bf16.vlgmr.msra.gmra.mrb[8].mxu1 %vm349_vm4, %v2740_v25 }
  0x8f   :  { %1240 = vmatpush1.bf16.msra.mxu0 %v2741_v27  ;;  %1293 = vmatpush1.bf16.msra.mxu1 %v2742_v28 }
  0x90   :  { %1241 = vmatprep.subr.bf16.mxu0 %v2743_v31  ;;  %1294 = vmatprep.subr.bf16.mxu1 %v2744_v38 }
  0x91   :  { %1163 = vmatprep.mubr.bf16.mxu0 %v2702_v59  ;;  %1216 = vmatprep.mubr.bf16.mxu1 %v2702_v59 }
  0x93   :  { %1242 = vmatpush1.bf16.msra.mxu0 %v2286_v61  ;;  %1295 = vmatpush1.bf16.msra.mxu1 %v2291_v26  ;;  %v2757_v26 = vld [vmem:[#allocation42_spill] sm:$0xff]  ;;  %v2758_v61 = vld [vmem:[#allocation43_spill] sm:$0xff] }
  0x94   :  { %1243 = vmatprep.subr.bf16.mxu0 %v2308_v35  ;;  %1296 = vmatprep.subr.bf16.mxu1 %v2745_v40  ;;  %v2759_v35 = vld [vmem:[#allocation30_spill] sm:$0xff] }
  0x96   :  { %1613 = vmatmul.mubr.msk.bf16.gmra.mrb[12].mxu0 %vm349_vm4, %v2746_v41  ;;  %1616 = vmatmul.mubr.msk.bf16.gmra.mrb[12].mxu1 %vm349_vm4, %v2746_v41 }
  0x97   :  { %1244 = vmatpush1.bf16.msra.mxu0 %v2747_v42  ;;  %1297 = vmatpush1.bf16.msra.mxu1 %v2748_v45 }
  0x98   :  { %1245 = vmatprep.subr.bf16.mxu0 %v2749_v46  ;;  %1298 = vmatprep.subr.bf16.mxu1 %v2750_v48 }
  0x99   :  { %1271 = vmatprep.mubr.bf16.mxu0 %v2702_v59  ;;  %1324 = vmatprep.mubr.bf16.mxu1 %v2702_v59 }
  0x9b   :  { %1246 = vmatpush1.bf16.msra.mxu0 %v2751_v50  ;;  %1299 = vmatpush1.bf16.msra.mxu1 %v2752_v51 }
  0x9c   :  { %1247 = vmatprep.subr.bf16.mxu0 %v2753_v52  ;;  %1300 = vmatprep.subr.bf16.mxu1 %v2754_v53 }
  0x9f   :  { %1248 = vmatpush1.bf16.msra.mxu0 %v2755_v54  ;;  %1301 = vmatpush1.bf16.msra.mxu1 %v2756_v55 }
  0xa0   :  { %1249 = vmatprep.subr.bf16.mxu0 %v2757_v26  ;;  %1302 = vmatprep.subr.bf16.mxu1 %v2758_v61 }
  0xa3   :  { %1250 = vmatpush1.bf16.msra.mxu0 %v2426_v23  ;;  %1303 = vmatpush1.bf16.msra.mxu1 %v2433_v49  ;;  %v2760_v49 = vld [vmem:[#allocation33_spill] sm:$0xff] }
  0xa4   :  { %1619 = vmatprep.subr.msk.bf16.mxu0 %vm356_vm0, %v2435_v56  ;;  %1622 = vmatprep.subr.msk.bf16.mxu1 %vm356_vm0, %v2439_v43 }
  0xa7   :  { %1252 = vmatpush1.bf16.msra.mxu0 %v2455_v60  ;;  %1305 = vmatpush1.bf16.msra.mxu1 %v2458_v62 }
  0xaa   :  { %1620 = vmatmul.mubr.msk.bf16.vlgmr.msra.gmra.mrb[8].mxu0 %vm349_vm4, %v2759_v35  ;;  %1623 = vmatmul.mubr.msk.bf16.vlgmr.msra.gmra.mrb[8].mxu1 %vm349_vm4, %v2759_v35 }
  0xab   :  { %1281 = vmatprep.mubr.bf16.mxu0 %v2702_v59  ;;  %1334 = vmatprep.mubr.bf16.mxu1 %v2702_v59 }
  0xb2   :  { %1621 = vmatmul.mubr.msk.bf16.gmra.mrb[12].mxu0 %vm349_vm4, %v2760_v49  ;;  %1624 = vmatmul.mubr.msk.bf16.gmra.mrb[12].mxu1 %vm349_vm4, %v2760_v49 }
 0x129   :  { %v927_v47 = vpop.f32.mrb[0].mxu0  ;;  %v980_v23 = vpop.f32.mrb[0].mxu1 }
 0x12a   :  { %v929_v57 = vpop.f32.mrb[1].mxu0  ;;  %v982_v1 = vpop.f32.mrb[1].mxu1 }
 0x12b   :  { %v931_v36 = vpop.f32.mrb[2].mxu0  ;;  %v984_v56 = vpop.f32.mrb[2].mxu1 }
 0x12c   :  { %v933_v24 = vpop.f32.mrb[3].mxu0  ;;  %v986_v43 = vpop.f32.mrb[3].mxu1 }
 0x131   :  { %v937_v44 = vpop.f32.mrb[4].mxu0  ;;  %v990_v58 = vpop.f32.mrb[4].mxu1 }
 0x132   :  { %v939_v39 = vpop.f32.mrb[5].mxu0  ;;  %v992_v34 = vpop.f32.mrb[5].mxu1 }
 0x133   :  { %v2594_v60 = vpop.f32.mrb[6].mxu0  ;;  %v2596_v59 = vpop.f32.mrb[6].mxu1 }
 0x134   :  { %v2598_v62 = vpop.f32.mrb[7].mxu0  ;;  %v2600_v63 = vpop.f32.mrb[7].mxu1 }
 0x17d   :  { %v1273_v0 = vpop.f32.mrb[8].mxu0  ;;  %v1326_v2 = vpop.f32.mrb[8].mxu1 }
 0x17e   :  { %v1361_v3 = vmax.f32 %v927_v47, %v1273_v0  ;;  %v1363_v4 = vmax.f32 %v980_v23, %v1326_v2  ;;  %v1275_v6 = vpop.f32.mrb[9].mxu0  ;;  %v1328_v7 = vpop.f32.mrb[9].mxu1 }
 0x17f   :  { %v1362_v8 = vmax.f32 %v929_v57, %v1275_v6  ;;  %v1364_v9 = vmax.f32 %v982_v1, %v1328_v7  ;;  %v1277_v11 = vpop.f32.mrb[10].mxu0  ;;  %v1330_v12 = vpop.f32.mrb[10].mxu1 }
 0x180   :  { %v1377_v13 = vmax.f32 %v1361_v3, %v1363_v4  ;;  %v1365_v14 = vmax.f32 %v931_v36, %v1277_v11  ;;  %v1367_v15 = vmax.f32 %v984_v56, %v1330_v12  ;;  %v1279_v16 = vpop.f32.mrb[11].mxu0  ;;  %v1332_v17 = vpop.f32.mrb[11].mxu1 }
 0x181   :  { %v1378_v18 = vmax.f32 %v1362_v8, %v1364_v9  ;;  %v1366_v19 = vmax.f32 %v933_v24, %v1279_v16  ;;  %v1368_v20 = vmax.f32 %v986_v43, %v1332_v17 }
 0x182   :  { %v1397_v21 = vadd.f32 %v1390_v5, %v1377_v13  ;;  %v1379_v22 = vmax.f32 %v1365_v14, %v1367_v15 }
 0x183   :  { %v1398_v25 = vadd.f32 %v1394_v10, %v1378_v18  ;;  %v1380_v27 = vmax.f32 %v1366_v19, %v1368_v20 }
 0x184   :  { %v1405_v28 = vmax.f32 %v1397_v21, 0.0  ;;  %v1399_v31 = vadd.f32 %v1390_v5, %v1379_v22 }
 0x185   :  { %v1406_v38 = vmax.f32 %v1398_v25, 0.0  ;;  %v1400_v40 = vadd.f32 %v1394_v10, %v1380_v27  ;;  %v1283_v41 = vpop.f32.mrb[12].mxu0  ;;  %v1336_v42 = vpop.f32.mrb[12].mxu1 }
 0x186   :  { %v1407_v45 = vmax.f32 %v1399_v31, 0.0  ;;  %v1369_v46 = vmax.f32 %v937_v44, %v1283_v41  ;;  %v1371_v48 = vmax.f32 %v990_v58, %v1336_v42  ;;  %v1285_v50 = vpop.f32.mrb[13].mxu0  ;;  %v1338_v51 = vpop.f32.mrb[13].mxu1 }
 0x187   :  { %v1629_v52 = vpack.c.bf16 %v1406_v38, %v1405_v28  ;;  %v1408_v53 = vmax.f32 %v1400_v40, 0.0  ;;  %v1370_v54 = vmax.f32 %v939_v39, %v1285_v50  ;;  %v1372_v55 = vmax.f32 %v992_v34, %v1338_v51  ;;  %v1287_v26 = vpop.f32.mrb[14].mxu0  ;;  %v1340_v61 = vpop.f32.mrb[14].mxu1 }
 0x188   :  { %v1381_v35 = vmax.f32 %v1369_v46, %v1371_v48  ;;  %v1373_v49 = vmax.f32 %v2594_v60, %v1287_v26  ;;  %v1375_v47 = vmax.f32 %v2596_v59, %v1340_v61  ;;  %v1289_v23 = vpop.f32.mrb[15].mxu0  ;;  %v1342_v57 = vpop.f32.mrb[15].mxu1 }
 0x189   :  { %1437 = vst [vmem:[%s2625_s4] sm:$0xff] %v1629_v52  ;;  %v1630_v1 = vpack.c.bf16 %v1408_v53, %v1407_v45  ;;  %v1382_v36 = vmax.f32 %v1370_v54, %v1372_v55  ;;  %v1374_v56 = vmax.f32 %v2598_v62, %v1289_v23  ;;  %v1376_v24 = vmax.f32 %v2600_v63, %v1342_v57 }
 0x18a   :  { %v1401_v43 = vadd.f32 %v1390_v5, %v1381_v35  ;;  %v1383_v44 = vmax.f32 %v1373_v49, %v1375_v47 }
 0x18b   :  { %1438 = vst [vmem:[%s2625_s4 + $0x8] sm:$0xff] %v1630_v1  ;;  %v1402_v58 = vadd.f32 %v1394_v10, %v1382_v36  ;;  %v1384_v39 = vmax.f32 %v1374_v56, %v1376_v24 }
 0x18c   :  { %v1409_v34 = vmax.f32 %v1401_v43, 0.0  ;;  %v1403_v60 = vadd.f32 %v1390_v5, %v1383_v44 }
 0x18d   :  { %v1410_v59 = vmax.f32 %v1402_v58, 0.0  ;;  %v1404_v37 = vadd.f32 %v1394_v10, %v1384_v39 }
 0x18e   :  { %v1411_v29 = vmax.f32 %v1403_v60, 0.0 }
 0x18f   :  { %v1631_v32 = vpack.c.bf16 %v1410_v59, %v1409_v34  ;;  %v1412_v33 = vmax.f32 %v1404_v37, 0.0 }
 0x191   :  { %1439 = vst [vmem:[%s2625_s4 + $0x10] sm:$0xff] %v1631_v32  ;;  %v1632_v62 = vpack.c.bf16 %v1412_v33, %v1411_v29 }
 0x193   :  { %1440 = vst [vmem:[%s2625_s4 + $0x18] sm:$0xff] %v1632_v62 }

// kernel: simple_cnn_forward.5
= control target key start
LH: loop header
LB: loop body
LE: loop exit
PB: predicated region body
PF: predicated region fallthrough
CT: control target
= control target key end

     0   :  { %v293_v28 = vlaneseq  ;;  %v2128_v36 = vmov 1966171168   ;;  %s2618_s0 = inlined_call_operand.vmem [shape: bf16[2,2048], index: 0, kind: input, shape index: {}]   ;;  %s2619_s1 = inlined_call_operand.vmem [shape: bf16[2048,128], index: 1, kind: input, shape index: {}]   ;;  %s2620_s2 = inlined_call_operand.vmem [shape: f32[1,128], index: 2, kind: input, shape index: {}]   ;;  %s2621_s3 = inlined_call_operand.vmem [shape: bf16[128,128], index: 3, kind: input, shape index: {}]   ;;  %s2622_s4 = inlined_call_operand.vmem [shape: f32[1,128], index: 4, kind: input, shape index: {}]   ;;  %s2623_s5 = inlined_call_operand.hbm [shape: f32[2,128], index: 5, kind: output, shape index: {}]  }
   0x1   :  { %v1966_v0 = vld [vmem:[%s2619_s1 + $0x40] sm:$0xff]   ;;  %v1970_v4 = vld [vmem:[%s2619_s1 + $0x48] sm:$0xff]   ;;  %v1974_v8 = vld [vmem:[%s2619_s1 + $0x50] sm:$0xff]   ;;  %v291_v37 = vunpack.c.l.s4 %v2128_v36 }
   0x2   :  { %v1967_v1 = vld [vmem:[%s2619_s1 + $0xc0] sm:$0xff]   ;;  %1757 = vmatprep.subr.bf16.mxu0 %v1966_v0  ;;  %v1971_v5 = vld [vmem:[%s2619_s1 + $0xc8] sm:$0xff]   ;;  %v1975_v9 = vld [vmem:[%s2619_s1 + $0xd0] sm:$0xff]   ;;  %v294_v33 = vshrl.u32 %v293_v28, 7 }
   0x3   :  { %v1968_v2 = vld [vmem:[%s2619_s1] sm:$0xff]   ;;  %1779 = vmatprep.subr.bf16.mxu1 %v1967_v1  ;;  %v1972_v6 = vld [vmem:[%s2619_s1 + $0x8] sm:$0xff]   ;;  %v1976_v10 = vld [vmem:[%s2619_s1 + $0x10] sm:$0xff]   ;;  %v292_v40 = vunpack.c.0.s8 %v291_v37 }
   0x4   :  { %v1969_v3 = vld [vmem:[%s2619_s1 + $0x80] sm:$0xff]   ;;  %1758 = vmatpush3.bf16.msra.mxu0 %v1968_v2  ;;  %v1973_v7 = vld [vmem:[%s2619_s1 + $0x88] sm:$0xff]   ;;  %v1977_v11 = vld [vmem:[%s2619_s1 + $0x90] sm:$0xff]  }
   0x5   :  { %1780 = vmatpush3.bf16.msra.mxu1 %v1969_v3  ;;  %1759 = vmatprep.subr.bf16.mxu0 %v1970_v4  ;;  %v1978_v12 = vld [vmem:[%s2619_s1 + $0x58] sm:$0xff]   ;;  %v1982_v16 = vld [vmem:[%s2619_s1 + $0x60] sm:$0xff]   ;;  %v1986_v20 = vld [vmem:[%s2619_s1 + $0x68] sm:$0xff]   ;;  %v2267_v41 = vsub.s32 %v292_v40, %v294_v33 }
   0x6   :  { %1781 = vmatprep.subr.bf16.mxu1 %v1971_v5  ;;  %v1979_v13 = vld [vmem:[%s2619_s1 + $0xd8] sm:$0xff]   ;;  %v1983_v17 = vld [vmem:[%s2619_s1 + $0xe0] sm:$0xff]   ;;  %v1987_v21 = vld [vmem:[%s2619_s1 + $0xe8] sm:$0xff]  }
   0x7   :  { %v1980_v14 = vld [vmem:[%s2619_s1 + $0x18] sm:$0xff]   ;;  %v1984_v18 = vld [vmem:[%s2619_s1 + $0x20] sm:$0xff]   ;;  %v1988_v22 = vld [vmem:[%s2619_s1 + $0x28] sm:$0xff]  }
   0x8   :  { %1760 = vmatpush3.bf16.msra.mxu0 %v1972_v6  ;;  %v1981_v15 = vld [vmem:[%s2619_s1 + $0x98] sm:$0xff]   ;;  %v1985_v19 = vld [vmem:[%s2619_s1 + $0xa0] sm:$0xff]   ;;  %v1989_v23 = vld [vmem:[%s2619_s1 + $0xa8] sm:$0xff]  }
   0x9   :  { %1782 = vmatpush3.bf16.msra.mxu1 %v1973_v7  ;;  %1761 = vmatprep.subr.bf16.mxu0 %v1974_v8  ;;  %v1990_v24 = vld [vmem:[%s2619_s1 + $0x70] sm:$0xff]   ;;  %v1994_v29 = vld [vmem:[%s2619_s1 + $0x78] sm:$0xff]   ;;  %v22_v34 = vld [vmem:[%s2618_s0] sm:$0xff] }
   0xa   :  { %1783 = vmatprep.subr.bf16.mxu1 %v1975_v9  ;;  %v1991_v25 = vld [vmem:[%s2619_s1 + $0xf0] sm:$0xff]   ;;  %v1995_v30 = vld [vmem:[%s2619_s1 + $0xf8] sm:$0xff]   ;;  %v1999_v35 = vld [vmem:[%s2619_s1 + $0x140] sm:$0xff]   ;;  %v289_v39 = vcombine.high %v22_v34, %v22_v34  ;;  %v296_v42 = vrot.slane %v22_v34, %v2267_v41 }
   0xb   :  { %v1992_v26 = vld [vmem:[%s2619_s1 + $0x30] sm:$0xff]   ;;  %v1996_v31 = vld [vmem:[%s2619_s1 + $0x38] sm:$0xff]   ;;  %v2000_v38 = vld [vmem:[%s2619_s1 + $0x1c0] sm:$0xff]  }
   0xc   :  { %1762 = vmatpush3.bf16.msra.mxu0 %v1976_v10  ;;  %v1993_v27 = vld [vmem:[%s2619_s1 + $0xb0] sm:$0xff]   ;;  %v1997_v32 = vld [vmem:[%s2619_s1 + $0xb8] sm:$0xff]   ;;  %v2271_v43 = vrot.slane %v289_v39, %v2267_v41  ;;  %v304_v44 = vcombine.high %v296_v42, %v296_v42  ;;  %v312_v45 = vrot.slane %v296_v42, %v2267_v41  ;;  %v2001_v47 = vld [vmem:[%s2619_s1 + $0x100] sm:$0xff]  }
   0xd   :  { %1784 = vmatpush3.bf16.msra.mxu1 %v1977_v11  ;;  %1763 = vmatprep.subr.bf16.mxu0 %v1978_v12  ;;  %v2002_v49 = vld [vmem:[%s2619_s1 + $0x180] sm:$0xff]   ;;  %v2003_v52 = vld [vmem:[%s2619_s1 + $0x148] sm:$0xff]   ;;  %v2007_v58 = vld [vmem:[%s2619_s1 + $0x150] sm:$0xff]  }
   0xe   :  { %1785 = vmatprep.subr.bf16.mxu1 %v1979_v13  ;;  %v305_v46 = vcombine.high %v2271_v43, %v2271_v43  ;;  %v326_v48 = vrot.slane %v304_v44, %v2267_v41  ;;  %v334_v51 = vcombine.high %v312_v45, %v312_v45  ;;  %v2004_v54 = vld [vmem:[%s2619_s1 + $0x1c8] sm:$0xff]   ;;  %v2008_v59 = vld [vmem:[%s2619_s1 + $0x1d0] sm:$0xff]   ;;  %v2011_v62 = vld [vmem:[%s2619_s1 + $0x158] sm:$0xff]  }
   0xf   :  { %v2005_v55 = vld [vmem:[%s2619_s1 + $0x108] sm:$0xff]   ;;  %v2009_v60 = vld [vmem:[%s2619_s1 + $0x110] sm:$0xff]   ;;  %v2012_v63 = vld [vmem:[%s2619_s1 + $0x1d8] sm:$0xff]  }
  0x10   :  { %1764 = vmatpush3.bf16.msra.mxu0 %v1980_v14  ;;  %v333_v50 = vrot.slane %v305_v46, %v2267_v41  ;;  %1203 = vmatprep.mubr.bf16.mxu0 %v326_v48  ;;  %v336_v53 = vcombine.high %v326_v48, %v326_v48  ;;  %v2006_v57 = vld [vmem:[%s2619_s1 + $0x188] sm:$0xff]   ;;  %v2010_v61 = vld [vmem:[%s2619_s1 + $0x190] sm:$0xff]   ;;  %v2013_v0 = vld [vmem:[%s2619_s1 + $0x118] sm:$0xff]  }
  0x11   :  { %1786 = vmatpush3.bf16.msra.mxu1 %v1981_v15  ;;  %1765 = vmatprep.subr.bf16.mxu0 %v1982_v16  ;;  %v2014_v1 = vld [vmem:[%s2619_s1 + $0x198] sm:$0xff]   ;;  %v2015_v2 = vld [vmem:[%s2619_s1 + $0x160] sm:$0xff]   ;;  %v2019_v6 = vld [vmem:[%s2619_s1 + $0x168] sm:$0xff]  }
  0x12   :  { %1787 = vmatprep.subr.bf16.mxu1 %v1983_v17  ;;  %v337_v56 = vcombine.high %v333_v50, %v333_v50  ;;  %1243 = vmatprep.mubr.bf16.mxu1 %v336_v53  ;;  %v2016_v3 = vld [vmem:[%s2619_s1 + $0x1e0] sm:$0xff]   ;;  %v2020_v7 = vld [vmem:[%s2619_s1 + $0x1e8] sm:$0xff]   ;;  %v2023_v10 = vld [vmem:[%s2619_s1 + $0x170] sm:$0xff]  }
  0x13   :  { %v2017_v4 = vld [vmem:[%s2619_s1 + $0x120] sm:$0xff]   ;;  %v2021_v8 = vld [vmem:[%s2619_s1 + $0x128] sm:$0xff]   ;;  %v2024_v11 = vld [vmem:[%s2619_s1 + $0x1f0] sm:$0xff]  }
  0x14   :  { %1766 = vmatpush3.bf16.msra.mxu0 %v1984_v18  ;;  %v2018_v5 = vld [vmem:[%s2619_s1 + $0x1a0] sm:$0xff]   ;;  %v2022_v9 = vld [vmem:[%s2619_s1 + $0x1a8] sm:$0xff]   ;;  %v2025_v12 = vld [vmem:[%s2619_s1 + $0x130] sm:$0xff]   ;;  %v319_v18 = vrot.slane %v2271_v43, %v2267_v41 }
  0x15   :  { %1788 = vmatpush3.bf16.msra.mxu1 %v1985_v19  ;;  %1767 = vmatprep.subr.bf16.mxu0 %v1986_v20  ;;  %v2026_v13 = vld [vmem:[%s2619_s1 + $0x1b0] sm:$0xff]   ;;  %v2027_v14 = vld [vmem:[%s2619_s1 + $0x178] sm:$0xff]   ;;  %v2031_v19 = vld [vmem:[%s2619_s1 + $0x240] sm:$0xff]  }
  0x16   :  { %1789 = vmatprep.subr.bf16.mxu1 %v1987_v21  ;;  %v2028_v15 = vld [vmem:[%s2619_s1 + $0x1f8] sm:$0xff]   ;;  %v2032_v20 = vld [vmem:[%s2619_s1 + $0x2c0] sm:$0xff]   ;;  %v2039_v28 = vld [vmem:[%s2619_s1 + $0x250] sm:$0xff]  }
  0x17   :  { %v2029_v16 = vld [vmem:[%s2619_s1 + $0x138] sm:$0xff]   ;;  %v2033_v21 = vld [vmem:[%s2619_s1 + $0x200] sm:$0xff]   ;;  %v2051_v40 = vld [vmem:[%s2619_s1 + $0x268] sm:$0xff]  }
  0x18   :  { %1768 = vmatpush3.bf16.msra.mxu0 %v1988_v22  ;;  %v2030_v17 = vld [vmem:[%s2619_s1 + $0x1b8] sm:$0xff]   ;;  %v2034_v22 = vld [vmem:[%s2619_s1 + $0x280] sm:$0xff]   ;;  %v2052_v42 = vld [vmem:[%s2619_s1 + $0x2e8] sm:$0xff]  }
  0x19   :  { %1790 = vmatpush3.bf16.msra.mxu1 %v1989_v23  ;;  %1769 = vmatprep.subr.bf16.mxu0 %v1990_v24  ;;  %v335_v23 = vcombine.high %v319_v18, %v319_v18  ;;  %v2035_v24 = vld [vmem:[%s2619_s1 + $0x248] sm:$0xff]   ;;  %v2044_v33 = vld [vmem:[%s2619_s1 + $0x2d8] sm:$0xff]   ;;  %v2047_v36 = vld [vmem:[%s2619_s1 + $0x260] sm:$0xff]  }
  0x1a   :  { %1791 = vmatprep.subr.bf16.mxu1 %v1991_v25  ;;  %v2036_v25 = vld [vmem:[%s2619_s1 + $0x2c8] sm:$0xff]   ;;  %v2045_v34 = vld [vmem:[%s2619_s1 + $0x218] sm:$0xff]   ;;  %v2048_v37 = vld [vmem:[%s2619_s1 + $0x2e0] sm:$0xff]  }
  0x1b   :  { %v2050_v39 = vld [vmem:[%s2619_s1 + $0x2a0] sm:$0xff]   ;;  %v2053_v43 = vld [vmem:[%s2619_s1 + $0x228] sm:$0xff]  }
  0x1c   :  { %1770 = vmatpush3.bf16.msra.mxu0 %v1992_v26  ;;  %v2037_v26 = vld [vmem:[%s2619_s1 + $0x208] sm:$0xff]  }
  0x1d   :  { %1792 = vmatpush3.bf16.msra.mxu1 %v1993_v27  ;;  %1771 = vmatprep.subr.bf16.mxu0 %v1994_v29  ;;  %v2038_v27 = vld [vmem:[%s2619_s1 + $0x288] sm:$0xff]   ;;  %v2040_v29 = vld [vmem:[%s2619_s1 + $0x2d0] sm:$0xff]  }
  0x1e   :  { %1793 = vmatprep.subr.bf16.mxu1 %v1995_v30  ;;  %v2041_v30 = vld [vmem:[%s2619_s1 + $0x210] sm:$0xff]   ;;  %v2054_v44 = vld [vmem:[%s2619_s1 + $0x2a8] sm:$0xff]  }
  0x1f   :  { %v23_v46 = vld [vmem:[%s2618_s0 + $0x8] sm:$0xff] }
  0x20   :  { %1772 = vmatpush3.bf16.msra.mxu0 %v1996_v31  ;;  %v2042_v31 = vld [vmem:[%s2619_s1 + $0x290] sm:$0xff]   ;;  %v345_v48 = vrot.slane %v23_v46, %v2267_v41 }
  0x21   :  { %1794 = vmatpush3.bf16.msra.mxu1 %v1997_v32  ;;  %1801 = vmatprep.subr.bf16.mxu0 %v1999_v35  ;;  %v2043_v32 = vld [vmem:[%s2619_s1 + $0x258] sm:$0xff]  }
  0x22   :  { %1823 = vmatprep.subr.bf16.mxu1 %v2000_v38  ;;  %v2046_v35 = vld [vmem:[%s2619_s1 + $0x298] sm:$0xff]   ;;  %v2049_v38 = vld [vmem:[%s2619_s1 + $0x220] sm:$0xff]  }
  0x23   :  { %1204 = vmatmul.mubr.bf16.vlgmr.msra.gmra.mrb[0].mxu0 %v312_v45  ;;  %v2055_v45 = vld [vmem:[%s2619_s1 + $0x270] sm:$0xff]  }
  0x24   :  { %1802 = vmatpush3.bf16.msra.mxu0 %v2001_v47  ;;  %1244 = vmatmul.mubr.bf16.vlgmr.msra.gmra.mrb[0].mxu1 %v334_v51  ;;  %v2056_v47 = vld [vmem:[%s2619_s1 + $0x2f0] sm:$0xff]  }
  0x25   :  { %1803 = vmatprep.subr.bf16.mxu0 %v2003_v52  ;;  %1824 = vmatpush3.bf16.msra.mxu1 %v2002_v49  ;;  %v338_v49 = vcombine.high %v23_v46, %v23_v46  ;;  %v2058_v51 = vld [vmem:[%s2619_s1 + $0x2b0] sm:$0xff]   ;;  %v353_v52 = vcombine.high %v345_v48, %v345_v48 }
  0x26   :  { %1283 = vmatprep.mubr.bf16.mxu0 %v333_v50  ;;  %1825 = vmatprep.subr.bf16.mxu1 %v2004_v54  ;;  %v2057_v50 = vld [vmem:[%s2619_s1 + $0x230] sm:$0xff]   ;;  %v2059_v54 = vld [vmem:[%s2619_s1 + $0x278] sm:$0xff]  }
  0x27   :  { %1323 = vmatprep.mubr.bf16.mxu1 %v337_v56  ;;  %v2459_v53 = vrot.slane %v338_v49, %v2267_v41  ;;  %v375_v56 = vrot.slane %v353_v52, %v2267_v41 }
  0x28   :  { %1804 = vmatpush3.bf16.msra.mxu0 %v2005_v55  ;;  %v2060_v55 = vld [vmem:[%s2619_s1 + $0x2f8] sm:$0xff]  }
  0x29   :  { %1805 = vmatprep.subr.bf16.mxu0 %v2007_v58  ;;  %1826 = vmatpush3.bf16.msra.mxu1 %v2006_v57  ;;  %v354_v57 = vcombine.high %v2459_v53, %v2459_v53  ;;  %v2061_v58 = vld [vmem:[%s2619_s1 + $0x238] sm:$0xff]  }
  0x2a   :  { %1827 = vmatprep.subr.bf16.mxu1 %v2008_v59  ;;  %v2062_v59 = vld [vmem:[%s2619_s1 + $0x2b8] sm:$0xff]  }
  0x2c   :  { %1806 = vmatpush3.bf16.msra.mxu0 %v2009_v60  ;;  %v385_v60 = vcombine.high %v375_v56, %v375_v56 }
  0x2d   :  { %1807 = vmatprep.subr.bf16.mxu0 %v2011_v62  ;;  %1828 = vmatpush3.bf16.msra.mxu1 %v2010_v61  ;;  %v361_v61 = vrot.slane %v345_v48, %v2267_v41  ;;  %v2063_v62 = vld [vmem:[%s2619_s1 + $0x340] sm:$0xff]  }
  0x2e   :  { %1829 = vmatprep.subr.bf16.mxu1 %v2012_v63  ;;  %v2064_v63 = vld [vmem:[%s2619_s1 + $0x3c0] sm:$0xff]  }
  0x30   :  { %1808 = vmatpush3.bf16.msra.mxu0 %v2013_v0  ;;  %v382_v0 = vrot.slane %v354_v57, %v2267_v41 }
  0x31   :  { %1809 = vmatprep.subr.bf16.mxu0 %v2015_v2  ;;  %1830 = vmatpush3.bf16.msra.mxu1 %v2014_v1  ;;  %v2065_v1 = vld [vmem:[%s2619_s1 + $0x300] sm:$0xff]  }
  0x32   :  { %1831 = vmatprep.subr.bf16.mxu1 %v2016_v3  ;;  %v2066_v2 = vld [vmem:[%s2619_s1 + $0x380] sm:$0xff]   ;;  %v383_v3 = vcombine.high %v361_v61, %v361_v61 }
  0x34   :  { %1810 = vmatpush3.bf16.msra.mxu0 %v2017_v4  ;;  %v2067_v4 = vld [vmem:[%s2619_s1 + $0x348] sm:$0xff]  }
  0x35   :  { %1811 = vmatprep.subr.bf16.mxu0 %v2019_v6  ;;  %1832 = vmatpush3.bf16.msra.mxu1 %v2018_v5  ;;  %v2068_v5 = vld [vmem:[%s2619_s1 + $0x3c8] sm:$0xff]   ;;  %v386_v6 = vcombine.high %v382_v0, %v382_v0 }
  0x36   :  { %1833 = vmatprep.subr.bf16.mxu1 %v2020_v7  ;;  %v2069_v7 = vld [vmem:[%s2619_s1 + $0x308] sm:$0xff]  }
  0x38   :  { %1812 = vmatpush3.bf16.msra.mxu0 %v2021_v8  ;;  %v2070_v8 = vld [vmem:[%s2619_s1 + $0x388] sm:$0xff]  }
  0x39   :  { %1813 = vmatprep.subr.bf16.mxu0 %v2023_v10  ;;  %1834 = vmatpush3.bf16.msra.mxu1 %v2022_v9  ;;  %v2071_v9 = vld [vmem:[%s2619_s1 + $0x350] sm:$0xff]  }
  0x3a   :  { %1835 = vmatprep.subr.bf16.mxu1 %v2024_v11  ;;  %v2072_v10 = vld [vmem:[%s2619_s1 + $0x3d0] sm:$0xff]  }
  0x3b   :  { %v2073_v11 = vld [vmem:[%s2619_s1 + $0x310] sm:$0xff]  }
  0x3c   :  { %1814 = vmatpush3.bf16.msra.mxu0 %v2025_v12  ;;  %v2074_v12 = vld [vmem:[%s2619_s1 + $0x390] sm:$0xff]  }
  0x3d   :  { %1815 = vmatprep.subr.bf16.mxu0 %v2027_v14  ;;  %1836 = vmatpush3.bf16.msra.mxu1 %v2026_v13  ;;  %v2075_v13 = vld [vmem:[%s2619_s1 + $0x358] sm:$0xff]  }
  0x3e   :  { %1837 = vmatprep.subr.bf16.mxu1 %v2028_v15  ;;  %v2076_v14 = vld [vmem:[%s2619_s1 + $0x3d8] sm:$0xff]  }
  0x3f   :  { %v2077_v15 = vld [vmem:[%s2619_s1 + $0x318] sm:$0xff]  }
  0x40   :  { %1816 = vmatpush3.bf16.msra.mxu0 %v2029_v16  ;;  %v2078_v16 = vld [vmem:[%s2619_s1 + $0x398] sm:$0xff]  }
  0x41   :  { %1845 = vmatprep.subr.bf16.mxu0 %v2031_v19  ;;  %1838 = vmatpush3.bf16.msra.mxu1 %v2030_v17  ;;  %v2079_v17 = vld [vmem:[%s2619_s1 + $0x360] sm:$0xff]  }
  0x42   :  { %1867 = vmatprep.subr.bf16.mxu1 %v2032_v20  ;;  %v2081_v19 = vld [vmem:[%s2619_s1 + $0x320] sm:$0xff]  }
  0x43   :  { %1284 = vmatmul.mubr.bf16.vlgmr.msra.gmra.mrb[4].mxu0 %v319_v18  ;;  %v2080_v18 = vld [vmem:[%s2619_s1 + $0x3e0] sm:$0xff]  }
  0x44   :  { %1846 = vmatpush3.bf16.msra.mxu0 %v2033_v21  ;;  %1324 = vmatmul.mubr.bf16.vlgmr.msra.gmra.mrb[4].mxu1 %v335_v23  ;;  %v2082_v20 = vld [vmem:[%s2619_s1 + $0x3a0] sm:$0xff]   ;;  %v2083_v21 = vld [vmem:[%s2619_s1 + $0x368] sm:$0xff]  }
  0x45   :  { %1847 = vmatprep.subr.bf16.mxu0 %v2035_v24  ;;  %1868 = vmatpush3.bf16.msra.mxu1 %v2034_v22  ;;  %v2084_v22 = vld [vmem:[%s2619_s1 + $0x3e8] sm:$0xff]  }
  0x46   :  { %1869 = vmatprep.subr.bf16.mxu1 %v2036_v25  ;;  %1363 = vmatprep.mubr.bf16.mxu0 %v375_v56  ;;  %v2085_v23 = vld [vmem:[%s2619_s1 + $0x328] sm:$0xff]   ;;  %v2087_v25 = vld [vmem:[%s2619_s1 + $0x370] sm:$0xff]  }
  0x47   :  { %1403 = vmatprep.mubr.bf16.mxu1 %v385_v60  ;;  %v2086_v24 = vld [vmem:[%s2619_s1 + $0x3a8] sm:$0xff]  }
  0x48   :  { %1848 = vmatpush3.bf16.msra.mxu0 %v2037_v26  ;;  %v2088_v26 = vld [vmem:[%s2619_s1 + $0x3f0] sm:$0xff]  }
  0x49   :  { %1849 = vmatprep.subr.bf16.mxu0 %v2039_v28  ;;  %1870 = vmatpush3.bf16.msra.mxu1 %v2038_v27  ;;  %v2089_v27 = vld [vmem:[%s2619_s1 + $0x330] sm:$0xff]  }
  0x4a   :  { %1871 = vmatprep.subr.bf16.mxu1 %v2040_v29  ;;  %v2090_v28 = vld [vmem:[%s2619_s1 + $0x3b0] sm:$0xff]   ;;  %v2091_v29 = vld [vmem:[%s2619_s1 + $0x378] sm:$0xff]  }
  0x4c   :  { %1850 = vmatpush3.bf16.msra.mxu0 %v2041_v30  ;;  %v2092_v30 = vld [vmem:[%s2619_s1 + $0x3f8] sm:$0xff]  }
  0x4d   :  { %1851 = vmatprep.subr.bf16.mxu0 %v2043_v32  ;;  %1872 = vmatpush3.bf16.msra.mxu1 %v2042_v31 }
  0x4e   :  { %1873 = vmatprep.subr.bf16.mxu1 %v2044_v33 }
  0x50   :  { %1852 = vmatpush3.bf16.msra.mxu0 %v2045_v34 }
  0x51   :  { %1853 = vmatprep.subr.bf16.mxu0 %v2047_v36  ;;  %1874 = vmatpush3.bf16.msra.mxu1 %v2046_v35 }
  0x52   :  { %1875 = vmatprep.subr.bf16.mxu1 %v2048_v37 }
  0x54   :  { %1854 = vmatpush3.bf16.msra.mxu0 %v2049_v38 }
  0x55   :  { %1855 = vmatprep.subr.bf16.mxu0 %v2051_v40  ;;  %1876 = vmatpush3.bf16.msra.mxu1 %v2050_v39 }
  0x56   :  { %1877 = vmatprep.subr.bf16.mxu1 %v2052_v42 }
  0x58   :  { %1856 = vmatpush3.bf16.msra.mxu0 %v2053_v43 }
  0x59   :  { %1857 = vmatprep.subr.bf16.mxu0 %v2055_v45  ;;  %1878 = vmatpush3.bf16.msra.mxu1 %v2054_v44 }
  0x5a   :  { %1879 = vmatprep.subr.bf16.mxu1 %v2056_v47 }
  0x5c   :  { %1858 = vmatpush3.bf16.msra.mxu0 %v2057_v50 }
  0x5d   :  { %1859 = vmatprep.subr.bf16.mxu0 %v2059_v54  ;;  %1880 = vmatpush3.bf16.msra.mxu1 %v2058_v51 }
  0x5e   :  { %1881 = vmatprep.subr.bf16.mxu1 %v2060_v55 }
  0x60   :  { %1860 = vmatpush3.bf16.msra.mxu0 %v2061_v58 }
  0x61   :  { %1889 = vmatprep.subr.bf16.mxu0 %v2063_v62  ;;  %1882 = vmatpush3.bf16.msra.mxu1 %v2062_v59 }
  0x62   :  { %1911 = vmatprep.subr.bf16.mxu1 %v2064_v63 }
  0x63   :  { %1364 = vmatmul.mubr.bf16.vlgmr.msra.gmra.mrb[8].mxu0 %v361_v61 }
  0x64   :  { %1890 = vmatpush3.bf16.msra.mxu0 %v2065_v1  ;;  %1443 = vmatprep.mubr.bf16.mxu0 %v382_v0 }
  0x65   :  { %1404 = vmatmul.mubr.bf16.vlgmr.msra.gmra.mrb[8].mxu1 %v383_v3  ;;  %1891 = vmatprep.subr.bf16.mxu0 %v2067_v4 }
  0x66   :  { %1912 = vmatpush3.bf16.msra.mxu1 %v2066_v2  ;;  %1483 = vmatprep.mubr.bf16.mxu1 %v386_v6 }
  0x67   :  { %1913 = vmatprep.subr.bf16.mxu1 %v2068_v5 }
  0x68   :  { %1892 = vmatpush3.bf16.msra.mxu0 %v2069_v7 }
  0x69   :  { %1893 = vmatprep.subr.bf16.mxu0 %v2071_v9 }
  0x6a   :  { %1914 = vmatpush3.bf16.msra.mxu1 %v2070_v8 }
  0x6b   :  { %1915 = vmatprep.subr.bf16.mxu1 %v2072_v10 }
  0x6c   :  { %1894 = vmatpush3.bf16.msra.mxu0 %v2073_v11 }
  0x6d   :  { %1895 = vmatprep.subr.bf16.mxu0 %v2075_v13 }
  0x6e   :  { %1916 = vmatpush3.bf16.msra.mxu1 %v2074_v12 }
  0x6f   :  { %1917 = vmatprep.subr.bf16.mxu1 %v2076_v14 }
  0x70   :  { %1896 = vmatpush3.bf16.msra.mxu0 %v2077_v15 }
  0x71   :  { %1897 = vmatprep.subr.bf16.mxu0 %v2079_v17 }
  0x72   :  { %1918 = vmatpush3.bf16.msra.mxu1 %v2078_v16 }
  0x73   :  { %1919 = vmatprep.subr.bf16.mxu1 %v2080_v18 }
  0x74   :  { %1898 = vmatpush3.bf16.msra.mxu0 %v2081_v19 }
  0x75   :  { %1899 = vmatprep.subr.bf16.mxu0 %v2083_v21 }
  0x76   :  { %1920 = vmatpush3.bf16.msra.mxu1 %v2082_v20 }
  0x77   :  { %1921 = vmatprep.subr.bf16.mxu1 %v2084_v22 }
  0x78   :  { %1900 = vmatpush3.bf16.msra.mxu0 %v2085_v23 }
  0x79   :  { %1901 = vmatprep.subr.bf16.mxu0 %v2087_v25 }
  0x7a   :  { %1922 = vmatpush3.bf16.msra.mxu1 %v2086_v24 }
  0x7b   :  { %1923 = vmatprep.subr.bf16.mxu1 %v2088_v26 }
  0x7c   :  { %10 = vsyncpa [#allocation3], 0  ;;  %1902 = vmatpush3.bf16.msra.mxu0 %v2089_v27  ;;  %v2093_v31 = vld [vmem:[%s2619_s1 + $0x338] sm:$0xff]   ;;  %v368_v32 = vrot.slane %v2459_v53, %v2267_v41  ;;  %v2096_v35 = vld [vmem:[%s2621_s3] sm:$0xff]   ;;  %v2129_v36 = vmov 0.0   ;;  %vm2130_vm0 = vmmov 0  }
  0x7d   :  { %1903 = vmatprep.subr.bf16.mxu0 %v2091_v29  ;;  %v2094_v33 = vld [vmem:[%s2619_s1 + $0x3b8] sm:$0xff]   ;;  %v2097_v41 = vld [vmem:[%s2621_s3 + $0x8] sm:$0xff]   ;;  %v2098_v37 = vld [vmem:[%s2621_s3 + $0x10] sm:$0xff]   ;;  %s2131_s16 = smov [#allocation2]  }
  0x7e   :  { %1924 = vmatpush3.bf16.msra.mxu1 %v2090_v28  ;;  %v384_v34 = vcombine.high %v368_v32, %v368_v32  ;;  %v2099_v38 = vld [vmem:[%s2621_s3 + $0x18] sm:$0xff]   ;;  %v2100_v39 = vld [vmem:[%s2621_s3 + $0x20] sm:$0xff]   ;;  %v2101_v40 = vld [vmem:[%s2621_s3 + $0x28] sm:$0xff]   ;;  %s1611_s17 = sshll.u32 %s2131_s16, 4  ;;  %s1612_s17 = int_to_ptr.vmem [resolvable:$true] %s1611_s17 }
  0x7f   :  { %1925 = vmatprep.subr.bf16.mxu1 %v2092_v30  ;;  %v2102_v42 = vld [vmem:[%s2621_s3 + $0x30] sm:$0xff]   ;;  %v2103_v43 = vld [vmem:[%s2621_s3 + $0x38] sm:$0xff]   ;;  %v1619_v45 = vld [vmem:[%s2620_s2] ss:$0 sm:$0xff]  ;;  %s2104_s18 = scalar_lea.vmem %s1612_s17, 32  ;;  %p2109_p1 = scmp.lt.s32.totalorder %s1612_s17, %s1612_s17 }
  0x80   :  { %1904 = vmatpush3.bf16.msra.mxu0 %v2093_v31  ;;  %v1748_v31 = vld [vmem:[%s2622_s4] ss:$0 sm:$0xff]  ;;  %p2105_p0 = scmp.ne.s32.totalorder %s1612_s17, %s2104_s18  ;;  %p2110_p2 = scmp.lt.s32.totalorder %s2104_s18, %s2104_s18 }
  0x81   :  { %1942 = vmatprep.subr.bf16.mxu0 %v2129_v36 }
  0x82   :  { %1926 = vmatpush3.bf16.msra.mxu1 %v2094_v33  ;;  %p2111_p3 = por %p2110_p2, %p2109_p1 }
  0x83   :  { %1444 = vmatmul.mubr.bf16.vlgmr.msra.gmra.mrb[12].mxu0 %v368_v32 }
  0x84   :  { %1943 = vmatpush3.bf16.msra.mxu0 %v2096_v35  ;;  %1958 = vmatprep.mubr.msk.bf16.mxu0 %vm2130_vm0, %v2129_v36  ;;  %p2112_p4 = pnand %p2111_p3, %p2105_p0 }
  0x85   :  { %1484 = vmatmul.mubr.bf16.vlgmr.msra.gmra.mrb[12].mxu1 %v384_v34  ;;  %1944 = vmatprep.subr.bf16.mxu0 %v2129_v36 }
  0x88   :  { %1945 = vmatpush3.bf16.msra.mxu0 %v2097_v41 }
  0x89   :  { %1946 = vmatprep.subr.bf16.mxu0 %v2129_v36 }
  0x8c   :  { %1947 = vmatpush3.bf16.msra.mxu0 %v2098_v37 }
  0x8d   :  { %1948 = vmatprep.subr.bf16.mxu0 %v2129_v36 }
  0x90   :  { %1949 = vmatpush3.bf16.msra.mxu0 %v2099_v38 }
  0x91   :  { %1950 = vmatprep.subr.bf16.mxu0 %v2129_v36 }
  0x94   :  { %1951 = vmatpush3.bf16.msra.mxu0 %v2100_v39 }
  0x95   :  { %1952 = vmatprep.subr.bf16.mxu0 %v2129_v36 }
  0x98   :  { %1953 = vmatpush3.bf16.msra.mxu0 %v2101_v40 }
  0x99   :  { %1954 = vmatprep.subr.bf16.mxu0 %v2129_v36 }
  0x9c   :  { %1955 = vmatpush3.bf16.msra.mxu0 %v2102_v42 }
  0x9d   :  { %1956 = vmatprep.subr.bf16.mxu0 %v2129_v36 }
  0xa0   :  { %1957 = vmatpush3.bf16.msra.mxu0 %v2103_v43 }
  0xf6   :  { %v1773_v44 = vpop.f32.mrb[0].mxu0 }
  0xf7   :  { %v1774_v46 = vpop.f32.mrb[1].mxu0  ;;  %v1795_v47 = vpop.f32.mrb[0].mxu1 }
  0xf8   :  { %v1775_v48 = vadd.f32 %v1774_v46, %v1773_v44  ;;  %v1776_v49 = vpop.f32.mrb[2].mxu0  ;;  %v1796_v50 = vpop.f32.mrb[1].mxu1 }
  0xf9   :  { %v1777_v51 = vpop.f32.mrb[3].mxu0  ;;  %v1797_v53 = vadd.f32 %v1796_v50, %v1795_v47  ;;  %v1798_v54 = vpop.f32.mrb[2].mxu1 }
  0xfa   :  { %v1206_v52 = vadd.f32 %v1775_v48, %v1619_v45  ;;  %v1799_v55 = vpop.f32.mrb[3].mxu1 }
  0xfc   :  { %v1246_v56 = vadd.f32 %v1797_v53, %v1206_v52 }
 0x116   :  { %v1817_v57 = vpop.f32.mrb[4].mxu0 }
 0x117   :  { %v1818_v58 = vpop.f32.mrb[5].mxu0  ;;  %v1839_v59 = vpop.f32.mrb[4].mxu1 }
 0x118   :  { %v1819_v60 = vadd.f32 %v1818_v58, %v1817_v57  ;;  %v1820_v61 = vpop.f32.mrb[6].mxu0  ;;  %v1840_v62 = vpop.f32.mrb[5].mxu1 }
 0x119   :  { %v1821_v63 = vpop.f32.mrb[7].mxu0  ;;  %v1841_v1 = vadd.f32 %v1840_v62, %v1839_v59  ;;  %v1842_v2 = vpop.f32.mrb[6].mxu1 }
 0x11a   :  { %v1286_v0 = vadd.f32 %v1819_v60, %v1246_v56  ;;  %v1843_v3 = vpop.f32.mrb[7].mxu1 }
 0x11c   :  { %v1326_v4 = vadd.f32 %v1841_v1, %v1286_v0 }
 0x136   :  { %v1861_v5 = vpop.f32.mrb[8].mxu0 }
 0x137   :  { %v1862_v6 = vpop.f32.mrb[9].mxu0 }
 0x138   :  { %v1883_v7 = vpop.f32.mrb[8].mxu1  ;;  %v1863_v8 = vadd.f32 %v1862_v6, %v1861_v5  ;;  %v1864_v9 = vpop.f32.mrb[10].mxu0 }
 0x139   :  { %v1884_v10 = vpop.f32.mrb[9].mxu1  ;;  %v1865_v11 = vpop.f32.mrb[11].mxu0 }
 0x13a   :  { %v1366_v12 = vadd.f32 %v1863_v8, %v1326_v4  ;;  %v1885_v13 = vadd.f32 %v1884_v10, %v1883_v7  ;;  %v1886_v14 = vpop.f32.mrb[10].mxu1 }
 0x13b   :  { %v1887_v15 = vpop.f32.mrb[11].mxu1 }
 0x13c   :  { %v1406_v16 = vadd.f32 %v1885_v13, %v1366_v12 }
 0x156   :  { %v1905_v17 = vpop.f32.mrb[12].mxu0 }
 0x157   :  { %v1906_v18 = vpop.f32.mrb[13].mxu0 }
 0x158   :  { %v1927_v19 = vpop.f32.mrb[12].mxu1  ;;  %v1907_v20 = vadd.f32 %v1906_v18, %v1905_v17  ;;  %v1908_v21 = vpop.f32.mrb[14].mxu0 }
 0x159   :  { %v1928_v22 = vpop.f32.mrb[13].mxu1  ;;  %v1909_v23 = vpop.f32.mrb[15].mxu0 }
 0x15a   :  { %v1446_v24 = vadd.f32 %v1907_v20, %v1406_v16  ;;  %v1929_v25 = vadd.f32 %v1928_v22, %v1927_v19  ;;  %v1930_v26 = vpop.f32.mrb[14].mxu1 }
 0x15b   :  { %v1931_v27 = vpop.f32.mrb[15].mxu1 }
 0x15c   :  { %v1486_v28 = vadd.f32 %v1929_v25, %v1446_v24 }
 0x15e   :  { %v1491_v29 = vmax.f32 %v1486_v28, 0.0 }
 0x160   :  { %v1492_v30 = vpack.c.bf16 %v1491_v29, %v1491_v29 }
 0x162   :  { %1959 = vmatmul.mubr.bf16.vlgmr.msra.gmra.mrb[16].mxu0 %v1492_v30 }
 0x235   :  { %v1598_v32 = vpop.f32.mrb[16].mxu0 }
 0x236   :  { %v1599_v33 = vadd.f32 %v1748_v31, %v1598_v32  ;;  %v1960_v34 = vpop.f32.mrb[17].mxu0 }
 0x237   :  { %v1601_v35 = vpop.f32.mrb[18].mxu0 }
 0x238   :  { %1604 = vst [vmem:[#allocation2] sm:$0x3] %v1599_v33  ;;  %v1961_v36 = vpop.f32.mrb[19].mxu0 }
 0x239   :  { %2115 = shalt.err (!%p2112_p4)
}
 0x23a   :  { %s2116_s4 = scalar_lea.hbm %s2623_s5, 32 }
 0x23b   :  { %p2117_p5 = scmp.ne.s32.totalorder %s2623_s5, %s2116_s4  ;;  %p2120_p6 = scmp.lt.u32.totalorder %s2116_s4, %s2623_s5 }
 0x23d   :  { %p2122_p7 = pnand %p2120_p6, %p2117_p5 }
 0x23f   :  { %2125 = shalt.err (!%p2122_p7)
}
 0x240   :  { %1614 = dma.vmem_to_hbm [thread:$0]  %s1612_s17, 32, %s2623_s5, [#allocation3]  }
 0x241   :  { %2126 = dma.done.wait [#allocation3], 32  }
 0x242   :  { %2127 = vsyncadd [#allocation3], 4294967264 }
 0x243   :  { %1618 = vsyncpa [#allocation3], 1 }

// kernel: simple_cnn_forward.4
= control target key start
LH: loop header
LB: loop body
LE: loop exit
PB: predicated region body
PF: predicated region fallthrough
CT: control target
= control target key end

     0   :  { %vm742_vm0 = vcmask 261120   ;;  %vm26_vm1 = vsmask.f32 3328  ;;  %vm27_vm2 = vsmask.f32 7440  ;;  %s5138_s2 = inlined_call_operand.vmem [shape: bf16[3,288,512], index: 2, kind: input, shape index: {}]   ;;  %s5139_s1 = inlined_call_operand.vmem [shape: bf16[2,9,288], index: 1, kind: input, shape index: {}]   ;;  %s5140_s0 = inlined_call_operand.vmem [shape: bf16[2,9,288], index: 0, kind: input, shape index: {}]   ;;  %s5141_s3 = inlined_call_operand.vmem [shape: f32[1,256], index: 3, kind: input, shape index: {}]   ;;  %s5142_s4 = inlined_call_operand.vmem [shape: bf16[2,8,256], index: 4, kind: output, shape index: {}]  }
   0x1   :  { %v3083_v0 = vld [vmem:[%s5138_s2 + $0x244] ss:$16 sps:$4 sm:$0xff]   ;;  %v3085_v1 = vld [vmem:[%s5138_s2 + $0x24c] ss:$16 sps:$4 sm:$0xff]   ;;  %v3087_v2 = vld [vmem:[%s5138_s2 + $0x240] ss:$16 sps:$4 sm:$0xff]  }
   0x2   :  { %746 = vmatprep.subr.bf16.mxu0 %v3083_v0  ;;  %v3088_v3 = vld [vmem:[%s5138_s2 + $0x248] ss:$16 sps:$4 sm:$0xff]   ;;  %832 = vmatprep.subr.bf16.mxu1 %v3085_v1  ;;  %v3089_v4 = vld [vmem:[%s5138_s2 + $0x264] ss:$16 sps:$4 sm:$0xff]   ;;  %v3091_v5 = vld [vmem:[%s5138_s2 + $0x26c] ss:$16 sps:$4 sm:$0xff]  }
   0x3   :  { %747 = vmatpush1.bf16.msra.mxu0 %v3087_v2  ;;  %833 = vmatpush1.bf16.msra.mxu1 %v3088_v3  ;;  %v3093_v6 = vld [vmem:[%s5138_s2 + $0x260] ss:$16 sps:$4 sm:$0xff]   ;;  %v3094_v7 = vld [vmem:[%s5138_s2 + $0x268] ss:$16 sps:$4 sm:$0xff]   ;;  %v3095_v8 = vld [vmem:[%s5138_s2 + $0x284] ss:$16 sps:$4 sm:$0xff]  }
   0x4   :  { %748 = vmatprep.subr.bf16.mxu0 %v3089_v4  ;;  %834 = vmatprep.subr.bf16.mxu1 %v3091_v5  ;;  %v3097_v9 = vld [vmem:[%s5138_s2 + $0x28c] ss:$16 sps:$4 sm:$0xff]   ;;  %v3099_v10 = vld [vmem:[%s5138_s2 + $0x280] ss:$16 sps:$4 sm:$0xff]   ;;  %v3100_v11 = vld [vmem:[%s5138_s2 + $0x288] ss:$16 sps:$4 sm:$0xff]  }
   0x5   :  { %v3101_v12 = vld [vmem:[%s5138_s2 + $0x2a4] ss:$16 sps:$4 sm:$0xff]   ;;  %v3103_v13 = vld [vmem:[%s5138_s2 + $0x2ac] ss:$16 sps:$4 sm:$0xff]   ;;  %v3105_v14 = vld [vmem:[%s5138_s2 + $0x2a0] ss:$16 sps:$4 sm:$0xff]  }
   0x6   :  { %v3106_v15 = vld [vmem:[%s5138_s2 + $0x2a8] ss:$16 sps:$4 sm:$0xff]   ;;  %v3107_v16 = vld [vmem:[%s5138_s2 + $0x2c4] ss:$16 sps:$4 sm:$0xff]   ;;  %v3109_v17 = vld [vmem:[%s5138_s2 + $0x2cc] ss:$16 sps:$4 sm:$0xff]  }
   0x7   :  { %749 = vmatpush1.bf16.msra.mxu0 %v3093_v6  ;;  %835 = vmatpush1.bf16.msra.mxu1 %v3094_v7  ;;  %v3111_v18 = vld [vmem:[%s5138_s2 + $0x2c0] ss:$16 sps:$4 sm:$0xff]   ;;  %v3112_v19 = vld [vmem:[%s5138_s2 + $0x2c8] ss:$16 sps:$4 sm:$0xff]   ;;  %v3113_v20 = vld [vmem:[%s5138_s2 + $0x2e4] ss:$16 sps:$4 sm:$0xff]  }
   0x8   :  { %750 = vmatprep.subr.bf16.mxu0 %v3095_v8  ;;  %836 = vmatprep.subr.bf16.mxu1 %v3097_v9  ;;  %v3115_v21 = vld [vmem:[%s5138_s2 + $0x2ec] ss:$16 sps:$4 sm:$0xff]   ;;  %v3117_v22 = vld [vmem:[%s5138_s2 + $0x2e0] ss:$16 sps:$4 sm:$0xff]   ;;  %v3118_v23 = vld [vmem:[%s5138_s2 + $0x2e8] ss:$16 sps:$4 sm:$0xff]  }
   0x9   :  { %v3119_v24 = vld [vmem:[%s5138_s2 + $0x304] ss:$16 sps:$4 sm:$0xff]   ;;  %v3121_v25 = vld [vmem:[%s5138_s2 + $0x30c] ss:$16 sps:$4 sm:$0xff]   ;;  %v3123_v26 = vld [vmem:[%s5138_s2 + $0x300] ss:$16 sps:$4 sm:$0xff]  }
   0xa   :  { %v3124_v27 = vld [vmem:[%s5138_s2 + $0x308] ss:$16 sps:$4 sm:$0xff]   ;;  %v3125_v28 = vld [vmem:[%s5138_s2 + $0x324] ss:$16 sps:$4 sm:$0xff]   ;;  %v3127_v29 = vld [vmem:[%s5138_s2 + $0x32c] ss:$16 sps:$4 sm:$0xff]  }
   0xb   :  { %751 = vmatpush1.bf16.msra.mxu0 %v3099_v10  ;;  %837 = vmatpush1.bf16.msra.mxu1 %v3100_v11  ;;  %v3129_v30 = vld [vmem:[%s5138_s2 + $0x320] ss:$16 sps:$4 sm:$0xff]   ;;  %v3130_v31 = vld [vmem:[%s5138_s2 + $0x328] ss:$16 sps:$4 sm:$0xff]   ;;  %v3131_v32 = vld [vmem:[%s5138_s2 + $0x344] ss:$16 sps:$4 sm:$0xff]  }
   0xc   :  { %752 = vmatprep.subr.bf16.mxu0 %v3101_v12  ;;  %838 = vmatprep.subr.bf16.mxu1 %v3103_v13  ;;  %v3133_v33 = vld [vmem:[%s5138_s2 + $0x34c] ss:$16 sps:$4 sm:$0xff]   ;;  %v3135_v34 = vld [vmem:[%s5138_s2 + $0x340] ss:$16 sps:$4 sm:$0xff]   ;;  %v3136_v35 = vld [vmem:[%s5138_s2 + $0x348] ss:$16 sps:$4 sm:$0xff]  }
   0xd   :  { %v3137_v36 = vld [vmem:[%s5138_s2 + $0x364] ss:$16 sps:$4 sm:$0xff]   ;;  %v3139_v37 = vld [vmem:[%s5138_s2 + $0x36c] ss:$16 sps:$4 sm:$0xff]   ;;  %v3141_v38 = vld [vmem:[%s5138_s2 + $0x360] ss:$16 sps:$4 sm:$0xff]  }
   0xe   :  { %v3142_v39 = vld [vmem:[%s5138_s2 + $0x368] ss:$16 sps:$4 sm:$0xff]   ;;  %v3143_v40 = vld [vmem:[%s5138_s2 + $0x384] ss:$16 sps:$4 sm:$0xff]   ;;  %v3145_v41 = vld [vmem:[%s5138_s2 + $0x38c] ss:$16 sps:$4 sm:$0xff]  }
   0xf   :  { %753 = vmatpush1.bf16.msra.mxu0 %v3105_v14  ;;  %839 = vmatpush1.bf16.msra.mxu1 %v3106_v15  ;;  %v3147_v42 = vld [vmem:[%s5138_s2 + $0x380] ss:$16 sps:$4 sm:$0xff]   ;;  %v3148_v43 = vld [vmem:[%s5138_s2 + $0x388] ss:$16 sps:$4 sm:$0xff]   ;;  %v3149_v44 = vld [vmem:[%s5138_s2 + $0x3a4] ss:$16 sps:$4 sm:$0xff]  }
  0x10   :  { %754 = vmatprep.subr.bf16.mxu0 %v3107_v16  ;;  %840 = vmatprep.subr.bf16.mxu1 %v3109_v17  ;;  %v3151_v45 = vld [vmem:[%s5138_s2 + $0x3ac] ss:$16 sps:$4 sm:$0xff]   ;;  %v85_v46 = vld [vmem:[%s5139_s1] sm:$0xff]  ;;  %v3154_v49 = vld [vmem:[%s5138_s2 + $0x3a8] ss:$16 sps:$4 sm:$0xff]   ;;  %v5143_v14 = vmov 0  }
  0x11   :  { %v87_v47 = vld [vmem:[%s5139_s1 + $0x18] sm:$0xff]  ;;  %v3153_v48 = vld [vmem:[%s5138_s2 + $0x3a0] ss:$16 sps:$4 sm:$0xff]   ;;  %v3155_v51 = vld [vmem:[%s5138_s2 + $0x3c4] ss:$16 sps:$4 sm:$0xff]  }
  0x12   :  { %v3688_v50 = vcombine.high %v85_v46, %v87_v47  ;;  %v3157_v52 = vld [vmem:[%s5138_s2 + $0x3cc] ss:$16 sps:$4 sm:$0xff]   ;;  %v3159_v53 = vld [vmem:[%s5138_s2 + $0x3c0] ss:$16 sps:$4 sm:$0xff]   ;;  %v3160_v54 = vld [vmem:[%s5138_s2 + $0x3c8] ss:$16 sps:$4 sm:$0xff]   ;;  %v3746_v5 = vcombine.low %v85_v46, %v87_v47 }
  0x13   :  { %755 = vmatpush1.bf16.msra.mxu0 %v3111_v18  ;;  %841 = vmatpush1.bf16.msra.mxu1 %v3112_v19  ;;  %v3161_v55 = vld [vmem:[%s5138_s2 + $0x3e4] ss:$16 sps:$4 sm:$0xff]   ;;  %v3163_v56 = vld [vmem:[%s5138_s2 + $0x3ec] ss:$16 sps:$4 sm:$0xff]   ;;  %v3165_v57 = vld [vmem:[%s5138_s2 + $0x3e0] ss:$16 sps:$4 sm:$0xff]  }
  0x14   :  { %756 = vmatprep.subr.bf16.mxu0 %v3113_v20  ;;  %842 = vmatprep.subr.bf16.mxu1 %v3115_v21  ;;  %v3166_v58 = vld [vmem:[%s5138_s2 + $0x3e8] ss:$16 sps:$4 sm:$0xff]   ;;  %v3167_v59 = vld [vmem:[%s5138_s2 + $0x404] ss:$16 sps:$4 sm:$0xff]   ;;  %v3169_v60 = vld [vmem:[%s5138_s2 + $0x40c] ss:$16 sps:$4 sm:$0xff]  }
  0x15   :  { %778 = vmatprep.mubr.bf16.mxu0 %v3688_v50  ;;  %864 = vmatprep.mubr.bf16.mxu1 %v3688_v50  ;;  %v3171_v61 = vld [vmem:[%s5138_s2 + $0x400] ss:$16 sps:$4 sm:$0xff]   ;;  %v3172_v62 = vld [vmem:[%s5138_s2 + $0x408] ss:$16 sps:$4 sm:$0xff]   ;;  %v3173_v63 = vld [vmem:[%s5138_s2 + $0x424] ss:$16 sps:$4 sm:$0xff]  }
  0x16   :  { %v3175_v0 = vld [vmem:[%s5138_s2 + $0x42c] ss:$16 sps:$4 sm:$0xff]   ;;  %v3177_v1 = vld [vmem:[%s5138_s2 + $0x420] ss:$16 sps:$4 sm:$0xff]   ;;  %v3178_v2 = vld [vmem:[%s5138_s2 + $0x428] ss:$16 sps:$4 sm:$0xff]  }
  0x17   :  { %757 = vmatpush1.bf16.msra.mxu0 %v3117_v22  ;;  %843 = vmatpush1.bf16.msra.mxu1 %v3118_v23  ;;  %v3183_v3 = vld [vmem:[%s5138_s2 + $0x444] ss:$16 sps:$4 sm:$0xff]   ;;  %v3186_v4 = vld [vmem:[%s5138_s2 + $0x44c] ss:$16 sps:$4 sm:$0xff]   ;;  %5225 = vst [vmem:[#allocation2_spill] sm:$0xff] %v3746_v5  ;;  %vm4189_vm3 = vmor %vm26_vm1, %vm27_vm2 }
  0x18   :  { %758 = vmatprep.subr.bf16.mxu0 %v3119_v24  ;;  %844 = vmatprep.subr.bf16.mxu1 %v3121_v25  ;;  %v3181_v6 = vld [vmem:[%s5138_s2 + $0x440] ss:$16 sps:$4 sm:$0xff]   ;;  %v3184_v7 = vld [vmem:[%s5138_s2 + $0x448] ss:$16 sps:$4 sm:$0xff]   ;;  %v3189_v8 = vld [vmem:[%s5138_s2 + $0x464] ss:$16 sps:$4 sm:$0xff]  }
  0x19   :  { %v3192_v9 = vld [vmem:[%s5138_s2 + $0x46c] ss:$16 sps:$4 sm:$0xff]   ;;  %v3187_v10 = vld [vmem:[%s5138_s2 + $0x460] ss:$16 sps:$4 sm:$0xff]   ;;  %v3190_v11 = vld [vmem:[%s5138_s2 + $0x468] ss:$16 sps:$4 sm:$0xff]  }
  0x1a   :  { %v3195_v12 = vld [vmem:[%s5138_s2 + $0x4] ss:$16 sps:$4 sm:$0xff]   ;;  %v3198_v13 = vld [vmem:[%s5138_s2 + $0xc] ss:$16 sps:$4 sm:$0xff]   ;;  %v86_v15 = vld [vmem:[%s5139_s1 + $0x8] sm:$0xf] }
  0x1b   :  { %759 = vmatpush1.bf16.msra.mxu0 %v3123_v26  ;;  %845 = vmatpush1.bf16.msra.mxu1 %v3124_v27  ;;  %v88_v16 = vld [vmem:[%s5139_s1 + $0x20] sm:$0xf]  ;;  %v3196_v19 = vld [vmem:[%s5138_s2 + $0x8] ss:$16 sps:$4 sm:$0xff]   ;;  %v3202_v20 = vld [vmem:[%s5138_s2 + $0x24] ss:$16 sps:$4 sm:$0xff]  }
  0x1c   :  { %760 = vmatprep.subr.bf16.mxu0 %v3125_v28  ;;  %846 = vmatprep.subr.bf16.mxu1 %v3127_v29  ;;  %v3782_v17 = vcombine.low %v86_v15, %v88_v16  ;;  %v3193_v18 = vld [vmem:[%s5138_s2] ss:$16 sps:$4 sm:$0xff]   ;;  %v3205_v21 = vld [vmem:[%s5138_s2 + $0x2c] ss:$16 sps:$4 sm:$0xff]   ;;  %v3203_v23 = vld [vmem:[%s5138_s2 + $0x28] ss:$16 sps:$4 sm:$0xff]  }
  0x1d   :  { %v3200_v22 = vld [vmem:[%s5138_s2 + $0x20] ss:$16 sps:$4 sm:$0xff]   ;;  %v3208_v24 = vld [vmem:[%s5138_s2 + $0x44] ss:$16 sps:$4 sm:$0xff]   ;;  %v3211_v25 = vld [vmem:[%s5138_s2 + $0x4c] ss:$16 sps:$4 sm:$0xff]  }
  0x1e   :  { %5226 = vst [vmem:[#allocation3_spill] sm:$0xff] %v3782_v17  ;;  %v3206_v26 = vld [vmem:[%s5138_s2 + $0x40] ss:$16 sps:$4 sm:$0xff]   ;;  %v3209_v27 = vld [vmem:[%s5138_s2 + $0x48] ss:$16 sps:$4 sm:$0xff]  }
  0x1f   :  { %761 = vmatpush1.bf16.msra.mxu0 %v3129_v30  ;;  %847 = vmatpush1.bf16.msra.mxu1 %v3130_v31  ;;  %v3214_v28 = vld [vmem:[%s5138_s2 + $0x64] ss:$16 sps:$4 sm:$0xff]   ;;  %v3217_v29 = vld [vmem:[%s5138_s2 + $0x6c] ss:$16 sps:$4 sm:$0xff]   ;;  %v3212_v30 = vld [vmem:[%s5138_s2 + $0x60] ss:$16 sps:$4 sm:$0xff]  }
  0x20   :  { %762 = vmatprep.subr.bf16.mxu0 %v3131_v32  ;;  %848 = vmatprep.subr.bf16.mxu1 %v3133_v33  ;;  %v3215_v31 = vld [vmem:[%s5138_s2 + $0x68] ss:$16 sps:$4 sm:$0xff]   ;;  %v3220_v32 = vld [vmem:[%s5138_s2 + $0x84] ss:$16 sps:$4 sm:$0xff]   ;;  %v3223_v33 = vld [vmem:[%s5138_s2 + $0x8c] ss:$16 sps:$4 sm:$0xff]  }
  0x21   :  { %v3887_v46 = vld [vmem:[%s5138_s2 + $0xc8] ss:$16 sps:$4 sm:$0xff]   ;;  %v3894_v47 = vld [vmem:[%s5138_s2 + $0xe4] ss:$16 sps:$4 sm:$0xff]   ;;  %v4067_v15 = vld [vmem:[%s5138_s2 + $0x1cc] ss:$16 sps:$4 sm:$0xff]  }
  0x22   :  { %v4072_v16 = vld [vmem:[%s5138_s2 + $0x1c0] ss:$16 sps:$4 sm:$0xff]  }
  0x23   :  { %763 = vmatpush1.bf16.msra.mxu0 %v3135_v34  ;;  %849 = vmatpush1.bf16.msra.mxu1 %v3136_v35  ;;  %v3218_v34 = vld [vmem:[%s5138_s2 + $0x80] ss:$16 sps:$4 sm:$0xff]   ;;  %v3221_v35 = vld [vmem:[%s5138_s2 + $0x88] ss:$16 sps:$4 sm:$0xff]  }
  0x24   :  { %764 = vmatprep.subr.bf16.mxu0 %v3137_v36  ;;  %850 = vmatprep.subr.bf16.mxu1 %v3139_v37  ;;  %v3226_v36 = vld [vmem:[%s5138_s2 + $0xa4] ss:$16 sps:$4 sm:$0xff]   ;;  %v3229_v37 = vld [vmem:[%s5138_s2 + $0xac] ss:$16 sps:$4 sm:$0xff]  }
  0x27   :  { %765 = vmatpush1.bf16.msra.mxu0 %v3141_v38  ;;  %851 = vmatpush1.bf16.msra.mxu1 %v3142_v39  ;;  %v3851_v38 = vld [vmem:[%s5140_s0] sm:$0xff]  ;;  %v3856_v39 = vld [vmem:[%s5140_s0 + $0x18] sm:$0xff] }
  0x28   :  { %766 = vmatprep.subr.bf16.mxu0 %v3143_v40  ;;  %852 = vmatprep.subr.bf16.mxu1 %v3145_v41  ;;  %v2836_v40 = vcombine.high %v3851_v38, %v3856_v39  ;;  %v3224_v41 = vld [vmem:[%s5138_s2 + $0xa0] ss:$16 sps:$4 sm:$0xff]  }
  0x2b   :  { %767 = vmatpush1.bf16.msra.mxu0 %v3147_v42  ;;  %853 = vmatpush1.bf16.msra.mxu1 %v3148_v43  ;;  %v3866_v42 = vld [vmem:[%s5138_s2 + $0xa8] ss:$16 sps:$4 sm:$0xff]   ;;  %v3871_v43 = vld [vmem:[%s5138_s2 + $0xc4] ss:$16 sps:$4 sm:$0xff]  }
  0x2c   :  { %768 = vmatprep.subr.bf16.mxu0 %v3149_v44  ;;  %854 = vmatprep.subr.bf16.mxu1 %v3151_v45  ;;  %v3876_v44 = vld [vmem:[%s5138_s2 + $0xcc] ss:$16 sps:$4 sm:$0xff]   ;;  %v3881_v45 = vld [vmem:[%s5138_s2 + $0xc0] ss:$16 sps:$4 sm:$0xff]  }
  0x2f   :  { %769 = vmatpush1.bf16.msra.mxu0 %v3153_v48  ;;  %855 = vmatpush1.bf16.msra.mxu1 %v3154_v49  ;;  %v3899_v48 = vld [vmem:[%s5138_s2 + $0xec] ss:$16 sps:$4 sm:$0xff]   ;;  %v3904_v49 = vld [vmem:[%s5138_s2 + $0xe0] ss:$16 sps:$4 sm:$0xff]  }
  0x30   :  { %770 = vmatprep.subr.bf16.mxu0 %v3155_v51  ;;  %856 = vmatprep.subr.bf16.mxu1 %v3157_v52  ;;  %v3909_v51 = vld [vmem:[%s5138_s2 + $0xe8] ss:$16 sps:$4 sm:$0xff]   ;;  %v3916_v52 = vld [vmem:[%s5138_s2 + $0x104] ss:$16 sps:$4 sm:$0xff]  }
  0x33   :  { %771 = vmatpush1.bf16.msra.mxu0 %v3159_v53  ;;  %857 = vmatpush1.bf16.msra.mxu1 %v3160_v54  ;;  %v3923_v53 = vld [vmem:[%s5138_s2 + $0x10c] ss:$16 sps:$4 sm:$0xff]   ;;  %v3928_v54 = vld [vmem:[%s5138_s2 + $0x100] ss:$16 sps:$4 sm:$0xff]  }
  0x34   :  { %772 = vmatprep.subr.bf16.mxu0 %v3161_v55  ;;  %858 = vmatprep.subr.bf16.mxu1 %v3163_v56  ;;  %v3933_v55 = vld [vmem:[%s5138_s2 + $0x108] ss:$16 sps:$4 sm:$0xff]   ;;  %v3940_v56 = vld [vmem:[%s5138_s2 + $0x124] ss:$16 sps:$4 sm:$0xff]  }
  0x37   :  { %773 = vmatpush1.bf16.msra.mxu0 %v3165_v57  ;;  %859 = vmatpush1.bf16.msra.mxu1 %v3166_v58  ;;  %v3947_v57 = vld [vmem:[%s5138_s2 + $0x12c] ss:$16 sps:$4 sm:$0xff]   ;;  %v3952_v58 = vld [vmem:[%s5138_s2 + $0x120] ss:$16 sps:$4 sm:$0xff]  }
  0x38   :  { %774 = vmatprep.subr.bf16.mxu0 %v3167_v59  ;;  %860 = vmatprep.subr.bf16.mxu1 %v3169_v60  ;;  %v3957_v59 = vld [vmem:[%s5138_s2 + $0x128] ss:$16 sps:$4 sm:$0xff]   ;;  %v3964_v60 = vld [vmem:[%s5138_s2 + $0x144] ss:$16 sps:$4 sm:$0xff]  }
  0x3b   :  { %775 = vmatpush1.bf16.msra.mxu0 %v3171_v61  ;;  %861 = vmatpush1.bf16.msra.mxu1 %v3172_v62  ;;  %v3971_v61 = vld [vmem:[%s5138_s2 + $0x14c] ss:$16 sps:$4 sm:$0xff]   ;;  %v3976_v62 = vld [vmem:[%s5138_s2 + $0x140] ss:$16 sps:$4 sm:$0xff]  }
  0x3c   :  { %776 = vmatprep.subr.bf16.mxu0 %v3173_v63  ;;  %862 = vmatprep.subr.bf16.mxu1 %v3175_v0  ;;  %v3981_v63 = vld [vmem:[%s5138_s2 + $0x148] ss:$16 sps:$4 sm:$0xff]   ;;  %v3988_v0 = vld [vmem:[%s5138_s2 + $0x164] ss:$16 sps:$4 sm:$0xff]  }
  0x3f   :  { %777 = vmatpush1.bf16.msra.mxu0 %v3177_v1  ;;  %863 = vmatpush1.bf16.msra.mxu1 %v3178_v2  ;;  %v3995_v1 = vld [vmem:[%s5138_s2 + $0x16c] ss:$16 sps:$4 sm:$0xff]   ;;  %v4000_v2 = vld [vmem:[%s5138_s2 + $0x160] ss:$16 sps:$4 sm:$0xff]  }
  0x40   :  { %789 = vmatprep.subr.bf16.mxu0 %v3183_v3  ;;  %875 = vmatprep.subr.bf16.mxu1 %v3186_v4  ;;  %v4005_v3 = vld [vmem:[%s5138_s2 + $0x168] ss:$16 sps:$4 sm:$0xff]   ;;  %v4012_v4 = vld [vmem:[%s5138_s2 + $0x184] ss:$16 sps:$4 sm:$0xff]  }
  0x42   :  { %779 = vmatmul.mubr.bf16.vlgmr.msra.gmra.mrb[0].mxu0 %v3746_v5  ;;  %865 = vmatmul.mubr.bf16.vlgmr.msra.gmra.mrb[0].mxu1 %v3746_v5  ;;  %v22_v5 = vld [vmem:[%s5140_s0 + $0xc] sm:$0x11] }
  0x43   :  { %790 = vmatpush1.bf16.msra.mxu0 %v3181_v6  ;;  %876 = vmatpush1.bf16.msra.mxu1 %v3184_v7  ;;  %v4019_v6 = vld [vmem:[%s5138_s2 + $0x18c] ss:$16 sps:$4 sm:$0xff]   ;;  %v4024_v7 = vld [vmem:[%s5138_s2 + $0x180] ss:$16 sps:$4 sm:$0xff]  }
  0x44   :  { %791 = vmatprep.subr.bf16.mxu0 %v3189_v8  ;;  %877 = vmatprep.subr.bf16.mxu1 %v3192_v9  ;;  %v4029_v8 = vld [vmem:[%s5138_s2 + $0x188] ss:$16 sps:$4 sm:$0xff]   ;;  %v4036_v9 = vld [vmem:[%s5138_s2 + $0x1a4] ss:$16 sps:$4 sm:$0xff]  }
  0x45   :  { %821 = vmatprep.mubr.bf16.mxu0 %v5143_v14  ;;  %907 = vmatprep.mubr.bf16.mxu1 %v5143_v14  ;;  %v2835_v14 = vcombine.low %v3851_v38, %v3856_v39 }
  0x47   :  { %792 = vmatpush1.bf16.msra.mxu0 %v3187_v10  ;;  %878 = vmatpush1.bf16.msra.mxu1 %v3190_v11  ;;  %v4043_v10 = vld [vmem:[%s5138_s2 + $0x1ac] ss:$16 sps:$4 sm:$0xff]   ;;  %v4048_v11 = vld [vmem:[%s5138_s2 + $0x1a0] ss:$16 sps:$4 sm:$0xff]  }
  0x48   :  { %1296 = vmatprep.subr.bf16.mxu0 %v3195_v12  ;;  %1382 = vmatprep.subr.bf16.mxu1 %v3198_v13  ;;  %v4053_v12 = vld [vmem:[%s5138_s2 + $0x1a8] ss:$16 sps:$4 sm:$0xff]   ;;  %v4060_v13 = vld [vmem:[%s5138_s2 + $0x1c4] ss:$16 sps:$4 sm:$0xff]  }
  0x4e   :  { %2833 = vmatmul.mubr.msk.bf16.vlgmr.msra.gmra.mrb[0].mxu0 %vm742_vm0, %v3782_v17  ;;  %2834 = vmatmul.mubr.msk.bf16.vlgmr.msra.gmra.mrb[0].mxu1 %vm742_vm0, %v3782_v17  ;;  %v4137_v17 = vld [vmem:[%s5138_s2 + $0x208] ss:$16 sps:$4 sm:$0xff]  }
  0x4f   :  { %1297 = vmatpush1.bf16.msra.mxu0 %v3193_v18  ;;  %1383 = vmatpush1.bf16.msra.mxu1 %v3196_v19  ;;  %v4077_v18 = vld [vmem:[%s5138_s2 + $0x1c8] ss:$16 sps:$4 sm:$0xff]   ;;  %v4084_v19 = vld [vmem:[%s5138_s2 + $0x1e4] ss:$16 sps:$4 sm:$0xff]  }
  0x50   :  { %1298 = vmatprep.subr.bf16.mxu0 %v3202_v20  ;;  %1384 = vmatprep.subr.bf16.mxu1 %v3205_v21  ;;  %v4091_v20 = vld [vmem:[%s5138_s2 + $0x1ec] ss:$16 sps:$4 sm:$0xff]   ;;  %v4096_v21 = vld [vmem:[%s5138_s2 + $0x1e0] ss:$16 sps:$4 sm:$0xff]  }
  0x51   :  { %1328 = vmatprep.mubr.bf16.mxu0 %v2836_v40  ;;  %1414 = vmatprep.mubr.bf16.mxu1 %v2836_v40  ;;  %5227 = vst [vmem:[#allocation4_spill] sm:$0xff] %v4096_v21 }
  0x53   :  { %1299 = vmatpush1.bf16.msra.mxu0 %v3200_v22  ;;  %1385 = vmatpush1.bf16.msra.mxu1 %v3203_v23  ;;  %v4101_v22 = vld [vmem:[%s5138_s2 + $0x1e8] ss:$16 sps:$4 sm:$0xff]   ;;  %v30_v23 = vshrl.u32 %v3851_v38, 16 }
  0x54   :  { %1300 = vmatprep.subr.bf16.mxu0 %v3208_v24  ;;  %1386 = vmatprep.subr.bf16.mxu1 %v3211_v25  ;;  %5228 = vst [vmem:[#allocation5_spill] sm:$0xff] %v4101_v22  ;;  %v33_v24 = vshll.u32 %v3851_v38, 16  ;;  %v58_v25 = vshrl.u32 %v3856_v39, 16  ;;  %v4151_v38 = vld [vmem:[%s5138_s2 + $0x22c] ss:$16 sps:$4 sm:$0xff]  }
  0x55   :  { %5232 = vst [vmem:[#allocation9_spill] sm:$0xff] %v4151_v38 }
  0x56   :  { %v60_v40 = vrot.slane %v58_v25, 4 }
  0x57   :  { %1301 = vmatpush1.bf16.msra.mxu0 %v3206_v26  ;;  %1387 = vmatpush1.bf16.msra.mxu1 %v3209_v27  ;;  %v61_v26 = vshll.u32 %v3856_v39, 16  ;;  %v4110_v27 = vld [vmem:[%s5138_s2 + $0x204] ss:$16 sps:$4 sm:$0xff]  }
  0x58   :  { %1302 = vmatprep.subr.bf16.mxu0 %v3214_v28  ;;  %1388 = vmatprep.subr.bf16.mxu1 %v3217_v29  ;;  %5229 = vst [vmem:[#allocation6_spill] sm:$0xff] %v4110_v27  ;;  %v4115_v28 = vld [vmem:[%s5138_s2 + $0x20c] ss:$16 sps:$4 sm:$0xff]   ;;  %v19_v29 = vld [vmem:[%s5140_s0 + $0x8] sm:$0xf] }
  0x59   :  { %5230 = vst [vmem:[#allocation7_spill] sm:$0xff] %v4115_v28 }
  0x5b   :  { %1303 = vmatpush1.bf16.msra.mxu0 %v3212_v30  ;;  %1389 = vmatpush1.bf16.msra.mxu1 %v3215_v31  ;;  %v21_v30 = vld [vmem:[%s5140_s0 + $0x20] sm:$0xf]  ;;  %v44_v31 = vshrl.u32 %v19_v29, 16 }
  0x5c   :  { %1304 = vmatprep.subr.bf16.mxu0 %v3220_v32  ;;  %1390 = vmatprep.subr.bf16.mxu1 %v3223_v33  ;;  %v47_v32 = vshll.u32 %v19_v29, 16  ;;  %v32_v33 = vrot.slane %v30_v23, 4  ;;  %v4144_v23 = vld [vmem:[%s5138_s2 + $0x224] ss:$16 sps:$4 sm:$0xff]  }
  0x5d   :  { %5231 = vst [vmem:[#allocation8_spill] sm:$0xff] %v4144_v23  ;;  %v46_v39 = vrot.slane %v44_v31, 4  ;;  %v4164_v31 = vld [vmem:[%s5138_s2 + $0x220] ss:$16 sps:$4 sm:$0xff]  }
  0x5f   :  { %1305 = vmatpush1.bf16.msra.mxu0 %v3218_v34  ;;  %1391 = vmatpush1.bf16.msra.mxu1 %v3221_v35  ;;  %v4130_v34 = vld [vmem:[%s5138_s2 + $0x200] ss:$16 sps:$4 sm:$0xff]   ;;  %v72_v35 = vshrl.u32 %v21_v30, 16 }
  0x60   :  { %1306 = vmatprep.subr.bf16.mxu0 %v3226_v36  ;;  %1392 = vmatprep.subr.bf16.mxu1 %v3229_v37  ;;  %v75_v36 = vshll.u32 %v21_v30, 16  ;;  %v35_v37 = vrot.slane %v33_v24, 5  ;;  %v49_v24 = vrot.slane %v47_v32, 5 }
  0x61   :  { %v74_v25 = vrot.slane %v72_v35, 4 }
  0x62   :  { %v50_v35 = vor.u32 %v49_v24, %v46_v39  ;;  %v23_v39 = vld [vmem:[%s5140_s0 + $0x14] sm:$0x1] }
  0x63   :  { %1307 = vmatpush1.bf16.msra.mxu0 %v3224_v41  ;;  %1393 = vmatpush1.bf16.msra.mxu1 %v3866_v42  ;;  %v63_v41 = vrot.slane %v61_v26, 5  ;;  %v77_v26 = vrot.slane %v75_v36, 5  ;;  %v5236_v36 = vmov 0  }
  0x64   :  { %1308 = vmatprep.subr.bf16.mxu0 %v3871_v43  ;;  %1394 = vmatprep.subr.bf16.mxu1 %v3876_v44 }
  0x67   :  { %1309 = vmatpush1.bf16.msra.mxu0 %v3881_v45  ;;  %1395 = vmatpush1.bf16.msra.mxu1 %v3887_v46 }
  0x68   :  { %1310 = vmatprep.subr.bf16.mxu0 %v3894_v47  ;;  %1396 = vmatprep.subr.bf16.mxu1 %v3899_v48 }
  0x6b   :  { %1311 = vmatpush1.bf16.msra.mxu0 %v3904_v49  ;;  %1397 = vmatpush1.bf16.msra.mxu1 %v3909_v51 }
  0x6c   :  { %1312 = vmatprep.subr.bf16.mxu0 %v3916_v52  ;;  %1398 = vmatprep.subr.bf16.mxu1 %v3923_v53 }
  0x6f   :  { %1313 = vmatpush1.bf16.msra.mxu0 %v3928_v54  ;;  %1399 = vmatpush1.bf16.msra.mxu1 %v3933_v55 }
  0x70   :  { %1314 = vmatprep.subr.bf16.mxu0 %v3940_v56  ;;  %1400 = vmatprep.subr.bf16.mxu1 %v3947_v57 }
  0x73   :  { %1315 = vmatpush1.bf16.msra.mxu0 %v3952_v58  ;;  %1401 = vmatpush1.bf16.msra.mxu1 %v3957_v59 }
  0x74   :  { %1316 = vmatprep.subr.bf16.mxu0 %v3964_v60  ;;  %1402 = vmatprep.subr.bf16.mxu1 %v3971_v61 }
  0x77   :  { %1317 = vmatpush1.bf16.msra.mxu0 %v3976_v62  ;;  %1403 = vmatpush1.bf16.msra.mxu1 %v3981_v63 }
  0x78   :  { %1318 = vmatprep.subr.bf16.mxu0 %v3988_v0  ;;  %1404 = vmatprep.subr.bf16.mxu1 %v3995_v1 }
  0x7b   :  { %1319 = vmatpush1.bf16.msra.mxu0 %v4000_v2  ;;  %1405 = vmatpush1.bf16.msra.mxu1 %v4005_v3 }
  0x7c   :  { %1320 = vmatprep.subr.bf16.mxu0 %v4012_v4  ;;  %1406 = vmatprep.subr.bf16.mxu1 %v4019_v6 }
  0x7f   :  { %1321 = vmatpush1.bf16.msra.mxu0 %v4024_v7  ;;  %1407 = vmatpush1.bf16.msra.mxu1 %v4029_v8 }
  0x80   :  { %1322 = vmatprep.subr.bf16.mxu0 %v4036_v9  ;;  %1408 = vmatprep.subr.bf16.mxu1 %v4043_v10 }
  0x83   :  { %1323 = vmatpush1.bf16.msra.mxu0 %v4048_v11  ;;  %1409 = vmatpush1.bf16.msra.mxu1 %v4053_v12 }
  0x84   :  { %1324 = vmatprep.subr.bf16.mxu0 %v4060_v13  ;;  %1410 = vmatprep.subr.bf16.mxu1 %v4067_v15 }
  0x87   :  { %1325 = vmatpush1.bf16.msra.mxu0 %v4072_v16  ;;  %1411 = vmatpush1.bf16.msra.mxu1 %v4077_v18 }
  0x88   :  { %1326 = vmatprep.subr.bf16.mxu0 %v4084_v19  ;;  %1412 = vmatprep.subr.bf16.mxu1 %v4091_v20 }
  0x8b   :  { %1327 = vmatpush1.bf16.msra.mxu0 %v4096_v21  ;;  %1413 = vmatpush1.bf16.msra.mxu1 %v4101_v22  ;;  %v39_v22 = vshll.u32 %v22_v5, 16  ;;  %v64_v21 = vor.u32 %v63_v41, %v60_v40  ;;  %v4176_v5 = vld [vmem:[%s5138_s2 + $0x484] ss:$16 sps:$4 sm:$0xff]  }
  0x8c   :  { %1339 = vmatprep.subr.bf16.mxu0 %v4110_v27  ;;  %1425 = vmatprep.subr.bf16.mxu1 %v4115_v28  ;;  %v24_v28 = vld [vmem:[%s5140_s0 + $0x24] sm:$0x11]  ;;  %v36_v27 = vor.u32 %v35_v37, %v32_v33  ;;  %5234 = vst [vmem:[#allocation11_spill] sm:$0xff] %v4176_v5  ;;  %v4181_v33 = vld [vmem:[%s5138_s2 + $0x48c] ss:$16 sps:$4 sm:$0xff]  }
  0x8d   :  { %v67_v32 = vshll.u32 %v24_v28, 16  ;;  %5235 = vst [vmem:[#allocation12_spill] sm:$0xff] %v4181_v33  ;;  %v78_v28 = vor.u32 %v77_v26, %v74_v25  ;;  %v41_v40 = vrot.slane %v39_v22, 5  ;;  %v65_v41 = vrot.slane %v64_v21, 4  ;;  %v25_v21 = vld [vmem:[%s5140_s0 + $0x2c] sm:$0x1] }
  0x8e   :  { %1329 = vmatmul.mubr.bf16.vlgmr.msra.gmra.mrb[0].mxu0 %v2835_v14  ;;  %1415 = vmatmul.mubr.bf16.vlgmr.msra.gmra.mrb[0].mxu1 %v2835_v14  ;;  %v4169_v14 = vld [vmem:[%s5138_s2 + $0x228] ss:$16 sps:$4 sm:$0xff]   ;;  %v37_v37 = vrot.slane %v36_v27, 4  ;;  %v51_v22 = vrot.slane %v50_v35, 4  ;;  %v53_v27 = vshll.u32 %v23_v39, 16  ;;  %v81_v25 = vshll.u32 %v25_v21, 16 }
  0x8f   :  { %1340 = vmatpush1.bf16.msra.mxu0 %v4130_v34  ;;  %1426 = vmatpush1.bf16.msra.mxu1 %v4137_v17  ;;  %5233 = vst [vmem:[#allocation10_spill] sm:$0xff] %v4169_v14  ;;  %v79_v24 = vrot.slane %v78_v28, 4  ;;  %v2837_v26 = vcombine.low %v19_v29, %v21_v30  ;;  %v4217_v35 = vld [vmem:[%s5138_s2 + $0x488] ss:$16 sps:$4 sm:$0xff]   ;;  %v4222_v30 = vld [vmem:[%s5138_s2 + $0x4a4] ss:$16 sps:$4 sm:$0xff]  }
  0x90   :  { %1341 = vmatprep.subr.bf16.mxu0 %v4144_v23  ;;  %1427 = vmatprep.subr.bf16.mxu1 %v4151_v38  ;;  %v69_v38 = vrot.slane %v67_v32, 5  ;;  %v4203_v32 = vsel %vm4189_vm3, %v37_v37, %v41_v40  ;;  %v83_v29 = vrot.slane %v81_v25, 5  ;;  %v4251_v39 = vld [vmem:[%s5138_s2 + $0x4a8] ss:$16 sps:$4 sm:$0xff]   ;;  %v4258_v21 = vld [vmem:[%s5138_s2 + $0x4c4] ss:$16 sps:$4 sm:$0xff]  }
  0x91   :  { %1371 = vmatprep.mubr.bf16.mxu0 %v5236_v36  ;;  %1457 = vmatprep.mubr.bf16.mxu1 %v5236_v36  ;;  %5241 = vst [vmem:[#allocation15_spill] sm:$0xff] %v4251_v39  ;;  %5242 = vst [vmem:[#allocation16_spill] sm:$0xff] %v4258_v21  ;;  %v4284_v25 = vld [vmem:[%s5138_s2 + $0x4e4] ss:$16 sps:$4 sm:$0xff]  }
  0x92   :  { %v84_v40 = vsel %vm4189_vm3, %v79_v24, %v83_v29  ;;  %v4277_v24 = vld [vmem:[%s5138_s2 + $0x4c8] ss:$16 sps:$4 sm:$0xff]   ;;  %5246 = vst [vmem:[#allocation20_spill] sm:$0xff] %v4284_v25  ;;  %v4296_v29 = vld [vmem:[%s5138_s2 + $0x4e0] ss:$16 sps:$4 sm:$0xff]  }
  0x93   :  { %1342 = vmatpush1.bf16.msra.mxu0 %v4164_v31  ;;  %1428 = vmatpush1.bf16.msra.mxu1 %v4169_v14  ;;  %v4207_v14 = vsel %vm4189_vm3, %v65_v41, %v69_v38  ;;  %v4227_v38 = vld [vmem:[%s5138_s2 + $0x4ac] ss:$16 sps:$4 sm:$0xff]   ;;  %5245 = vst [vmem:[#allocation19_spill] sm:$0xff] %v4277_v24  ;;  %5248 = vst [vmem:[#allocation22_spill] sm:$0xff] %v4296_v29 }
  0x94   :  { %1842 = vmatprep.subr.bf16.mxu0 %v4176_v5  ;;  %1928 = vmatprep.subr.bf16.mxu1 %v4181_v33  ;;  %v55_v5 = vrot.slane %v53_v27, 5  ;;  %v4212_v33 = vld [vmem:[%s5138_s2 + $0x480] ss:$16 sps:$4 sm:$0xff]   ;;  %5239 = vst [vmem:[#allocation13_spill] sm:$0xff] %v4227_v38  ;;  %v4233_v37 = vcombine.high %v4203_v32, %v4207_v14 }
  0x95   :  { %v4272_v27 = vld [vmem:[%s5138_s2 + $0x4c0] ss:$16 sps:$4 sm:$0xff]  }
  0x96   :  { %v56_v28 = vsel %vm4189_vm3, %v51_v22, %v55_v5  ;;  %v4246_v5 = vld [vmem:[%s5138_s2 + $0x4a0] ss:$16 sps:$4 sm:$0xff]   ;;  %v4263_v22 = vld [vmem:[%s5138_s2 + $0x4cc] ss:$16 sps:$4 sm:$0xff]   ;;  %5244 = vst [vmem:[#allocation18_spill] sm:$0xff] %v4272_v27 }
  0x97   :  { %v4239_v41 = vcombine.low %v56_v28, %v84_v40  ;;  %5240 = vst [vmem:[#allocation14_spill] sm:$0xff] %v4246_v5  ;;  %5243 = vst [vmem:[#allocation17_spill] sm:$0xff] %v4263_v22  ;;  %v4301_v28 = vld [vmem:[%s5138_s2 + $0x4e8] ss:$16 sps:$4 sm:$0xff]   ;;  %v4308_v40 = vld [vmem:[%s5138_s2 + $0x504] ss:$16 sps:$4 sm:$0xff]  }
  0x98   :  { %5249 = vst [vmem:[#allocation23_spill] sm:$0xff] %v4301_v28  ;;  %5250 = vst [vmem:[#allocation24_spill] sm:$0xff] %v4308_v40 }
  0x99   :  { %v5324_v23 = vld [vmem:[#allocation20_spill] sm:$0xff] }
  0x9a   :  { %2910 = vmatmul.mubr.msk.bf16.vlgmr.msra.gmra.mrb[0].mxu0 %vm742_vm0, %v2837_v26  ;;  %2911 = vmatmul.mubr.msk.bf16.vlgmr.msra.gmra.mrb[0].mxu1 %vm742_vm0, %v2837_v26  ;;  %v4289_v26 = vld [vmem:[%s5138_s2 + $0x4ec] ss:$16 sps:$4 sm:$0xff]  }
  0x9b   :  { %1843 = vmatpush1.bf16.msra.mxu0 %v4212_v33  ;;  %1929 = vmatpush1.bf16.msra.mxu1 %v4217_v35  ;;  %5247 = vst [vmem:[#allocation21_spill] sm:$0xff] %v4289_v26 }
  0x9c   :  { %1844 = vmatprep.subr.bf16.mxu0 %v4222_v30  ;;  %1930 = vmatprep.subr.bf16.mxu1 %v4227_v38 }
  0x9d   :  { %1874 = vmatprep.mubr.bf16.mxu0 %v4233_v37  ;;  %1960 = vmatprep.mubr.bf16.mxu1 %v4233_v37 }
  0x9f   :  { %1845 = vmatpush1.bf16.msra.mxu0 %v4246_v5  ;;  %1931 = vmatpush1.bf16.msra.mxu1 %v4251_v39 }
  0xa0   :  { %1846 = vmatprep.subr.bf16.mxu0 %v4258_v21  ;;  %1932 = vmatprep.subr.bf16.mxu1 %v4263_v22  ;;  %v3507_v22 = vld [vmem:[%s5138_s2 + $0xa4] ss:$16 sps:$4 sm:$0xff]   ;;  %v3508_v21 = vld [vmem:[%s5138_s2 + $0xac] ss:$16 sps:$4 sm:$0xff]  }
  0xa3   :  { %1847 = vmatpush1.bf16.msra.mxu0 %v4272_v27  ;;  %1933 = vmatpush1.bf16.msra.mxu1 %v4277_v24  ;;  %v4313_v24 = vld [vmem:[%s5138_s2 + $0x50c] ss:$16 sps:$4 sm:$0xff]   ;;  %v4605_v27 = vcombine.low %v4203_v32, %v4207_v14  ;;  %v4624_v14 = vld [vmem:[%s5138_s2 + $0x6a4] ss:$16 sps:$4 sm:$0xff]  }
  0xa4   :  { %1848 = vmatprep.subr.bf16.mxu0 %v4284_v25  ;;  %1934 = vmatprep.subr.bf16.mxu1 %v4289_v26  ;;  %5251 = vst [vmem:[#allocation25_spill] sm:$0xff] %v4313_v24  ;;  %v4320_v25 = vld [vmem:[%s5138_s2 + $0x500] ss:$16 sps:$4 sm:$0xff]   ;;  %v4325_v26 = vld [vmem:[%s5138_s2 + $0x508] ss:$16 sps:$4 sm:$0xff]   ;;  %5302 = vst [vmem:[#allocation76_spill] sm:$0xff] %v4624_v14 }
  0xa5   :  { %5252 = vst [vmem:[#allocation26_spill] sm:$0xff] %v4320_v25  ;;  %5253 = vst [vmem:[#allocation27_spill] sm:$0xff] %v4325_v26  ;;  %v4629_v32 = vld [vmem:[%s5138_s2 + $0x6ac] ss:$16 sps:$4 sm:$0xff]  }
  0xa6   :  { %5303 = vst [vmem:[#allocation77_spill] sm:$0xff] %v4629_v32 }
  0xa7   :  { %1849 = vmatpush1.bf16.msra.mxu0 %v4296_v29  ;;  %1935 = vmatpush1.bf16.msra.mxu1 %v4301_v28  ;;  %v4332_v29 = vld [vmem:[%s5138_s2 + $0x524] ss:$16 sps:$4 sm:$0xff]   ;;  %v4337_v28 = vld [vmem:[%s5138_s2 + $0x52c] ss:$16 sps:$4 sm:$0xff]  }
  0xa8   :  { %1850 = vmatprep.subr.bf16.mxu0 %v4308_v40  ;;  %1936 = vmatprep.subr.bf16.mxu1 %v4313_v24  ;;  %5254 = vst [vmem:[#allocation28_spill] sm:$0xff] %v4332_v29  ;;  %5255 = vst [vmem:[#allocation29_spill] sm:$0xff] %v4337_v28  ;;  %v4344_v40 = vld [vmem:[%s5138_s2 + $0x520] ss:$16 sps:$4 sm:$0xff]   ;;  %v4349_v24 = vld [vmem:[%s5138_s2 + $0x528] ss:$16 sps:$4 sm:$0xff]  }
  0xa9   :  { %5256 = vst [vmem:[#allocation30_spill] sm:$0xff] %v4344_v40  ;;  %5257 = vst [vmem:[#allocation31_spill] sm:$0xff] %v4349_v24 }
  0xab   :  { %1851 = vmatpush1.bf16.msra.mxu0 %v4320_v25  ;;  %1937 = vmatpush1.bf16.msra.mxu1 %v4325_v26  ;;  %v4356_v25 = vld [vmem:[%s5138_s2 + $0x544] ss:$16 sps:$4 sm:$0xff]   ;;  %v4361_v26 = vld [vmem:[%s5138_s2 + $0x54c] ss:$16 sps:$4 sm:$0xff]  }
  0xac   :  { %1852 = vmatprep.subr.bf16.mxu0 %v4332_v29  ;;  %1938 = vmatprep.subr.bf16.mxu1 %v4337_v28  ;;  %5258 = vst [vmem:[#allocation32_spill] sm:$0xff] %v4356_v25  ;;  %5259 = vst [vmem:[#allocation33_spill] sm:$0xff] %v4361_v26  ;;  %v4368_v29 = vld [vmem:[%s5138_s2 + $0x540] ss:$16 sps:$4 sm:$0xff]   ;;  %v4373_v28 = vld [vmem:[%s5138_s2 + $0x548] ss:$16 sps:$4 sm:$0xff]  }
  0xad   :  { %5260 = vst [vmem:[#allocation34_spill] sm:$0xff] %v4368_v29  ;;  %5261 = vst [vmem:[#allocation35_spill] sm:$0xff] %v4373_v28 }
  0xaf   :  { %1853 = vmatpush1.bf16.msra.mxu0 %v4344_v40  ;;  %1939 = vmatpush1.bf16.msra.mxu1 %v4349_v24  ;;  %v4380_v40 = vld [vmem:[%s5138_s2 + $0x564] ss:$16 sps:$4 sm:$0xff]   ;;  %v4385_v24 = vld [vmem:[%s5138_s2 + $0x56c] ss:$16 sps:$4 sm:$0xff]  }
  0xb0   :  { %1854 = vmatprep.subr.bf16.mxu0 %v4356_v25  ;;  %1940 = vmatprep.subr.bf16.mxu1 %v4361_v26  ;;  %5262 = vst [vmem:[#allocation36_spill] sm:$0xff] %v4380_v40  ;;  %5263 = vst [vmem:[#allocation37_spill] sm:$0xff] %v4385_v24  ;;  %v4392_v25 = vld [vmem:[%s5138_s2 + $0x560] ss:$16 sps:$4 sm:$0xff]   ;;  %v4397_v26 = vld [vmem:[%s5138_s2 + $0x568] ss:$16 sps:$4 sm:$0xff]  }
  0xb1   :  { %5264 = vst [vmem:[#allocation38_spill] sm:$0xff] %v4392_v25  ;;  %5265 = vst [vmem:[#allocation39_spill] sm:$0xff] %v4397_v26 }
  0xb3   :  { %1855 = vmatpush1.bf16.msra.mxu0 %v4368_v29  ;;  %1941 = vmatpush1.bf16.msra.mxu1 %v4373_v28  ;;  %v4404_v29 = vld [vmem:[%s5138_s2 + $0x584] ss:$16 sps:$4 sm:$0xff]   ;;  %v4409_v28 = vld [vmem:[%s5138_s2 + $0x58c] ss:$16 sps:$4 sm:$0xff]  }
  0xb4   :  { %1856 = vmatprep.subr.bf16.mxu0 %v4380_v40  ;;  %1942 = vmatprep.subr.bf16.mxu1 %v4385_v24  ;;  %5266 = vst [vmem:[#allocation40_spill] sm:$0xff] %v4404_v29  ;;  %5267 = vst [vmem:[#allocation41_spill] sm:$0xff] %v4409_v28  ;;  %v4416_v40 = vld [vmem:[%s5138_s2 + $0x580] ss:$16 sps:$4 sm:$0xff]   ;;  %v4421_v24 = vld [vmem:[%s5138_s2 + $0x588] ss:$16 sps:$4 sm:$0xff]  }
  0xb5   :  { %5268 = vst [vmem:[#allocation42_spill] sm:$0xff] %v4416_v40  ;;  %5269 = vst [vmem:[#allocation43_spill] sm:$0xff] %v4421_v24 }
  0xb7   :  { %1857 = vmatpush1.bf16.msra.mxu0 %v4392_v25  ;;  %1943 = vmatpush1.bf16.msra.mxu1 %v4397_v26  ;;  %v4428_v25 = vld [vmem:[%s5138_s2 + $0x5a4] ss:$16 sps:$4 sm:$0xff]   ;;  %v4433_v26 = vld [vmem:[%s5138_s2 + $0x5ac] ss:$16 sps:$4 sm:$0xff]  }
  0xb8   :  { %1858 = vmatprep.subr.bf16.mxu0 %v4404_v29  ;;  %1944 = vmatprep.subr.bf16.mxu1 %v4409_v28  ;;  %5270 = vst [vmem:[#allocation44_spill] sm:$0xff] %v4428_v25  ;;  %5271 = vst [vmem:[#allocation45_spill] sm:$0xff] %v4433_v26  ;;  %v4440_v29 = vld [vmem:[%s5138_s2 + $0x5a0] ss:$16 sps:$4 sm:$0xff]   ;;  %v4445_v28 = vld [vmem:[%s5138_s2 + $0x5a8] ss:$16 sps:$4 sm:$0xff]  }
  0xb9   :  { %5272 = vst [vmem:[#allocation46_spill] sm:$0xff] %v4440_v29  ;;  %5273 = vst [vmem:[#allocation47_spill] sm:$0xff] %v4445_v28 }
  0xbb   :  { %1859 = vmatpush1.bf16.msra.mxu0 %v4416_v40  ;;  %1945 = vmatpush1.bf16.msra.mxu1 %v4421_v24  ;;  %v4452_v40 = vld [vmem:[%s5138_s2 + $0x5c4] ss:$16 sps:$4 sm:$0xff]   ;;  %v4457_v24 = vld [vmem:[%s5138_s2 + $0x5cc] ss:$16 sps:$4 sm:$0xff]  }
  0xbc   :  { %1860 = vmatprep.subr.bf16.mxu0 %v4428_v25  ;;  %1946 = vmatprep.subr.bf16.mxu1 %v4433_v26  ;;  %5274 = vst [vmem:[#allocation48_spill] sm:$0xff] %v4452_v40  ;;  %5275 = vst [vmem:[#allocation49_spill] sm:$0xff] %v4457_v24  ;;  %v4464_v25 = vld [vmem:[%s5138_s2 + $0x5c0] ss:$16 sps:$4 sm:$0xff]   ;;  %v4469_v26 = vld [vmem:[%s5138_s2 + $0x5c8] ss:$16 sps:$4 sm:$0xff]  }
  0xbd   :  { %5276 = vst [vmem:[#allocation50_spill] sm:$0xff] %v4464_v25  ;;  %5277 = vst [vmem:[#allocation51_spill] sm:$0xff] %v4469_v26 }
  0xbf   :  { %1861 = vmatpush1.bf16.msra.mxu0 %v4440_v29  ;;  %1947 = vmatpush1.bf16.msra.mxu1 %v4445_v28  ;;  %v4476_v29 = vld [vmem:[%s5138_s2 + $0x5e4] ss:$16 sps:$4 sm:$0xff]   ;;  %v4481_v28 = vld [vmem:[%s5138_s2 + $0x5ec] ss:$16 sps:$4 sm:$0xff]  }
  0xc0   :  { %1862 = vmatprep.subr.bf16.mxu0 %v4452_v40  ;;  %1948 = vmatprep.subr.bf16.mxu1 %v4457_v24  ;;  %5278 = vst [vmem:[#allocation52_spill] sm:$0xff] %v4476_v29  ;;  %5279 = vst [vmem:[#allocation53_spill] sm:$0xff] %v4481_v28  ;;  %v4488_v40 = vld [vmem:[%s5138_s2 + $0x5e0] ss:$16 sps:$4 sm:$0xff]   ;;  %v4493_v24 = vld [vmem:[%s5138_s2 + $0x5e8] ss:$16 sps:$4 sm:$0xff]  }
  0xc1   :  { %5280 = vst [vmem:[#allocation54_spill] sm:$0xff] %v4488_v40  ;;  %5281 = vst [vmem:[#allocation55_spill] sm:$0xff] %v4493_v24 }
  0xc3   :  { %1863 = vmatpush1.bf16.msra.mxu0 %v4464_v25  ;;  %1949 = vmatpush1.bf16.msra.mxu1 %v4469_v26  ;;  %v4500_v25 = vld [vmem:[%s5138_s2 + $0x604] ss:$16 sps:$4 sm:$0xff]   ;;  %v4505_v26 = vld [vmem:[%s5138_s2 + $0x60c] ss:$16 sps:$4 sm:$0xff]  }
  0xc4   :  { %1864 = vmatprep.subr.bf16.mxu0 %v4476_v29  ;;  %1950 = vmatprep.subr.bf16.mxu1 %v4481_v28  ;;  %5282 = vst [vmem:[#allocation56_spill] sm:$0xff] %v4500_v25  ;;  %5283 = vst [vmem:[#allocation57_spill] sm:$0xff] %v4505_v26  ;;  %v4512_v29 = vld [vmem:[%s5138_s2 + $0x600] ss:$16 sps:$4 sm:$0xff]   ;;  %v4517_v28 = vld [vmem:[%s5138_s2 + $0x608] ss:$16 sps:$4 sm:$0xff]  }
  0xc5   :  { %5284 = vst [vmem:[#allocation58_spill] sm:$0xff] %v4512_v29  ;;  %5285 = vst [vmem:[#allocation59_spill] sm:$0xff] %v4517_v28 }
  0xc7   :  { %1865 = vmatpush1.bf16.msra.mxu0 %v4488_v40  ;;  %1951 = vmatpush1.bf16.msra.mxu1 %v4493_v24  ;;  %v4524_v40 = vld [vmem:[%s5138_s2 + $0x624] ss:$16 sps:$4 sm:$0xff]   ;;  %v4529_v24 = vld [vmem:[%s5138_s2 + $0x62c] ss:$16 sps:$4 sm:$0xff]  }
  0xc8   :  { %1866 = vmatprep.subr.bf16.mxu0 %v4500_v25  ;;  %1952 = vmatprep.subr.bf16.mxu1 %v4505_v26  ;;  %5286 = vst [vmem:[#allocation60_spill] sm:$0xff] %v4524_v40  ;;  %5287 = vst [vmem:[#allocation61_spill] sm:$0xff] %v4529_v24  ;;  %v4536_v25 = vld [vmem:[%s5138_s2 + $0x620] ss:$16 sps:$4 sm:$0xff]   ;;  %v4541_v26 = vld [vmem:[%s5138_s2 + $0x628] ss:$16 sps:$4 sm:$0xff]  }
  0xc9   :  { %5288 = vst [vmem:[#allocation62_spill] sm:$0xff] %v4536_v25  ;;  %5289 = vst [vmem:[#allocation63_spill] sm:$0xff] %v4541_v26 }
  0xcb   :  { %1867 = vmatpush1.bf16.msra.mxu0 %v4512_v29  ;;  %1953 = vmatpush1.bf16.msra.mxu1 %v4517_v28  ;;  %v4548_v29 = vld [vmem:[%s5138_s2 + $0x644] ss:$16 sps:$4 sm:$0xff]   ;;  %v4553_v28 = vld [vmem:[%s5138_s2 + $0x64c] ss:$16 sps:$4 sm:$0xff]  }
  0xcc   :  { %1868 = vmatprep.subr.bf16.mxu0 %v4524_v40  ;;  %1954 = vmatprep.subr.bf16.mxu1 %v4529_v24  ;;  %5290 = vst [vmem:[#allocation64_spill] sm:$0xff] %v4548_v29  ;;  %5291 = vst [vmem:[#allocation65_spill] sm:$0xff] %v4553_v28  ;;  %v4560_v40 = vld [vmem:[%s5138_s2 + $0x640] ss:$16 sps:$4 sm:$0xff]   ;;  %v4565_v24 = vld [vmem:[%s5138_s2 + $0x648] ss:$16 sps:$4 sm:$0xff]  }
  0xcd   :  { %5292 = vst [vmem:[#allocation66_spill] sm:$0xff] %v4560_v40  ;;  %5293 = vst [vmem:[#allocation67_spill] sm:$0xff] %v4565_v24 }
  0xcf   :  { %1869 = vmatpush1.bf16.msra.mxu0 %v4536_v25  ;;  %1955 = vmatpush1.bf16.msra.mxu1 %v4541_v26  ;;  %v4572_v25 = vld [vmem:[%s5138_s2 + $0x664] ss:$16 sps:$4 sm:$0xff]   ;;  %v4577_v26 = vld [vmem:[%s5138_s2 + $0x66c] ss:$16 sps:$4 sm:$0xff]  }
  0xd0   :  { %1870 = vmatprep.subr.bf16.mxu0 %v4548_v29  ;;  %1956 = vmatprep.subr.bf16.mxu1 %v4553_v28  ;;  %5294 = vst [vmem:[#allocation68_spill] sm:$0xff] %v4572_v25  ;;  %5295 = vst [vmem:[#allocation69_spill] sm:$0xff] %v4577_v26  ;;  %v4584_v29 = vld [vmem:[%s5138_s2 + $0x660] ss:$16 sps:$4 sm:$0xff]   ;;  %v4589_v28 = vld [vmem:[%s5138_s2 + $0x668] ss:$16 sps:$4 sm:$0xff]  }
  0xd1   :  { %5296 = vst [vmem:[#allocation70_spill] sm:$0xff] %v4584_v29  ;;  %5297 = vst [vmem:[#allocation71_spill] sm:$0xff] %v4589_v28 }
  0xd3   :  { %1871 = vmatpush1.bf16.msra.mxu0 %v4560_v40  ;;  %1957 = vmatpush1.bf16.msra.mxu1 %v4565_v24  ;;  %v4596_v40 = vld [vmem:[%s5138_s2 + $0x684] ss:$16 sps:$4 sm:$0xff]   ;;  %v4601_v24 = vld [vmem:[%s5138_s2 + $0x68c] ss:$16 sps:$4 sm:$0xff]  }
  0xd4   :  { %1872 = vmatprep.subr.bf16.mxu0 %v4572_v25  ;;  %1958 = vmatprep.subr.bf16.mxu1 %v4577_v26  ;;  %5298 = vst [vmem:[#allocation72_spill] sm:$0xff] %v4596_v40  ;;  %5299 = vst [vmem:[#allocation73_spill] sm:$0xff] %v4601_v24  ;;  %v4612_v26 = vld [vmem:[%s5138_s2 + $0x680] ss:$16 sps:$4 sm:$0xff]   ;;  %v4617_v25 = vld [vmem:[%s5138_s2 + $0x688] ss:$16 sps:$4 sm:$0xff]  }
  0xd5   :  { %5300 = vst [vmem:[#allocation74_spill] sm:$0xff] %v4612_v26  ;;  %5301 = vst [vmem:[#allocation75_spill] sm:$0xff] %v4617_v25 }
  0xd7   :  { %1873 = vmatpush1.bf16.msra.mxu0 %v4584_v29  ;;  %1959 = vmatpush1.bf16.msra.mxu1 %v4589_v28 }
  0xd8   :  { %1885 = vmatprep.subr.bf16.mxu0 %v4596_v40  ;;  %1971 = vmatprep.subr.bf16.mxu1 %v4601_v24  ;;  %v4638_v24 = vld [vmem:[%s5138_s2 + $0x6a0] ss:$16 sps:$4 sm:$0xff]   ;;  %v4643_v40 = vld [vmem:[%s5138_s2 + $0x6a8] ss:$16 sps:$4 sm:$0xff]  }
  0xd9   :  { %5304 = vst [vmem:[#allocation78_spill] sm:$0xff] %v4638_v24  ;;  %5305 = vst [vmem:[#allocation79_spill] sm:$0xff] %v4643_v40 }
  0xda   :  { %1875 = vmatmul.mubr.bf16.vlgmr.msra.gmra.mrb[0].mxu0 %v4605_v27  ;;  %1961 = vmatmul.mubr.bf16.vlgmr.msra.gmra.mrb[0].mxu1 %v4605_v27 }
  0xdb   :  { %1886 = vmatpush1.bf16.msra.mxu0 %v4612_v26  ;;  %1972 = vmatpush1.bf16.msra.mxu1 %v4617_v25  ;;  %v3413_v25 = vld [vmem:[%s5138_s2 + $0x244] ss:$16 sps:$4 sm:$0xff]   ;;  %v3414_v26 = vld [vmem:[%s5138_s2 + $0x24c] ss:$16 sps:$4 sm:$0xff]  }
  0xdc   :  { %1887 = vmatprep.subr.bf16.mxu0 %v4624_v14  ;;  %1973 = vmatprep.subr.bf16.mxu1 %v4629_v32  ;;  %v3500_v32 = vld [vmem:[%s5138_s2 + $0x6c] ss:$16 sps:$4 sm:$0xff]  }
  0xdd   :  { %1917 = vmatprep.mubr.bf16.mxu0 %v5236_v36  ;;  %2003 = vmatprep.mubr.bf16.mxu1 %v5236_v36 }
  0xdf   :  { %1888 = vmatpush1.bf16.msra.mxu0 %v4638_v24  ;;  %1974 = vmatpush1.bf16.msra.mxu1 %v4643_v40  ;;  %v3415_v40 = vld [vmem:[%s5138_s2 + $0x240] ss:$16 sps:$4 sm:$0xff]   ;;  %v3418_v24 = vld [vmem:[%s5138_s2 + $0x26c] ss:$16 sps:$4 sm:$0xff]  }
  0xe0   :  { %2022 = vmatprep.subr.bf16.mxu0 %v3413_v25  ;;  %2108 = vmatprep.subr.bf16.mxu1 %v3414_v26  ;;  %v3416_v25 = vld [vmem:[%s5138_s2 + $0x248] ss:$16 sps:$4 sm:$0xff]   ;;  %v3417_v26 = vld [vmem:[%s5138_s2 + $0x264] ss:$16 sps:$4 sm:$0xff]  }
  0xe6   :  { %2987 = vmatmul.mubr.msk.bf16.vlgmr.msra.gmra.mrb[0].mxu0 %vm742_vm0, %v4239_v41  ;;  %2988 = vmatmul.mubr.msk.bf16.vlgmr.msra.gmra.mrb[0].mxu1 %vm742_vm0, %v4239_v41 }
  0xe7   :  { %2023 = vmatpush1.bf16.msra.mxu0 %v3415_v40  ;;  %2109 = vmatpush1.bf16.msra.mxu1 %v3416_v25  ;;  %v3419_v40 = vld [vmem:[%s5138_s2 + $0x260] ss:$16 sps:$4 sm:$0xff]   ;;  %v3420_v25 = vld [vmem:[%s5138_s2 + $0x268] ss:$16 sps:$4 sm:$0xff]  }
  0xe8   :  { %2024 = vmatprep.subr.bf16.mxu0 %v3417_v26  ;;  %2110 = vmatprep.subr.bf16.mxu1 %v3418_v24  ;;  %v3421_v26 = vld [vmem:[%s5138_s2 + $0x284] ss:$16 sps:$4 sm:$0xff]   ;;  %v3422_v24 = vld [vmem:[%s5138_s2 + $0x28c] ss:$16 sps:$4 sm:$0xff]  }
  0xe9   :  { %2054 = vmatprep.mubr.bf16.mxu0 %v4233_v37  ;;  %2140 = vmatprep.mubr.bf16.mxu1 %v4233_v37  ;;  %v3423_v37 = vld [vmem:[%s5138_s2 + $0x280] ss:$16 sps:$4 sm:$0xff]  }
  0xeb   :  { %2025 = vmatpush1.bf16.msra.mxu0 %v3419_v40  ;;  %2111 = vmatpush1.bf16.msra.mxu1 %v3420_v25  ;;  %v3424_v40 = vld [vmem:[%s5138_s2 + $0x288] ss:$16 sps:$4 sm:$0xff]   ;;  %v3425_v25 = vld [vmem:[%s5138_s2 + $0x2a4] ss:$16 sps:$4 sm:$0xff]  }
  0xec   :  { %2026 = vmatprep.subr.bf16.mxu0 %v3421_v26  ;;  %2112 = vmatprep.subr.bf16.mxu1 %v3422_v24  ;;  %v3426_v26 = vld [vmem:[%s5138_s2 + $0x2ac] ss:$16 sps:$4 sm:$0xff]   ;;  %v3427_v24 = vld [vmem:[%s5138_s2 + $0x2a0] ss:$16 sps:$4 sm:$0xff]  }
  0xef   :  { %2027 = vmatpush1.bf16.msra.mxu0 %v3423_v37  ;;  %2113 = vmatpush1.bf16.msra.mxu1 %v3424_v40  ;;  %v3428_v37 = vld [vmem:[%s5138_s2 + $0x2a8] ss:$16 sps:$4 sm:$0xff]   ;;  %v3429_v40 = vld [vmem:[%s5138_s2 + $0x2c4] ss:$16 sps:$4 sm:$0xff]  }
  0xf0   :  { %2028 = vmatprep.subr.bf16.mxu0 %v3425_v25  ;;  %2114 = vmatprep.subr.bf16.mxu1 %v3426_v26  ;;  %v3430_v25 = vld [vmem:[%s5138_s2 + $0x2cc] ss:$16 sps:$4 sm:$0xff]   ;;  %v3431_v26 = vld [vmem:[%s5138_s2 + $0x2c0] ss:$16 sps:$4 sm:$0xff]  }
  0xf3   :  { %2029 = vmatpush1.bf16.msra.mxu0 %v3427_v24  ;;  %2115 = vmatpush1.bf16.msra.mxu1 %v3428_v37  ;;  %v3432_v24 = vld [vmem:[%s5138_s2 + $0x2c8] ss:$16 sps:$4 sm:$0xff]   ;;  %v3433_v37 = vld [vmem:[%s5138_s2 + $0x2e4] ss:$16 sps:$4 sm:$0xff]  }
  0xf4   :  { %2030 = vmatprep.subr.bf16.mxu0 %v3429_v40  ;;  %2116 = vmatprep.subr.bf16.mxu1 %v3430_v25  ;;  %v3434_v40 = vld [vmem:[%s5138_s2 + $0x2ec] ss:$16 sps:$4 sm:$0xff]   ;;  %v3435_v25 = vld [vmem:[%s5138_s2 + $0x2e0] ss:$16 sps:$4 sm:$0xff]  }
  0xf7   :  { %2031 = vmatpush1.bf16.msra.mxu0 %v3431_v26  ;;  %2117 = vmatpush1.bf16.msra.mxu1 %v3432_v24  ;;  %v3436_v26 = vld [vmem:[%s5138_s2 + $0x2e8] ss:$16 sps:$4 sm:$0xff]   ;;  %v3437_v24 = vld [vmem:[%s5138_s2 + $0x304] ss:$16 sps:$4 sm:$0xff]  }
  0xf8   :  { %2032 = vmatprep.subr.bf16.mxu0 %v3433_v37  ;;  %2118 = vmatprep.subr.bf16.mxu1 %v3434_v40  ;;  %v3438_v37 = vld [vmem:[%s5138_s2 + $0x30c] ss:$16 sps:$4 sm:$0xff]   ;;  %v3439_v40 = vld [vmem:[%s5138_s2 + $0x300] ss:$16 sps:$4 sm:$0xff]  }
  0xfb   :  { %2033 = vmatpush1.bf16.msra.mxu0 %v3435_v25  ;;  %2119 = vmatpush1.bf16.msra.mxu1 %v3436_v26  ;;  %v3440_v25 = vld [vmem:[%s5138_s2 + $0x308] ss:$16 sps:$4 sm:$0xff]   ;;  %v3441_v26 = vld [vmem:[%s5138_s2 + $0x324] ss:$16 sps:$4 sm:$0xff]  }
  0xfc   :  { %2034 = vmatprep.subr.bf16.mxu0 %v3437_v24  ;;  %2120 = vmatprep.subr.bf16.mxu1 %v3438_v37  ;;  %v3442_v24 = vld [vmem:[%s5138_s2 + $0x32c] ss:$16 sps:$4 sm:$0xff]   ;;  %v3443_v37 = vld [vmem:[%s5138_s2 + $0x320] ss:$16 sps:$4 sm:$0xff]  }
  0xff   :  { %2035 = vmatpush1.bf16.msra.mxu0 %v3439_v40  ;;  %2121 = vmatpush1.bf16.msra.mxu1 %v3440_v25  ;;  %v3444_v40 = vld [vmem:[%s5138_s2 + $0x328] ss:$16 sps:$4 sm:$0xff]   ;;  %v3445_v25 = vld [vmem:[%s5138_s2 + $0x344] ss:$16 sps:$4 sm:$0xff]  }
 0x100   :  { %2036 = vmatprep.subr.bf16.mxu0 %v3441_v26  ;;  %2122 = vmatprep.subr.bf16.mxu1 %v3442_v24  ;;  %v3446_v26 = vld [vmem:[%s5138_s2 + $0x34c] ss:$16 sps:$4 sm:$0xff]   ;;  %v3447_v24 = vld [vmem:[%s5138_s2 + $0x340] ss:$16 sps:$4 sm:$0xff]  }
 0x103   :  { %2037 = vmatpush1.bf16.msra.mxu0 %v3443_v37  ;;  %2123 = vmatpush1.bf16.msra.mxu1 %v3444_v40  ;;  %v3448_v37 = vld [vmem:[%s5138_s2 + $0x348] ss:$16 sps:$4 sm:$0xff]   ;;  %v3449_v40 = vld [vmem:[%s5138_s2 + $0x364] ss:$16 sps:$4 sm:$0xff]  }
 0x104   :  { %2038 = vmatprep.subr.bf16.mxu0 %v3445_v25  ;;  %2124 = vmatprep.subr.bf16.mxu1 %v3446_v26  ;;  %v3450_v25 = vld [vmem:[%s5138_s2 + $0x36c] ss:$16 sps:$4 sm:$0xff]   ;;  %v3451_v26 = vld [vmem:[%s5138_s2 + $0x360] ss:$16 sps:$4 sm:$0xff]  }
 0x107   :  { %2039 = vmatpush1.bf16.msra.mxu0 %v3447_v24  ;;  %2125 = vmatpush1.bf16.msra.mxu1 %v3448_v37  ;;  %v3452_v24 = vld [vmem:[%s5138_s2 + $0x368] ss:$16 sps:$4 sm:$0xff]   ;;  %v3453_v37 = vld [vmem:[%s5138_s2 + $0x384] ss:$16 sps:$4 sm:$0xff]  }
 0x108   :  { %2040 = vmatprep.subr.bf16.mxu0 %v3449_v40  ;;  %2126 = vmatprep.subr.bf16.mxu1 %v3450_v25  ;;  %v3454_v40 = vld [vmem:[%s5138_s2 + $0x38c] ss:$16 sps:$4 sm:$0xff]   ;;  %v3455_v25 = vld [vmem:[%s5138_s2 + $0x380] ss:$16 sps:$4 sm:$0xff]  }
 0x10b   :  { %2041 = vmatpush1.bf16.msra.mxu0 %v3451_v26  ;;  %2127 = vmatpush1.bf16.msra.mxu1 %v3452_v24  ;;  %v3456_v26 = vld [vmem:[%s5138_s2 + $0x388] ss:$16 sps:$4 sm:$0xff]   ;;  %v3457_v24 = vld [vmem:[%s5138_s2 + $0x3a4] ss:$16 sps:$4 sm:$0xff]  }
 0x10c   :  { %2042 = vmatprep.subr.bf16.mxu0 %v3453_v37  ;;  %2128 = vmatprep.subr.bf16.mxu1 %v3454_v40  ;;  %v3458_v37 = vld [vmem:[%s5138_s2 + $0x3ac] ss:$16 sps:$4 sm:$0xff]   ;;  %v3459_v40 = vld [vmem:[%s5138_s2 + $0x3a0] ss:$16 sps:$4 sm:$0xff]  }
 0x10f   :  { %2043 = vmatpush1.bf16.msra.mxu0 %v3455_v25  ;;  %2129 = vmatpush1.bf16.msra.mxu1 %v3456_v26  ;;  %v3460_v25 = vld [vmem:[%s5138_s2 + $0x3a8] ss:$16 sps:$4 sm:$0xff]   ;;  %v3461_v26 = vld [vmem:[%s5138_s2 + $0x3c4] ss:$16 sps:$4 sm:$0xff]  }
 0x110   :  { %2044 = vmatprep.subr.bf16.mxu0 %v3457_v24  ;;  %2130 = vmatprep.subr.bf16.mxu1 %v3458_v37  ;;  %v3462_v24 = vld [vmem:[%s5138_s2 + $0x3cc] ss:$16 sps:$4 sm:$0xff]   ;;  %v3463_v37 = vld [vmem:[%s5138_s2 + $0x3c0] ss:$16 sps:$4 sm:$0xff]  }
 0x113   :  { %2045 = vmatpush1.bf16.msra.mxu0 %v3459_v40  ;;  %2131 = vmatpush1.bf16.msra.mxu1 %v3460_v25  ;;  %v3464_v40 = vld [vmem:[%s5138_s2 + $0x3c8] ss:$16 sps:$4 sm:$0xff]   ;;  %v3465_v25 = vld [vmem:[%s5138_s2 + $0x3e4] ss:$16 sps:$4 sm:$0xff]  }
 0x114   :  { %2046 = vmatprep.subr.bf16.mxu0 %v3461_v26  ;;  %2132 = vmatprep.subr.bf16.mxu1 %v3462_v24  ;;  %v3466_v26 = vld [vmem:[%s5138_s2 + $0x3ec] ss:$16 sps:$4 sm:$0xff]   ;;  %v3467_v24 = vld [vmem:[%s5138_s2 + $0x3e0] ss:$16 sps:$4 sm:$0xff]  }
 0x117   :  { %2047 = vmatpush1.bf16.msra.mxu0 %v3463_v37  ;;  %2133 = vmatpush1.bf16.msra.mxu1 %v3464_v40  ;;  %v3468_v37 = vld [vmem:[%s5138_s2 + $0x3e8] ss:$16 sps:$4 sm:$0xff]   ;;  %v3469_v40 = vld [vmem:[%s5138_s2 + $0x404] ss:$16 sps:$4 sm:$0xff]  }
 0x118   :  { %2048 = vmatprep.subr.bf16.mxu0 %v3465_v25  ;;  %2134 = vmatprep.subr.bf16.mxu1 %v3466_v26  ;;  %v3470_v25 = vld [vmem:[%s5138_s2 + $0x40c] ss:$16 sps:$4 sm:$0xff]   ;;  %v3471_v26 = vld [vmem:[%s5138_s2 + $0x400] ss:$16 sps:$4 sm:$0xff]  }
 0x11b   :  { %2049 = vmatpush1.bf16.msra.mxu0 %v3467_v24  ;;  %2135 = vmatpush1.bf16.msra.mxu1 %v3468_v37  ;;  %v3472_v24 = vld [vmem:[%s5138_s2 + $0x408] ss:$16 sps:$4 sm:$0xff]   ;;  %v3473_v37 = vld [vmem:[%s5138_s2 + $0x424] ss:$16 sps:$4 sm:$0xff]  }
 0x11c   :  { %2050 = vmatprep.subr.bf16.mxu0 %v3469_v40  ;;  %2136 = vmatprep.subr.bf16.mxu1 %v3470_v25  ;;  %v3474_v40 = vld [vmem:[%s5138_s2 + $0x42c] ss:$16 sps:$4 sm:$0xff]   ;;  %v3475_v25 = vld [vmem:[%s5138_s2 + $0x420] ss:$16 sps:$4 sm:$0xff]  }
 0x11f   :  { %2051 = vmatpush1.bf16.msra.mxu0 %v3471_v26  ;;  %2137 = vmatpush1.bf16.msra.mxu1 %v3472_v24  ;;  %v3476_v26 = vld [vmem:[%s5138_s2 + $0x428] ss:$16 sps:$4 sm:$0xff]   ;;  %v3477_v24 = vld [vmem:[%s5138_s2 + $0x444] ss:$16 sps:$4 sm:$0xff]  }
 0x120   :  { %2052 = vmatprep.subr.bf16.mxu0 %v3473_v37  ;;  %2138 = vmatprep.subr.bf16.mxu1 %v3474_v40  ;;  %v3478_v37 = vld [vmem:[%s5138_s2 + $0x44c] ss:$16 sps:$4 sm:$0xff]   ;;  %v3479_v40 = vld [vmem:[%s5138_s2 + $0x440] ss:$16 sps:$4 sm:$0xff]  }
 0x123   :  { %2053 = vmatpush1.bf16.msra.mxu0 %v3475_v25  ;;  %2139 = vmatpush1.bf16.msra.mxu1 %v3476_v26  ;;  %v3480_v25 = vld [vmem:[%s5138_s2 + $0x448] ss:$16 sps:$4 sm:$0xff]   ;;  %v3481_v26 = vld [vmem:[%s5138_s2 + $0x464] ss:$16 sps:$4 sm:$0xff]  }
 0x124   :  { %2065 = vmatprep.subr.bf16.mxu0 %v3477_v24  ;;  %2151 = vmatprep.subr.bf16.mxu1 %v3478_v37  ;;  %v3482_v24 = vld [vmem:[%s5138_s2 + $0x46c] ss:$16 sps:$4 sm:$0xff]   ;;  %v3484_v37 = vld [vmem:[%s5138_s2 + $0x468] ss:$16 sps:$4 sm:$0xff]  }
 0x126   :  { %2055 = vmatmul.mubr.bf16.vlgmr.msra.gmra.mrb[4].mxu0 %v4605_v27  ;;  %2141 = vmatmul.mubr.bf16.vlgmr.msra.gmra.mrb[4].mxu1 %v4605_v27  ;;  %v3483_v27 = vld [vmem:[%s5138_s2 + $0x460] ss:$16 sps:$4 sm:$0xff]  }
 0x127   :  { %2066 = vmatpush1.bf16.msra.mxu0 %v3479_v40  ;;  %2152 = vmatpush1.bf16.msra.mxu1 %v3480_v25  ;;  %v3485_v40 = vld [vmem:[%s5138_s2 + $0x4] ss:$16 sps:$4 sm:$0xff]   ;;  %v3486_v25 = vld [vmem:[%s5138_s2 + $0xc] ss:$16 sps:$4 sm:$0xff]  }
 0x128   :  { %2067 = vmatprep.subr.bf16.mxu0 %v3481_v26  ;;  %2153 = vmatprep.subr.bf16.mxu1 %v3482_v24  ;;  %v3487_v26 = vld [vmem:[%s5138_s2] ss:$16 sps:$4 sm:$0xff]   ;;  %v3488_v24 = vld [vmem:[%s5138_s2 + $0x8] ss:$16 sps:$4 sm:$0xff]  }
 0x129   :  { %2097 = vmatprep.mubr.bf16.mxu0 %v5236_v36  ;;  %2183 = vmatprep.mubr.bf16.mxu1 %v5236_v36 }
 0x12b   :  { %2068 = vmatpush1.bf16.msra.mxu0 %v3483_v27  ;;  %2154 = vmatpush1.bf16.msra.mxu1 %v3484_v37  ;;  %v3489_v27 = vld [vmem:[%s5138_s2 + $0x24] ss:$16 sps:$4 sm:$0xff]   ;;  %v3490_v37 = vld [vmem:[%s5138_s2 + $0x2c] ss:$16 sps:$4 sm:$0xff]  }
 0x12c   :  { %2194 = vmatprep.subr.bf16.mxu0 %v3485_v40  ;;  %2280 = vmatprep.subr.bf16.mxu1 %v3486_v25  ;;  %v3492_v40 = vld [vmem:[%s5138_s2 + $0x28] ss:$16 sps:$4 sm:$0xff]   ;;  %v3493_v25 = vld [vmem:[%s5138_s2 + $0x44] ss:$16 sps:$4 sm:$0xff]  }
 0x132   :  { %2989 = vmatmul.mubr.msk.bf16.vlgmr.msra.gmra.mrb[4].mxu0 %vm742_vm0, %v4239_v41  ;;  %2990 = vmatmul.mubr.msk.bf16.vlgmr.msra.gmra.mrb[4].mxu1 %vm742_vm0, %v4239_v41  ;;  %v3491_v41 = vld [vmem:[%s5138_s2 + $0x20] ss:$16 sps:$4 sm:$0xff]  }
 0x133   :  { %2195 = vmatpush1.bf16.msra.mxu0 %v3487_v26  ;;  %2281 = vmatpush1.bf16.msra.mxu1 %v3488_v24  ;;  %v3494_v26 = vld [vmem:[%s5138_s2 + $0x4c] ss:$16 sps:$4 sm:$0xff]  }
 0x134   :  { %2196 = vmatprep.subr.bf16.mxu0 %v3489_v27  ;;  %2282 = vmatprep.subr.bf16.mxu1 %v3490_v37  ;;  %v3496_v37 = vld [vmem:[%s5139_s1 + $0x20] sm:$0xf] }
 0x135   :  { %2226 = vmatprep.mubr.bf16.mxu0 %v3688_v50  ;;  %2312 = vmatprep.mubr.bf16.mxu1 %v3688_v50  ;;  %v3495_v50 = vld [vmem:[%s5139_s1 + $0x8] sm:$0xf] }
 0x136   :  { %v108_v24 = vshrl.u32 %v3495_v50, 16  ;;  %v111_v27 = vshll.u32 %v3495_v50, 16  ;;  %v3499_v50 = vld [vmem:[%s5138_s2 + $0x64] ss:$16 sps:$4 sm:$0xff]  }
 0x137   :  { %2197 = vmatpush1.bf16.msra.mxu0 %v3491_v41  ;;  %2283 = vmatpush1.bf16.msra.mxu1 %v3492_v40  ;;  %v136_v41 = vshrl.u32 %v3496_v37, 16  ;;  %v139_v40 = vshll.u32 %v3496_v37, 16 }
 0x138   :  { %2198 = vmatprep.subr.bf16.mxu0 %v3493_v25  ;;  %2284 = vmatprep.subr.bf16.mxu1 %v3494_v26  ;;  %v3497_v25 = vld [vmem:[%s5138_s2 + $0x40] ss:$16 sps:$4 sm:$0xff]   ;;  %v3498_v26 = vld [vmem:[%s5138_s2 + $0x48] ss:$16 sps:$4 sm:$0xff]   ;;  %v110_v37 = vrot.slane %v108_v24, 4  ;;  %v113_v14 = vrot.slane %v111_v27, 5 }
 0x139   :  { %v138_v28 = vrot.slane %v136_v41, 4  ;;  %v141_v29 = vrot.slane %v139_v40, 5  ;;  %v90_v24 = vld [vmem:[%s5139_s1 + $0x14] sm:$0x1]  ;;  %v92_v27 = vld [vmem:[%s5139_s1 + $0x2c] sm:$0x1] }
 0x13a   :  { %v3505_v41 = vld [vmem:[%s5138_s2 + $0x80] ss:$16 sps:$4 sm:$0xff]   ;;  %v3506_v40 = vld [vmem:[%s5138_s2 + $0x88] ss:$16 sps:$4 sm:$0xff]  }
 0x13b   :  { %2199 = vmatpush1.bf16.msra.mxu0 %v3497_v25  ;;  %2285 = vmatpush1.bf16.msra.mxu1 %v3498_v26  ;;  %v3501_v25 = vld [vmem:[%s5138_s2 + $0x60] ss:$16 sps:$4 sm:$0xff]   ;;  %v3502_v26 = vld [vmem:[%s5138_s2 + $0x68] ss:$16 sps:$4 sm:$0xff]  }
 0x13c   :  { %2200 = vmatprep.subr.bf16.mxu0 %v3499_v50  ;;  %2286 = vmatprep.subr.bf16.mxu1 %v3500_v32  ;;  %v3503_v50 = vld [vmem:[%s5138_s2 + $0x84] ss:$16 sps:$4 sm:$0xff]   ;;  %v3504_v32 = vld [vmem:[%s5138_s2 + $0x8c] ss:$16 sps:$4 sm:$0xff]  }
 0x13f   :  { %2201 = vmatpush1.bf16.msra.mxu0 %v3501_v25  ;;  %2287 = vmatpush1.bf16.msra.mxu1 %v3502_v26  ;;  %v114_v25 = vor.u32 %v113_v14, %v110_v37  ;;  %v117_v26 = vshll.u32 %v90_v24, 16  ;;  %v3509_v14 = vld [vmem:[%s5138_s2 + $0xa0] ss:$16 sps:$4 sm:$0xff]   ;;  %v5333_v37 = vld [vmem:[#allocation29_spill] sm:$0xff] }
 0x140   :  { %2202 = vmatprep.subr.bf16.mxu0 %v3503_v50  ;;  %2288 = vmatprep.subr.bf16.mxu1 %v3504_v32  ;;  %v142_v50 = vor.u32 %v141_v29, %v138_v28  ;;  %v145_v32 = vshll.u32 %v92_v27, 16  ;;  %v5332_v28 = vld [vmem:[#allocation28_spill] sm:$0xff]  ;;  %v5334_v24 = vld [vmem:[#allocation30_spill] sm:$0xff]  ;;  %v5335_v27 = vld [vmem:[#allocation31_spill] sm:$0xff] }
 0x141   :  { %v119_v39 = vrot.slane %v117_v26, 5  ;;  %v5338_v26 = vld [vmem:[#allocation34_spill] sm:$0xff] }
 0x142   :  { %v143_v5 = vrot.slane %v142_v50, 4  ;;  %v147_v38 = vrot.slane %v145_v32, 5  ;;  %v5339_v50 = vld [vmem:[#allocation35_spill] sm:$0xff]  ;;  %v5340_v32 = vld [vmem:[#allocation36_spill] sm:$0xff] }
 0x143   :  { %2203 = vmatpush1.bf16.msra.mxu0 %v3505_v41  ;;  %2289 = vmatpush1.bf16.msra.mxu1 %v3506_v40  ;;  %v115_v41 = vrot.slane %v114_v25, 4  ;;  %v5336_v40 = vld [vmem:[#allocation32_spill] sm:$0xff]  ;;  %v5337_v25 = vld [vmem:[#allocation33_spill] sm:$0xff] }
 0x144   :  { %2204 = vmatprep.subr.bf16.mxu0 %v3507_v22  ;;  %2290 = vmatprep.subr.bf16.mxu1 %v3508_v21  ;;  %v148_v22 = vsel %vm4189_vm3, %v143_v5, %v147_v38  ;;  %v5329_v38 = vld [vmem:[#allocation25_spill] sm:$0xff]  ;;  %v5330_v5 = vld [vmem:[#allocation26_spill] sm:$0xff] }
 0x145   :  { %v120_v29 = vsel %vm4189_vm3, %v115_v41, %v119_v39  ;;  %v5331_v39 = vld [vmem:[#allocation27_spill] sm:$0xff]  ;;  %v5341_v41 = vld [vmem:[#allocation37_spill] sm:$0xff] }
 0x146   :  { %v4971_v21 = vcombine.low %v120_v29, %v148_v22  ;;  %v5343_v29 = vld [vmem:[#allocation39_spill] sm:$0xff]  ;;  %v5344_v22 = vld [vmem:[#allocation40_spill] sm:$0xff] }
 0x147   :  { %2205 = vmatpush1.bf16.msra.mxu0 %v3509_v14  ;;  %2291 = vmatpush1.bf16.msra.mxu1 %v3866_v42  ;;  %v3510_v42 = vld [vmem:[%s5139_s1] sm:$0xff] }
 0x148   :  { %2206 = vmatprep.subr.bf16.mxu0 %v3871_v43  ;;  %2292 = vmatprep.subr.bf16.mxu1 %v3876_v44  ;;  %v94_v43 = vshrl.u32 %v3510_v42, 16  ;;  %v97_v44 = vshll.u32 %v3510_v42, 16  ;;  %v5342_v14 = vld [vmem:[#allocation38_spill] sm:$0xff]  ;;  %v5345_v42 = vld [vmem:[#allocation41_spill] sm:$0xff] }
 0x14b   :  { %2207 = vmatpush1.bf16.msra.mxu0 %v3881_v45  ;;  %2293 = vmatpush1.bf16.msra.mxu1 %v3887_v46  ;;  %v3511_v45 = vld [vmem:[%s5139_s1 + $0x18] sm:$0xff] }
 0x14c   :  { %2208 = vmatprep.subr.bf16.mxu0 %v3894_v47  ;;  %2294 = vmatprep.subr.bf16.mxu1 %v3899_v48  ;;  %v122_v46 = vshrl.u32 %v3511_v45, 16  ;;  %v125_v47 = vshll.u32 %v3511_v45, 16  ;;  %v96_v48 = vrot.slane %v94_v43, 4  ;;  %v5346_v43 = vld [vmem:[#allocation42_spill] sm:$0xff]  ;;  %v5348_v45 = vld [vmem:[#allocation44_spill] sm:$0xff] }
 0x14f   :  { %2209 = vmatpush1.bf16.msra.mxu0 %v3904_v49  ;;  %2295 = vmatpush1.bf16.msra.mxu1 %v3909_v51  ;;  %v99_v49 = vrot.slane %v97_v44, 5  ;;  %v124_v51 = vrot.slane %v122_v46, 4  ;;  %v5347_v44 = vld [vmem:[#allocation43_spill] sm:$0xff]  ;;  %v5349_v46 = vld [vmem:[#allocation45_spill] sm:$0xff] }
 0x150   :  { %2210 = vmatprep.subr.bf16.mxu0 %v3916_v52  ;;  %2296 = vmatprep.subr.bf16.mxu1 %v3923_v53  ;;  %v127_v52 = vrot.slane %v125_v47, 5  ;;  %v5306_v53 = vld [vmem:[#allocation4_spill] sm:$0xff]  ;;  %v5350_v47 = vld [vmem:[#allocation46_spill] sm:$0xff] }
 0x153   :  { %2211 = vmatpush1.bf16.msra.mxu0 %v3928_v54  ;;  %2297 = vmatpush1.bf16.msra.mxu1 %v3933_v55  ;;  %v5307_v54 = vld [vmem:[#allocation5_spill] sm:$0xff]  ;;  %v89_v55 = vld [vmem:[%s5139_s1 + $0xc] sm:$0x11] }
 0x154   :  { %2212 = vmatprep.subr.bf16.mxu0 %v3940_v56  ;;  %2298 = vmatprep.subr.bf16.mxu1 %v3947_v57  ;;  %v91_v56 = vld [vmem:[%s5139_s1 + $0x24] sm:$0x11] }
 0x155   :  { %v5308_v57 = vld [vmem:[#allocation6_spill] sm:$0xff] }
 0x157   :  { %2213 = vmatpush1.bf16.msra.mxu0 %v3952_v58  ;;  %2299 = vmatpush1.bf16.msra.mxu1 %v3957_v59  ;;  %v5309_v58 = vld [vmem:[#allocation7_spill] sm:$0xff]  ;;  %v5310_v59 = vld [vmem:[#allocation2_spill] sm:$0xff] }
 0x158   :  { %2214 = vmatprep.subr.bf16.mxu0 %v3964_v60  ;;  %2300 = vmatprep.subr.bf16.mxu1 %v3971_v61  ;;  %v100_v60 = vor.u32 %v99_v49, %v96_v48  ;;  %v103_v61 = vshll.u32 %v89_v55, 16  ;;  %v5351_v48 = vld [vmem:[#allocation47_spill] sm:$0xff]  ;;  %v5352_v49 = vld [vmem:[#allocation48_spill] sm:$0xff]  ;;  %v5357_v55 = vld [vmem:[#allocation53_spill] sm:$0xff] }
 0x15b   :  { %2215 = vmatpush1.bf16.msra.mxu0 %v3976_v62  ;;  %2301 = vmatpush1.bf16.msra.mxu1 %v3981_v63  ;;  %v128_v62 = vor.u32 %v127_v52, %v124_v51  ;;  %v131_v63 = vshll.u32 %v91_v56, 16  ;;  %v5353_v51 = vld [vmem:[#allocation49_spill] sm:$0xff]  ;;  %v5354_v52 = vld [vmem:[#allocation50_spill] sm:$0xff] }
 0x15c   :  { %2216 = vmatprep.subr.bf16.mxu0 %v3988_v0  ;;  %2302 = vmatprep.subr.bf16.mxu1 %v3995_v1  ;;  %v5311_v0 = vld [vmem:[#allocation8_spill] sm:$0xff]  ;;  %v5312_v1 = vld [vmem:[#allocation9_spill] sm:$0xff]  ;;  %v5358_v56 = vld [vmem:[#allocation54_spill] sm:$0xff] }
 0x15f   :  { %2217 = vmatpush1.bf16.msra.mxu0 %v4000_v2  ;;  %2303 = vmatpush1.bf16.msra.mxu1 %v4005_v3  ;;  %v101_v2 = vrot.slane %v100_v60, 4  ;;  %v105_v3 = vrot.slane %v103_v61, 5  ;;  %v5362_v60 = vld [vmem:[#allocation58_spill] sm:$0xff]  ;;  %v5363_v61 = vld [vmem:[#allocation59_spill] sm:$0xff] }
 0x160   :  { %2218 = vmatprep.subr.bf16.mxu0 %v4012_v4  ;;  %2304 = vmatprep.subr.bf16.mxu1 %v4019_v6  ;;  %v129_v4 = vrot.slane %v128_v62, 4  ;;  %v133_v6 = vrot.slane %v131_v63, 5  ;;  %v5364_v62 = vld [vmem:[#allocation60_spill] sm:$0xff]  ;;  %v5365_v63 = vld [vmem:[#allocation61_spill] sm:$0xff] }
 0x163   :  { %2219 = vmatpush1.bf16.msra.mxu0 %v4024_v7  ;;  %2305 = vmatpush1.bf16.msra.mxu1 %v4029_v8  ;;  %v5313_v7 = vld [vmem:[#allocation10_spill] sm:$0xff]  ;;  %v5314_v8 = vld [vmem:[#allocation11_spill] sm:$0xff] }
 0x164   :  { %2220 = vmatprep.subr.bf16.mxu0 %v4036_v9  ;;  %2306 = vmatprep.subr.bf16.mxu1 %v4043_v10  ;;  %v5315_v9 = vld [vmem:[#allocation12_spill] sm:$0xff]  ;;  %v5043_v10 = vsel %vm4189_vm3, %v129_v4, %v133_v6  ;;  %v5370_v4 = vld [vmem:[#allocation66_spill] sm:$0xff]  ;;  %v5371_v6 = vld [vmem:[#allocation67_spill] sm:$0xff] }
 0x167   :  { %2221 = vmatpush1.bf16.msra.mxu0 %v4048_v11  ;;  %2307 = vmatpush1.bf16.msra.mxu1 %v4053_v12  ;;  %v5316_v12 = vld [vmem:[#allocation3_spill] sm:$0xff] }
 0x168   :  { %2222 = vmatprep.subr.bf16.mxu0 %v4060_v13  ;;  %2308 = vmatprep.subr.bf16.mxu1 %v4067_v15  ;;  %v5317_v13 = vld [vmem:[#allocation13_spill] sm:$0xff]  ;;  %v5318_v15 = vld [vmem:[#allocation14_spill] sm:$0xff] }
 0x16b   :  { %2223 = vmatpush1.bf16.msra.mxu0 %v4072_v16  ;;  %2309 = vmatpush1.bf16.msra.mxu1 %v4077_v18  ;;  %v5319_v16 = vld [vmem:[#allocation15_spill] sm:$0xff]  ;;  %v5320_v18 = vld [vmem:[#allocation16_spill] sm:$0xff] }
 0x16c   :  { %2224 = vmatprep.subr.bf16.mxu0 %v4084_v19  ;;  %2310 = vmatprep.subr.bf16.mxu1 %v4091_v20  ;;  %v5321_v19 = vld [vmem:[#allocation17_spill] sm:$0xff]  ;;  %v5322_v20 = vld [vmem:[#allocation18_spill] sm:$0xff] }
 0x16f   :  { %2225 = vmatpush1.bf16.msra.mxu0 %v5306_v53  ;;  %2311 = vmatpush1.bf16.msra.mxu1 %v5307_v54  ;;  %v5355_v53 = vld [vmem:[#allocation51_spill] sm:$0xff]  ;;  %v5356_v54 = vld [vmem:[#allocation52_spill] sm:$0xff] }
 0x170   :  { %2237 = vmatprep.subr.bf16.mxu0 %v5308_v57  ;;  %2323 = vmatprep.subr.bf16.mxu1 %v5309_v58  ;;  %v5359_v57 = vld [vmem:[#allocation55_spill] sm:$0xff]  ;;  %v5360_v58 = vld [vmem:[#allocation56_spill] sm:$0xff] }
 0x172   :  { %2227 = vmatmul.mubr.bf16.vlgmr.msra.gmra.mrb[4].mxu0 %v5310_v59  ;;  %2313 = vmatmul.mubr.bf16.vlgmr.msra.gmra.mrb[4].mxu1 %v5310_v59  ;;  %v5361_v59 = vld [vmem:[#allocation57_spill] sm:$0xff] }
 0x173   :  { %2238 = vmatpush1.bf16.msra.mxu0 %v4130_v34  ;;  %2324 = vmatpush1.bf16.msra.mxu1 %v4137_v17  ;;  %v5039_v17 = vsel %vm4189_vm3, %v101_v2, %v105_v3  ;;  %v5323_v34 = vld [vmem:[#allocation19_spill] sm:$0xff]  ;;  %v5368_v2 = vld [vmem:[#allocation64_spill] sm:$0xff]  ;;  %v5369_v3 = vld [vmem:[#allocation65_spill] sm:$0xff] }
 0x174   :  { %2239 = vmatprep.subr.bf16.mxu0 %v5311_v0  ;;  %2325 = vmatprep.subr.bf16.mxu1 %v5312_v1  ;;  %v2994_v11 = vcombine.high %v5039_v17, %v5043_v10  ;;  %v5366_v0 = vld [vmem:[#allocation62_spill] sm:$0xff]  ;;  %v5367_v1 = vld [vmem:[#allocation63_spill] sm:$0xff] }
 0x175   :  { %2269 = vmatprep.mubr.bf16.mxu0 %v5236_v36  ;;  %2355 = vmatprep.mubr.bf16.mxu1 %v5236_v36 }
 0x177   :  { %2240 = vmatpush1.bf16.msra.mxu0 %v4164_v31  ;;  %2326 = vmatpush1.bf16.msra.mxu1 %v5313_v7  ;;  %v5325_v31 = vld [vmem:[#allocation21_spill] sm:$0xff]  ;;  %v5372_v7 = vld [vmem:[#allocation68_spill] sm:$0xff] }
 0x178   :  { %2380 = vmatprep.subr.bf16.mxu0 %v5314_v8  ;;  %2466 = vmatprep.subr.bf16.mxu1 %v5315_v9  ;;  %v5373_v8 = vld [vmem:[#allocation69_spill] sm:$0xff] }
 0x17e   :  { %2991 = vmatmul.mubr.msk.bf16.vlgmr.msra.gmra.mrb[4].mxu0 %vm742_vm0, %v5316_v12  ;;  %2992 = vmatmul.mubr.msk.bf16.vlgmr.msra.gmra.mrb[4].mxu1 %vm742_vm0, %v5316_v12 }
 0x17f   :  { %2381 = vmatpush1.bf16.msra.mxu0 %v4212_v33  ;;  %2467 = vmatpush1.bf16.msra.mxu1 %v4217_v35  ;;  %v5326_v33 = vld [vmem:[#allocation22_spill] sm:$0xff]  ;;  %v5327_v35 = vld [vmem:[#allocation23_spill] sm:$0xff] }
 0x180   :  { %2382 = vmatprep.subr.bf16.mxu0 %v4222_v30  ;;  %2468 = vmatprep.subr.bf16.mxu1 %v5317_v13  ;;  %v5328_v30 = vld [vmem:[#allocation24_spill] sm:$0xff] }
 0x181   :  { %2412 = vmatprep.mubr.bf16.mxu0 %v2994_v11  ;;  %2498 = vmatprep.mubr.bf16.mxu1 %v2994_v11 }
 0x183   :  { %2383 = vmatpush1.bf16.msra.mxu0 %v5318_v15  ;;  %2469 = vmatpush1.bf16.msra.mxu1 %v5319_v16  ;;  %v2993_v15 = vcombine.low %v5039_v17, %v5043_v10  ;;  %v5374_v16 = vld [vmem:[#allocation70_spill] sm:$0xff]  ;;  %v5381_v17 = vld [vmem:[#allocation77_spill] sm:$0xff] }
 0x184   :  { %2384 = vmatprep.subr.bf16.mxu0 %v5320_v18  ;;  %2470 = vmatprep.subr.bf16.mxu1 %v5321_v19  ;;  %v5375_v18 = vld [vmem:[#allocation71_spill] sm:$0xff]  ;;  %v5382_v10 = vld [vmem:[#allocation78_spill] sm:$0xff] }
 0x187   :  { %2385 = vmatpush1.bf16.msra.mxu0 %v5322_v20  ;;  %2471 = vmatpush1.bf16.msra.mxu1 %v5323_v34  ;;  %v5376_v34 = vld [vmem:[#allocation72_spill] sm:$0xff] }
 0x188   :  { %2386 = vmatprep.subr.bf16.mxu0 %v5324_v23  ;;  %2472 = vmatprep.subr.bf16.mxu1 %v5325_v31  ;;  %v5377_v23 = vld [vmem:[#allocation73_spill] sm:$0xff] }
 0x18b   :  { %2387 = vmatpush1.bf16.msra.mxu0 %v5326_v33  ;;  %2473 = vmatpush1.bf16.msra.mxu1 %v5327_v35  ;;  %v5378_v35 = vld [vmem:[#allocation74_spill] sm:$0xff] }
 0x18c   :  { %2388 = vmatprep.subr.bf16.mxu0 %v5328_v30  ;;  %2474 = vmatprep.subr.bf16.mxu1 %v5329_v38  ;;  %v5379_v30 = vld [vmem:[#allocation75_spill] sm:$0xff]  ;;  %v5380_v38 = vld [vmem:[#allocation76_spill] sm:$0xff] }
 0x18f   :  { %2389 = vmatpush1.bf16.msra.mxu0 %v5330_v5  ;;  %2475 = vmatpush1.bf16.msra.mxu1 %v5331_v39  ;;  %v5383_v5 = vld [vmem:[#allocation79_spill] sm:$0xff]  ;;  %v2574_v39 = vlaneseq }
 0x190   :  { %2390 = vmatprep.subr.bf16.mxu0 %v5332_v28  ;;  %2476 = vmatprep.subr.bf16.mxu1 %v5333_v37 }
 0x191   :  { %v2575_v28 = vshrl.u32 %v2574_v39, 7 }
 0x193   :  { %2391 = vmatpush1.bf16.msra.mxu0 %v5334_v24  ;;  %2477 = vmatpush1.bf16.msra.mxu1 %v5335_v27  ;;  %v2576_v37 = vsub.s32 0, %v2575_v28  ;;  %v2572_v24 = vld [vmem:[%s5141_s3] sm:$0x3]  ;;  %v2580_v27 = vsub.s32 1, %v2575_v28 }
 0x194   :  { %2392 = vmatprep.subr.bf16.mxu0 %v5336_v40  ;;  %2478 = vmatprep.subr.bf16.mxu1 %v5337_v25 }
 0x197   :  { %2393 = vmatpush1.bf16.msra.mxu0 %v5338_v26  ;;  %2479 = vmatpush1.bf16.msra.mxu1 %v5339_v50  ;;  %v2577_v50 = vrot.slane %v2572_v24, %v2576_v37 }
 0x198   :  { %2394 = vmatprep.subr.bf16.mxu0 %v5340_v32  ;;  %2480 = vmatprep.subr.bf16.mxu1 %v5341_v41 }
 0x19b   :  { %2395 = vmatpush1.bf16.msra.mxu0 %v5342_v14  ;;  %2481 = vmatpush1.bf16.msra.mxu1 %v5343_v29 }
 0x19c   :  { %2396 = vmatprep.subr.bf16.mxu0 %v5344_v22  ;;  %2482 = vmatprep.subr.bf16.mxu1 %v5345_v42  ;;  %v2581_v22 = vrot.slane %v2572_v24, %v2580_v27 }
 0x19f   :  { %2397 = vmatpush1.bf16.msra.mxu0 %v5346_v43  ;;  %2483 = vmatpush1.bf16.msra.mxu1 %v5347_v44 }
 0x1a0   :  { %2398 = vmatprep.subr.bf16.mxu0 %v5348_v45  ;;  %2484 = vmatprep.subr.bf16.mxu1 %v5349_v46 }
 0x1a3   :  { %2399 = vmatpush1.bf16.msra.mxu0 %v5350_v47  ;;  %2485 = vmatpush1.bf16.msra.mxu1 %v5351_v48 }
 0x1a4   :  { %2400 = vmatprep.subr.bf16.mxu0 %v5352_v49  ;;  %2486 = vmatprep.subr.bf16.mxu1 %v5353_v51 }
 0x1a7   :  { %2401 = vmatpush1.bf16.msra.mxu0 %v5354_v52  ;;  %2487 = vmatpush1.bf16.msra.mxu1 %v5355_v53 }
 0x1a8   :  { %2402 = vmatprep.subr.bf16.mxu0 %v5356_v54  ;;  %2488 = vmatprep.subr.bf16.mxu1 %v5357_v55 }
 0x1ab   :  { %2403 = vmatpush1.bf16.msra.mxu0 %v5358_v56  ;;  %2489 = vmatpush1.bf16.msra.mxu1 %v5359_v57 }
 0x1ac   :  { %2404 = vmatprep.subr.bf16.mxu0 %v5360_v58  ;;  %2490 = vmatprep.subr.bf16.mxu1 %v5361_v59 }
 0x1af   :  { %2405 = vmatpush1.bf16.msra.mxu0 %v5362_v60  ;;  %2491 = vmatpush1.bf16.msra.mxu1 %v5363_v61 }
 0x1b0   :  { %2406 = vmatprep.subr.bf16.mxu0 %v5364_v62  ;;  %2492 = vmatprep.subr.bf16.mxu1 %v5365_v63 }
 0x1b3   :  { %2407 = vmatpush1.bf16.msra.mxu0 %v5366_v0  ;;  %2493 = vmatpush1.bf16.msra.mxu1 %v5367_v1 }
 0x1b4   :  { %2408 = vmatprep.subr.bf16.mxu0 %v5368_v2  ;;  %2494 = vmatprep.subr.bf16.mxu1 %v5369_v3 }
 0x1b7   :  { %2409 = vmatpush1.bf16.msra.mxu0 %v5370_v4  ;;  %2495 = vmatpush1.bf16.msra.mxu1 %v5371_v6 }
 0x1b8   :  { %2410 = vmatprep.subr.bf16.mxu0 %v5372_v7  ;;  %2496 = vmatprep.subr.bf16.mxu1 %v5373_v8 }
 0x1b9   :  { %v1919_v9 = vpop.f32.mrb[0].mxu0  ;;  %v2005_v11 = vpop.f32.mrb[0].mxu1 }
 0x1ba   :  { %v1921_v12 = vpop.f32.mrb[1].mxu0  ;;  %v2007_v13 = vpop.f32.mrb[1].mxu1 }
 0x1bb   :  { %2411 = vmatpush1.bf16.msra.mxu0 %v5374_v16  ;;  %2497 = vmatpush1.bf16.msra.mxu1 %v5375_v18  ;;  %v1923_v19 = vpop.f32.mrb[2].mxu0  ;;  %v2009_v20 = vpop.f32.mrb[2].mxu1 }
 0x1bc   :  { %2423 = vmatprep.subr.bf16.mxu0 %v5376_v34  ;;  %2509 = vmatprep.subr.bf16.mxu1 %v5377_v23  ;;  %v1925_v31 = vpop.f32.mrb[3].mxu0  ;;  %v2011_v33 = vpop.f32.mrb[3].mxu1 }
 0x1be   :  { %2413 = vmatmul.mubr.bf16.vlgmr.msra.gmra.mrb[4].mxu0 %v2993_v15  ;;  %2499 = vmatmul.mubr.bf16.vlgmr.msra.gmra.mrb[4].mxu1 %v2993_v15 }
 0x1bf   :  { %2424 = vmatpush1.bf16.msra.mxu0 %v5378_v35  ;;  %2510 = vmatpush1.bf16.msra.mxu1 %v5379_v30 }
 0x1c0   :  { %2425 = vmatprep.subr.bf16.mxu0 %v5380_v38  ;;  %2511 = vmatprep.subr.bf16.mxu1 %v5381_v17 }
 0x1c1   :  { %2455 = vmatprep.mubr.bf16.mxu0 %v5236_v36  ;;  %2541 = vmatprep.mubr.bf16.mxu1 %v5236_v36 }
 0x1c3   :  { %2426 = vmatpush1.bf16.msra.mxu0 %v5382_v10  ;;  %2512 = vmatpush1.bf16.msra.mxu1 %v5383_v5 }
 0x1ca   :  { %2996 = vmatmul.mubr.msk.bf16.vlgmr.msra.gmra.mrb[4].mxu0 %vm742_vm0, %v4971_v21  ;;  %2997 = vmatmul.mubr.msk.bf16.vlgmr.msra.gmra.mrb[4].mxu1 %vm742_vm0, %v4971_v21 }
 0x29d   :  { %v2457_v40 = vpop.f32.mrb[4].mxu0  ;;  %v2543_v36 = vpop.f32.mrb[4].mxu1 }
 0x29e   :  { %v2560_v25 = vmax.f32 %v1919_v9, %v2457_v40  ;;  %v2562_v26 = vmax.f32 %v2005_v11, %v2543_v36  ;;  %v2459_v32 = vpop.f32.mrb[5].mxu0  ;;  %v2545_v41 = vpop.f32.mrb[5].mxu1 }
 0x29f   :  { %v2561_v14 = vmax.f32 %v1921_v12, %v2459_v32  ;;  %v2563_v29 = vmax.f32 %v2007_v13, %v2545_v41  ;;  %v2461_v42 = vpop.f32.mrb[6].mxu0  ;;  %v2547_v21 = vpop.f32.mrb[6].mxu1 }
 0x2a0   :  { %v2568_v43 = vmax.f32 %v2560_v25, %v2562_v26  ;;  %v2564_v44 = vmax.f32 %v1923_v19, %v2461_v42  ;;  %v2566_v45 = vmax.f32 %v2009_v20, %v2547_v21  ;;  %v2463_v46 = vpop.f32.mrb[7].mxu0  ;;  %v2549_v47 = vpop.f32.mrb[7].mxu1 }
 0x2a1   :  { %v2569_v48 = vmax.f32 %v2561_v14, %v2563_v29  ;;  %v2565_v49 = vmax.f32 %v1925_v31, %v2463_v46  ;;  %v2567_v51 = vmax.f32 %v2011_v33, %v2549_v47 }
 0x2a2   :  { %v2584_v52 = vadd.f32 %v2577_v50, %v2568_v43  ;;  %v2570_v53 = vmax.f32 %v2564_v44, %v2566_v45 }
 0x2a3   :  { %v2585_v54 = vadd.f32 %v2581_v22, %v2569_v48  ;;  %v2571_v55 = vmax.f32 %v2565_v49, %v2567_v51 }
 0x2a4   :  { %v2588_v56 = vmax.f32 %v2584_v52, 0.0  ;;  %v2586_v57 = vadd.f32 %v2577_v50, %v2570_v53 }
 0x2a5   :  { %v2589_v58 = vmax.f32 %v2585_v54, 0.0  ;;  %v2587_v59 = vadd.f32 %v2581_v22, %v2571_v55 }
 0x2a6   :  { %v2590_v60 = vmax.f32 %v2586_v57, 0.0 }
 0x2a7   :  { %v3000_v61 = vpack.c.bf16 %v2589_v58, %v2588_v56  ;;  %v2591_v62 = vmax.f32 %v2587_v59, 0.0 }
 0x2a9   :  { %2608 = vst [vmem:[%s5142_s4] sm:$0xff] %v3000_v61  ;;  %v3001_v63 = vpack.c.bf16 %v2591_v62, %v2590_v60 }
 0x2ab   :  { %2609 = vst [vmem:[%s5142_s4 + $0x8] sm:$0xff] %v3001_v63 }

</bundles_post_ra>
